<compile_context>
chip_gen: v7x
topology: tpu7x:2x2x1
jax: 0.10.0
libtpu: 0.0.40
codegen_flags: <defaults>
</compile_context>

<pallas_src>
import functools

import jax
import jax.numpy as jnp
from jax.experimental import pallas as pl
from jax.experimental.pallas import tpu as pltpu

ALPHA = 0.2          # LeakyReLU slope (matches self.alpha)
NEG_INF = -9e15


def _elu(x):
    return jnp.where(x > 0, x, jnp.exp(jnp.minimum(x, 0.0)) - 1.0)


def _leaky(x, alpha):
    return jnp.where(x > 0, x, alpha * x)


# ------------------------------ fused layer kernel -------------------------- #

def _dan_layer_kernel(fea_j_ref, bp_ref, bs_ref, bq_ref, fea_m_ref, mbc_ref,
                      fjc_ref, cmpT_ref,
                      wj_ref, ajs_ref, ajd_ref, eje_ref,
                      wm_ref, a1_ref, u2_ref, v3_ref, eme_ref,
                      *rest, alpha, concat):
    """One batch element: op-attention + mch-attention (+ finalization)."""
    if concat:
        fj_out_ref, fm_out_ref = rest
    else:
        mavgj_ref, mavgm_ref, fj_out_ref, fm_out_ref, fjg_ref, fmg_ref = rest

    f32 = jnp.float32

    # ---------------- operation (job) attention, all heads folded ----------
    x = fea_j_ref[0]                                                  # (N, Dj)
    n_ops = x.shape[0]
    wh = jnp.dot(x, wj_ref[...], preferred_element_type=f32)          # (N, H*Do)
    e_src = jnp.dot(wh, ajs_ref[...], preferred_element_type=f32)     # (N, H)
    e_dst = jnp.dot(wh, ajd_ref[...], preferred_element_type=f32)     # (N, H)

    # In-register chain-shift matrices (replace the HBM x_pre / x_suc copies).
    ri = jax.lax.broadcasted_iota(jnp.int32, (n_ops, n_ops), 0)
    ci = jax.lax.broadcasted_iota(jnp.int32, (n_ops, n_ops), 1)
    s_pre = (ri == ci + 1).astype(f32)       # row i <- row i-1 (row 0 -> zeros)
    s_suc = (ci == ri + 1).astype(f32)       # row i <- row i+1 (last row -> 0)
    wh_pre = jnp.dot(s_pre, wh, preferred_element_type=f32)
    wh_suc = jnp.dot(s_suc, wh, preferred_element_type=f32)
    ed_pre = jnp.dot(s_pre, e_dst, preferred_element_type=f32)
    ed_suc = jnp.dot(s_suc, e_dst, preferred_element_type=f32)

    lp = _leaky(e_src + ed_pre, alpha) + bp_ref[0]                    # (N,H)+(N,1)
    ls = _leaky(e_src + e_dst, alpha) + bs_ref[0]
    lq = _leaky(e_src + ed_suc, alpha) + bq_ref[0]
    mx = jnp.maximum(jnp.maximum(lp, ls), lq)
    pp = jnp.exp(lp - mx)
    ps = jnp.exp(ls - mx)
    pq = jnp.exp(lq - mx)
    inv = pl.reciprocal(pp + ps + pq, approx=True)                    # (N, H)
    eje = eje_ref[...]                                                # (H, H*Do)
    wpre = jnp.dot(pp * inv, eje, preferred_element_type=f32)         # (N, H*Do)
    wslf = jnp.dot(ps * inv, eje, preferred_element_type=f32)
    wsuc = jnp.dot(pq * inv, eje, preferred_element_type=f32)
    hj = wpre * wh_pre + wslf * wh + wsuc * wh_suc                    # (N, H*Do)

    # -------- machine attention (edge term fused, heads folded) ------------
    hm = fea_m_ref[0]                                                 # (M, Dm)
    n_mch = hm.shape[0]
    whm = jnp.dot(hm, wm_ref[...], preferred_element_type=f32)        # (M, H*Do)
    c = jnp.dot(whm, a1_ref[...], preferred_element_type=f32)         # (M, H)
    d = jnp.dot(hm, u2_ref[...], preferred_element_type=f32)          # (M, H)
    t = jnp.dot(fjc_ref[0], v3_ref[...], preferred_element_type=f32)  # (J, H)
    eme = eme_ref[...]                                                # (H, H*Do)

    n_heads_m = c.shape[1]
    m_run = jnp.full((n_mch, n_heads_m), -jnp.inf, f32)
    s_run = jnp.zeros((n_mch, n_heads_m), f32)
    acc = jnp.zeros((n_mch, eme.shape[1]), f32)
    # Flash-style online softmax over key machines j (M is tiny and static).
    # Row extraction uses one-hot matmuls (idle MXU) instead of sub-tile
    # slices so no relayouts are needed.
    for j in range(n_mch):
        oh = (jax.lax.broadcasted_iota(jnp.int32, (1, n_mch), 1) == j).astype(f32)
        d_j = jnp.dot(oh, d, preferred_element_type=f32)              # (1, H)
        v_j = jnp.dot(oh, whm, preferred_element_type=f32)            # (1, H*Do)
        e3_j = jnp.dot(cmpT_ref[0, j], t, preferred_element_type=f32)  # (M, H)
        l_j = _leaky(c + d_j + e3_j, alpha) + mbc_ref[0, j]           # (M, H)
        m_new = jnp.maximum(m_run, l_j)
        sc = jnp.exp(m_run - m_new)
        p_j = jnp.exp(l_j - m_new)
        s_run = s_run * sc + p_j
        acc = (acc * jnp.dot(sc, eme, preferred_element_type=f32)
               + jnp.dot(p_j, eme, preferred_element_type=f32) * v_j)
        m_run = m_new
    invm = pl.reciprocal(s_run, approx=True)                          # (M, H)
    hmo = acc * jnp.dot(invm, eme, preferred_element_type=f32)        # (M, H*Do)

    # -------- write-back (per-head ELU / head mean + ELU / nonzero mean) ---
    if concat:
        fj_out_ref[0] = _elu(hj)
        fm_out_ref[0] = _elu(hmo)
    else:
        fj = _elu(jnp.dot(hj, mavgj_ref[...], preferred_element_type=f32))
        fm = _elu(jnp.dot(hmo, mavgm_ref[...], preferred_element_type=f32))
        fj_out_ref[0] = fj
        fm_out_ref[0] = fm
        nzj = (jnp.sum(jnp.abs(fj), axis=-1, keepdims=True) > 0).astype(f32)
        nzm = (jnp.sum(jnp.abs(fm), axis=-1, keepdims=True) > 0).astype(f32)
        fjg_ref[0] = (jnp.sum(fj * nzj, axis=0, keepdims=True)
                      / jnp.maximum(jnp.sum(nzj, axis=0, keepdims=True), 1.0))
        fmg_ref[0] = (jnp.sum(fm * nzm, axis=0, keepdims=True)
                      / jnp.maximum(jnp.sum(nzm, axis=0, keepdims=True), 1.0))


# ------------------------- parameter folding helpers ------------------------ #

def _fold_w(w):
    """(H, Din, Dout) -> (Din, H*Dout), head-major lane segments."""
    h, din, dout = w.shape
    return jnp.transpose(w, (1, 0, 2)).reshape(din, h * dout)


def _block_cols(a):
    """(H, 1, D) -> (H*D, H) block-column matrix for per-head lane reductions."""
    h, _, d = a.shape
    eye = jnp.eye(h, dtype=jnp.float32)
    return (a[:, 0, :, None] * eye[:, None, :]).reshape(h * d, h)


# ------------------------------ layer wrapper ------------------------------- #

def _dan_layer(op_p, mch_p, fea_j, bp, bs, bq, fea_m, mbc, fea_jc, cmpT, concat):
    B, N, Dj = fea_j.shape
    _, M, Dm = fea_m.shape
    J = fea_jc.shape[1]
    De = fea_jc.shape[2]
    HO, _, Do = op_p["W"].shape
    HM = mch_p["Wn"].shape[0]

    # parameter-only precomputation (no activations involved)
    wj = _fold_w(op_p["W"])                                           # (Dj, HO*Do)
    ajs = _block_cols(op_p["a_src"])                                  # (HO*Do, HO)
    ajd = _block_cols(op_p["a_dst"])
    eje = jnp.repeat(jnp.eye(HO, dtype=jnp.float32), Do, axis=1)      # (HO, HO*Do)
    wm = _fold_w(mch_p["Wn"])                                         # (Dm, HM*Do)
    a1 = _block_cols(mch_p["a1"])                                     # (HM*Do, HM)
    u2 = jnp.einsum("hdo,ho->hd", mch_p["Wn"], mch_p["a2"][:, 0, :]).T  # (Dm, HM)
    v3 = jnp.einsum("hdo,ho->hd", mch_p["We"], mch_p["a3"][:, 0, :]).T  # (De, HM)
    eme = jnp.repeat(jnp.eye(HM, dtype=jnp.float32), Do, axis=1)      # (HM, HM*Do)

    args = [fea_j, bp, bs, bq, fea_m, mbc, fea_jc, cmpT,
            wj, ajs, ajd, eje, wm, a1, u2, v3, eme]
    in_specs = [
        pl.BlockSpec((1, N, Dj), lambda b: (b, 0, 0)),
        pl.BlockSpec((1, N, 1), lambda b: (b, 0, 0)),
        pl.BlockSpec((1, N, 1), lambda b: (b, 0, 0)),
        pl.BlockSpec((1, N, 1), lambda b: (b, 0, 0)),
        pl.BlockSpec((1, M, Dm), lambda b: (b, 0, 0)),
        pl.BlockSpec((1, M, M, 1), lambda b: (b, 0, 0, 0)),
        pl.BlockSpec((1, J, De), lambda b: (b, 0, 0)),
        pl.BlockSpec((1, M, M, J), lambda b: (b, 0, 0, 0)),
        # weights: block index independent of b -> stay VMEM-resident
        pl.BlockSpec((Dj, HO * Do), lambda b: (0, 0)),
        pl.BlockSpec((HO * Do, HO), lambda b: (0, 0)),
        pl.BlockSpec((HO * Do, HO), lambda b: (0, 0)),
        pl.BlockSpec((HO, HO * Do), lambda b: (0, 0)),
        pl.BlockSpec((Dm, HM * Do), lambda b: (0, 0)),
        pl.BlockSpec((HM * Do, HM), lambda b: (0, 0)),
        pl.BlockSpec((Dm, HM), lambda b: (0, 0)),
        pl.BlockSpec((De, HM), lambda b: (0, 0)),
        pl.BlockSpec((HM, HM * Do), lambda b: (0, 0)),
    ]
    if concat:
        out_shape = (jax.ShapeDtypeStruct((B, N, HO * Do), jnp.float32),
                     jax.ShapeDtypeStruct((B, M, HM * Do), jnp.float32))
        out_specs = (pl.BlockSpec((1, N, HO * Do), lambda b: (b, 0, 0)),
                     pl.BlockSpec((1, M, HM * Do), lambda b: (b, 0, 0)))
    else:
        mavgj = jnp.tile(jnp.eye(Do, dtype=jnp.float32), (HO, 1)) / HO
        mavgm = jnp.tile(jnp.eye(Do, dtype=jnp.float32), (HM, 1)) / HM
        args += [mavgj, mavgm]
        in_specs += [pl.BlockSpec((HO * Do, Do), lambda b: (0, 0)),
                     pl.BlockSpec((HM * Do, Do), lambda b: (0, 0))]
        out_shape = (jax.ShapeDtypeStruct((B, N, Do), jnp.float32),
                     jax.ShapeDtypeStruct((B, M, Do), jnp.float32),
                     jax.ShapeDtypeStruct((B, 1, Do), jnp.float32),
                     jax.ShapeDtypeStruct((B, 1, Do), jnp.float32))
        out_specs = (pl.BlockSpec((1, N, Do), lambda b: (b, 0, 0)),
                     pl.BlockSpec((1, M, Do), lambda b: (b, 0, 0)),
                     pl.BlockSpec((1, 1, Do), lambda b: (b, 0, 0)),
                     pl.BlockSpec((1, 1, Do), lambda b: (b, 0, 0)))

    kern = functools.partial(_dan_layer_kernel, alpha=ALPHA, concat=concat)
    return pl.pallas_call(
        kern,
        out_shape=out_shape,
        grid=(B,),
        in_specs=in_specs,
        out_specs=out_specs,
        compiler_params=pltpu.CompilerParams(dimension_semantics=("parallel",)),
    )(*args)


# ------------------------------- the network -------------------------------- #

def init_params(config, key):
    n_layers = len(config.num_heads_OAB)
    out_dims = config.layer_fea_output_dim
    mid = out_dims[:-1]
    j_in = [config.fea_j_input_dim] + mid
    m_in = [config.fea_m_input_dim] + mid
    h_oab = [1] + config.num_heads_OAB
    h_mab = [1] + config.num_heads_MAB

    def xavier(k, shape):
        fan_in, fan_out = shape[-2], shape[-1]
        lim = 1.414 * (6.0 / (fan_in + fan_out)) ** 0.5
        return jax.random.uniform(k, shape, jnp.float32, -lim, lim)

    params = {"op": [], "mch": []}
    keys = iter(jax.random.split(key, 8 * n_layers))
    for i in range(n_layers):
        H_o, H_m, d_out = config.num_heads_OAB[i], config.num_heads_MAB[i], out_dims[i]
        op_in = h_oab[i] * j_in[i]
        m_node_in = h_mab[i] * m_in[i]
        m_edge_in = h_oab[i] * j_in[i]
        params["op"].append({
            "W": xavier(next(keys), (H_o, op_in, d_out)),
            "a_src": xavier(next(keys), (H_o, 1, d_out)),
            "a_dst": xavier(next(keys), (H_o, 1, d_out)),
        })
        params["mch"].append({
            "Wn": xavier(next(keys), (H_m, m_node_in, d_out)),
            "We": xavier(next(keys), (H_m, m_edge_in, d_out)),
            "a1": xavier(next(keys), (H_m, 1, d_out)),
            "a2": xavier(next(keys), (H_m, 1, d_out)),
            "a3": xavier(next(keys), (H_m, 1, d_out)),
        })
    return params


def o_m_attention_forward(config, params, fea_j, op_mask, candidate, fea_m,
                          mch_mask, comp_idx):
    n_layers = len(config.num_heads_OAB)
    fea_j = fea_j.astype(jnp.float32)
    fea_m = fea_m.astype(jnp.float32)

    # masks -> additive -inf biases, computed once (constant across layers)
    opm = op_mask.astype(jnp.float32)                     # 1.0 == neighbour absent
    bp = opm[:, :, 0:1] * NEG_INF                         # (B, N, 1)
    bs = opm[:, :, 1:2] * NEG_INF
    bq = opm[:, :, 2:3] * NEG_INF
    # machine bias laid out [b, key j, query i, 1] so the kernel indexes by key
    mbc = jnp.transpose((1.0 - mch_mask.astype(jnp.float32)) * NEG_INF,
                        (0, 2, 1))[..., None]             # (B, M, M, 1)
    # comp_idx laid out [b, key j, query i, J] for the fused edge term
    cmpT = jnp.transpose(comp_idx.astype(jnp.float32), (0, 2, 1, 3))

    cand = candidate.astype(jnp.int32)[:, :, None]        # (B, J, 1)
    fj_g = fm_g = None
    for layer in range(n_layers):
        concat = layer < n_layers - 1
        # candidate-operation gather (torch.gather equivalent; tiny, wrapper-side)
        fea_jc = jnp.take_along_axis(fea_j, cand, axis=1).astype(jnp.float32)
        outs = _dan_layer(params["op"][layer], params["mch"][layer],
                          fea_j, bp, bs, bq, fea_m, mbc, fea_jc, cmpT, concat)
        if concat:
            fea_j, fea_m = outs
        else:
            fea_j, fea_m, fj_g, fm_g = outs
    return fea_j, fea_m, fj_g[:, 0, :], fm_g[:, 0, :]


# ---------------------------------- main ------------------------------------ #

if __name__ == "__main__":
    from types import SimpleNamespace

    config = SimpleNamespace(
        fea_j_input_dim=10, fea_m_input_dim=8,
        layer_fea_output_dim=[32, 8],
        num_heads_OAB=[4, 4], num_heads_MAB=[4, 4],
        dropout_prob=0.0,
    )
    B, N, M, J = 2, 16, 4, 4          # 4 jobs x 4 ops each, 4 machines

    key = jax.random.PRNGKey(0)
    k_par, k_j, k_m, k_c, k_mm = jax.random.split(key, 5)
    params = init_params(config, k_par)

    fea_j = jax.random.normal(k_j, (B, N, config.fea_j_input_dim), jnp.float32)
    fea_m = jax.random.normal(k_m, (B, M, config.fea_m_input_dim), jnp.float32)
    op_pos = jnp.arange(N) % 4
    op_mask = jnp.stack([(op_pos == 0).astype(jnp.float32),       # no predecessor
                         jnp.zeros((N,), jnp.float32),            # self valid
                         (op_pos == 3).astype(jnp.float32)],      # no successor
                        axis=-1)
    op_mask = jnp.broadcast_to(op_mask[None], (B, N, 3))
    candidate = jnp.stack([jnp.array([0, 4, 8, 12], jnp.int32),
                           jnp.array([1, 5, 9, 13], jnp.int32)], axis=0)
    comp_idx = jax.random.bernoulli(k_c, 0.5, (B, M, M, J)).astype(jnp.float32)
    mch_mask = jnp.maximum(
        jax.random.bernoulli(k_mm, 0.6, (B, M, M)).astype(jnp.float32),
        jnp.eye(M, dtype=jnp.float32)[None])

    fwd = jax.jit(functools.partial(o_m_attention_forward, config))
    fea_j_o, fea_m_o, fea_j_g, fea_m_g = fwd(params, fea_j, op_mask, candidate,
                                             fea_m, mch_mask, comp_idx)
    for t in (fea_j_o, fea_m_o, fea_j_g, fea_m_g):
        jax.block_until_ready(t)

    d_last = config.layer_fea_output_dim[-1]
    assert fea_j_o.shape == (B, N, d_last)
    assert fea_m_o.shape == (B, M, d_last)
    assert fea_j_g.shape == (B, d_last)
    assert fea_m_g.shape == (B, d_last)
    for t in (fea_j_o, fea_m_o, fea_j_g, fea_m_g):
        assert bool(jnp.all(jnp.isfinite(t)))
    print("KERNEL_OK")
</pallas_src>

<mosaic_0001>
module attributes {stable_mosaic.version = 11 : i64} {
  func.func @_dan_layer_kernel(%arg0: i32, %arg1: memref<1x16x10xf32, #tpu.memory_space<vmem>>, %arg2: memref<1x16x1xf32, #tpu.memory_space<vmem>>, %arg3: memref<1x16x1xf32, #tpu.memory_space<vmem>>, %arg4: memref<1x16x1xf32, #tpu.memory_space<vmem>>, %arg5: memref<1x4x8xf32, #tpu.memory_space<vmem>>, %arg6: memref<1x4x4x1xf32, #tpu.memory_space<vmem>>, %arg7: memref<1x4x10xf32, #tpu.memory_space<vmem>>, %arg8: memref<1x4x4x4xf32, #tpu.memory_space<vmem>>, %arg9: memref<10x128xf32, #tpu.memory_space<vmem>>, %arg10: memref<128x4xf32, #tpu.memory_space<vmem>>, %arg11: memref<128x4xf32, #tpu.memory_space<vmem>>, %arg12: memref<4x128xf32, #tpu.memory_space<vmem>>, %arg13: memref<8x128xf32, #tpu.memory_space<vmem>>, %arg14: memref<128x4xf32, #tpu.memory_space<vmem>>, %arg15: memref<8x4xf32, #tpu.memory_space<vmem>>, %arg16: memref<10x4xf32, #tpu.memory_space<vmem>>, %arg17: memref<4x128xf32, #tpu.memory_space<vmem>>, %arg18: memref<1x16x128xf32, #tpu.memory_space<vmem>>, %arg19: memref<1x4x128xf32, #tpu.memory_space<vmem>>) attributes {dimension_semantics = [#tpu.dimension_semantics<parallel>], iteration_bounds = array<i64: 2>, scalar_prefetch = 0 : i64, scratch_operands = 0 : i64, tpu.core_type = #tpu.core_type<tc>, window_params = [{transform_indices = @transform_0, window_bounds = array<i64: 1, 16, 10>}, {transform_indices = @transform_1, window_bounds = array<i64: 1, 16, 1>}, {transform_indices = @transform_2, window_bounds = array<i64: 1, 16, 1>}, {transform_indices = @transform_3, window_bounds = array<i64: 1, 16, 1>}, {transform_indices = @transform_4, window_bounds = array<i64: 1, 4, 8>}, {transform_indices = @transform_5, window_bounds = array<i64: 1, 4, 4, 1>}, {transform_indices = @transform_6, window_bounds = array<i64: 1, 4, 10>}, {transform_indices = @transform_7, window_bounds = array<i64: 1, 4, 4, 4>}, {pipeline_mode = #tpu.pipeline_mode<synchronous>, transform_indices = @transform_8, window_bounds = array<i64: 10, 128>}, {pipeline_mode = #tpu.pipeline_mode<synchronous>, transform_indices = @transform_9, window_bounds = array<i64: 128, 4>}, {pipeline_mode = #tpu.pipeline_mode<synchronous>, transform_indices = @transform_10, window_bounds = array<i64: 128, 4>}, {pipeline_mode = #tpu.pipeline_mode<synchronous>, transform_indices = @transform_11, window_bounds = array<i64: 4, 128>}, {pipeline_mode = #tpu.pipeline_mode<synchronous>, transform_indices = @transform_12, window_bounds = array<i64: 8, 128>}, {pipeline_mode = #tpu.pipeline_mode<synchronous>, transform_indices = @transform_13, window_bounds = array<i64: 128, 4>}, {pipeline_mode = #tpu.pipeline_mode<synchronous>, transform_indices = @transform_14, window_bounds = array<i64: 8, 4>}, {pipeline_mode = #tpu.pipeline_mode<synchronous>, transform_indices = @transform_15, window_bounds = array<i64: 10, 4>}, {pipeline_mode = #tpu.pipeline_mode<synchronous>, transform_indices = @transform_16, window_bounds = array<i64: 4, 128>}, {transform_indices = @transform_17, window_bounds = array<i64: 1, 16, 128>}, {transform_indices = @transform_18, window_bounds = array<i64: 1, 4, 128>}]} {
    %c0 = arith.constant 0 : index
    %c0_0 = arith.constant 0 : index
    %c0_1 = arith.constant 0 : index
    %0 = vector.load %arg1[%c0, %c0_0, %c0_1] : memref<1x16x10xf32, #tpu.memory_space<vmem>>, vector<1x16x10xf32>
    %1 = vector.shape_cast %0 : vector<1x16x10xf32> to vector<16x10xf32>
    %c0_2 = arith.constant 0 : index
    %c0_3 = arith.constant 0 : index
    %2 = vector.load %arg9[%c0_2, %c0_3] : memref<10x128xf32, #tpu.memory_space<vmem>>, vector<10x128xf32>
    %cst = arith.constant dense<0.000000e+00> : vector<16x128xf32>
    %3 = tpu.matmul %1, %2, %cst {dimension_numbers = #tpu.dot_dimension_numbers<[1], [0], [0], [1], [0, 0, 1, 1], [], []>} : vector<16x10xf32>, vector<10x128xf32>, vector<16x128xf32> -> vector<16x128xf32>
    %c0_4 = arith.constant 0 : index
    %c0_5 = arith.constant 0 : index
    %4 = vector.load %arg10[%c0_4, %c0_5] : memref<128x4xf32, #tpu.memory_space<vmem>>, vector<128x4xf32>
    %cst_6 = arith.constant dense<0.000000e+00> : vector<16x4xf32>
    %5 = tpu.matmul %3, %4, %cst_6 {dimension_numbers = #tpu.dot_dimension_numbers<[1], [0], [0], [1], [0, 0, 1, 1], [], []>} : vector<16x128xf32>, vector<128x4xf32>, vector<16x4xf32> -> vector<16x4xf32>
    %c0_7 = arith.constant 0 : index
    %c0_8 = arith.constant 0 : index
    %6 = vector.load %arg11[%c0_7, %c0_8] : memref<128x4xf32, #tpu.memory_space<vmem>>, vector<128x4xf32>
    %cst_9 = arith.constant dense<0.000000e+00> : vector<16x4xf32>
    %7 = tpu.matmul %3, %6, %cst_9 {dimension_numbers = #tpu.dot_dimension_numbers<[1], [0], [0], [1], [0, 0, 1, 1], [], []>} : vector<16x128xf32>, vector<128x4xf32>, vector<16x4xf32> -> vector<16x4xf32>
    %8 = tpu.iota {dimensions = array<i32: 0>} : vector<16x16xi32>
    %9 = tpu.iota {dimensions = array<i32: 1>} : vector<16x16xi32>
    %c1_i32 = arith.constant 1 : i32
    %10 = vector.broadcast %c1_i32 : i32 to vector<16x16xi32>
    %11 = arith.addi %9, %10 : vector<16x16xi32>
    %12 = arith.cmpi eq, %8, %11 : vector<16x16xi32>
    %13 = arith.extui %12 : vector<16x16xi1> to vector<16x16xi32>
    %14 = arith.sitofp %13 : vector<16x16xi32> to vector<16x16xf32>
    %c1_i32_10 = arith.constant 1 : i32
    %15 = vector.broadcast %c1_i32_10 : i32 to vector<16x16xi32>
    %16 = arith.addi %8, %15 : vector<16x16xi32>
    %17 = arith.cmpi eq, %9, %16 : vector<16x16xi32>
    %18 = arith.extui %17 : vector<16x16xi1> to vector<16x16xi32>
    %19 = arith.sitofp %18 : vector<16x16xi32> to vector<16x16xf32>
    %cst_11 = arith.constant dense<0.000000e+00> : vector<16x128xf32>
    %20 = tpu.matmul %14, %3, %cst_11 {dimension_numbers = #tpu.dot_dimension_numbers<[1], [0], [0], [1], [0, 0, 1, 1], [], []>} : vector<16x16xf32>, vector<16x128xf32>, vector<16x128xf32> -> vector<16x128xf32>
    %cst_12 = arith.constant dense<0.000000e+00> : vector<16x128xf32>
    %21 = tpu.matmul %19, %3, %cst_12 {dimension_numbers = #tpu.dot_dimension_numbers<[1], [0], [0], [1], [0, 0, 1, 1], [], []>} : vector<16x16xf32>, vector<16x128xf32>, vector<16x128xf32> -> vector<16x128xf32>
    %cst_13 = arith.constant dense<0.000000e+00> : vector<16x4xf32>
    %22 = tpu.matmul %14, %7, %cst_13 {dimension_numbers = #tpu.dot_dimension_numbers<[1], [0], [0], [1], [0, 0, 1, 1], [], []>} : vector<16x16xf32>, vector<16x4xf32>, vector<16x4xf32> -> vector<16x4xf32>
    %cst_14 = arith.constant dense<0.000000e+00> : vector<16x4xf32>
    %23 = tpu.matmul %19, %7, %cst_14 {dimension_numbers = #tpu.dot_dimension_numbers<[1], [0], [0], [1], [0, 0, 1, 1], [], []>} : vector<16x16xf32>, vector<16x4xf32>, vector<16x4xf32> -> vector<16x4xf32>
    %24 = arith.addf %5, %22 : vector<16x4xf32>
    %cst_15 = arith.constant 0.000000e+00 : f32
    %25 = vector.broadcast %cst_15 : f32 to vector<16x4xf32>
    %26 = arith.cmpf ogt, %24, %25 : vector<16x4xf32>
    %cst_16 = arith.constant 2.000000e-01 : f32
    %27 = vector.broadcast %cst_16 : f32 to vector<16x4xf32>
    %28 = arith.mulf %27, %24 : vector<16x4xf32>
    %29 = arith.select %26, %24, %28 : vector<16x4xi1>, vector<16x4xf32>
    %c0_17 = arith.constant 0 : index
    %c0_18 = arith.constant 0 : index
    %c0_19 = arith.constant 0 : index
    %30 = vector.load %arg2[%c0_17, %c0_18, %c0_19] : memref<1x16x1xf32, #tpu.memory_space<vmem>>, vector<1x16x1xf32>
    %31 = vector.shape_cast %30 : vector<1x16x1xf32> to vector<16x1xf32>
    %32 = vector.broadcast %31 : vector<16x1xf32> to vector<16x4xf32>
    %33 = arith.addf %29, %32 : vector<16x4xf32>
    %34 = arith.addf %5, %7 : vector<16x4xf32>
    %cst_20 = arith.constant 0.000000e+00 : f32
    %35 = vector.broadcast %cst_20 : f32 to vector<16x4xf32>
    %36 = arith.cmpf ogt, %34, %35 : vector<16x4xf32>
    %cst_21 = arith.constant 2.000000e-01 : f32
    %37 = vector.broadcast %cst_21 : f32 to vector<16x4xf32>
    %38 = arith.mulf %37, %34 : vector<16x4xf32>
    %39 = arith.select %36, %34, %38 : vector<16x4xi1>, vector<16x4xf32>
    %c0_22 = arith.constant 0 : index
    %c0_23 = arith.constant 0 : index
    %c0_24 = arith.constant 0 : index
    %40 = vector.load %arg3[%c0_22, %c0_23, %c0_24] : memref<1x16x1xf32, #tpu.memory_space<vmem>>, vector<1x16x1xf32>
    %41 = vector.shape_cast %40 : vector<1x16x1xf32> to vector<16x1xf32>
    %42 = vector.broadcast %41 : vector<16x1xf32> to vector<16x4xf32>
    %43 = arith.addf %39, %42 : vector<16x4xf32>
    %44 = arith.addf %5, %23 : vector<16x4xf32>
    %cst_25 = arith.constant 0.000000e+00 : f32
    %45 = vector.broadcast %cst_25 : f32 to vector<16x4xf32>
    %46 = arith.cmpf ogt, %44, %45 : vector<16x4xf32>
    %cst_26 = arith.constant 2.000000e-01 : f32
    %47 = vector.broadcast %cst_26 : f32 to vector<16x4xf32>
    %48 = arith.mulf %47, %44 : vector<16x4xf32>
    %49 = arith.select %46, %44, %48 : vector<16x4xi1>, vector<16x4xf32>
    %c0_27 = arith.constant 0 : index
    %c0_28 = arith.constant 0 : index
    %c0_29 = arith.constant 0 : index
    %50 = vector.load %arg4[%c0_27, %c0_28, %c0_29] : memref<1x16x1xf32, #tpu.memory_space<vmem>>, vector<1x16x1xf32>
    %51 = vector.shape_cast %50 : vector<1x16x1xf32> to vector<16x1xf32>
    %52 = vector.broadcast %51 : vector<16x1xf32> to vector<16x4xf32>
    %53 = arith.addf %49, %52 : vector<16x4xf32>
    %54 = arith.maximumf %33, %43 : vector<16x4xf32>
    %55 = arith.maximumf %54, %53 : vector<16x4xf32>
    %56 = arith.subf %33, %55 : vector<16x4xf32>
    %57 = math.exp %56 : vector<16x4xf32>
    %58 = arith.subf %43, %55 : vector<16x4xf32>
    %59 = math.exp %58 : vector<16x4xf32>
    %60 = arith.subf %53, %55 : vector<16x4xf32>
    %61 = math.exp %60 : vector<16x4xf32>
    %62 = arith.addf %57, %59 : vector<16x4xf32>
    %63 = arith.addf %62, %61 : vector<16x4xf32>
    %64 = tpu.reciprocal %63 {approx = true} : vector<16x4xf32> -> vector<16x4xf32>
    %c0_30 = arith.constant 0 : index
    %c0_31 = arith.constant 0 : index
    %65 = vector.load %arg12[%c0_30, %c0_31] : memref<4x128xf32, #tpu.memory_space<vmem>>, vector<4x128xf32>
    %66 = arith.mulf %57, %64 : vector<16x4xf32>
    %cst_32 = arith.constant dense<0.000000e+00> : vector<16x128xf32>
    %67 = tpu.matmul %66, %65, %cst_32 {dimension_numbers = #tpu.dot_dimension_numbers<[1], [0], [0], [1], [0, 0, 1, 1], [], []>} : vector<16x4xf32>, vector<4x128xf32>, vector<16x128xf32> -> vector<16x128xf32>
    %68 = arith.mulf %59, %64 : vector<16x4xf32>
    %cst_33 = arith.constant dense<0.000000e+00> : vector<16x128xf32>
    %69 = tpu.matmul %68, %65, %cst_33 {dimension_numbers = #tpu.dot_dimension_numbers<[1], [0], [0], [1], [0, 0, 1, 1], [], []>} : vector<16x4xf32>, vector<4x128xf32>, vector<16x128xf32> -> vector<16x128xf32>
    %70 = arith.mulf %61, %64 : vector<16x4xf32>
    %cst_34 = arith.constant dense<0.000000e+00> : vector<16x128xf32>
    %71 = tpu.matmul %70, %65, %cst_34 {dimension_numbers = #tpu.dot_dimension_numbers<[1], [0], [0], [1], [0, 0, 1, 1], [], []>} : vector<16x4xf32>, vector<4x128xf32>, vector<16x128xf32> -> vector<16x128xf32>
    %72 = arith.mulf %67, %20 : vector<16x128xf32>
    %73 = arith.mulf %69, %3 : vector<16x128xf32>
    %74 = arith.addf %72, %73 : vector<16x128xf32>
    %75 = arith.mulf %71, %21 : vector<16x128xf32>
    %76 = arith.addf %74, %75 : vector<16x128xf32>
    %c0_35 = arith.constant 0 : index
    %c0_36 = arith.constant 0 : index
    %c0_37 = arith.constant 0 : index
    %77 = vector.load %arg5[%c0_35, %c0_36, %c0_37] : memref<1x4x8xf32, #tpu.memory_space<vmem>>, vector<1x4x8xf32>
    %78 = vector.shape_cast %77 : vector<1x4x8xf32> to vector<4x8xf32>
    %c0_38 = arith.constant 0 : index
    %c0_39 = arith.constant 0 : index
    %79 = vector.load %arg13[%c0_38, %c0_39] : memref<8x128xf32, #tpu.memory_space<vmem>>, vector<8x128xf32>
    %cst_40 = arith.constant dense<0.000000e+00> : vector<4x128xf32>
    %80 = tpu.matmul %78, %79, %cst_40 {dimension_numbers = #tpu.dot_dimension_numbers<[1], [0], [0], [1], [0, 0, 1, 1], [], []>} : vector<4x8xf32>, vector<8x128xf32>, vector<4x128xf32> -> vector<4x128xf32>
    %c0_41 = arith.constant 0 : index
    %c0_42 = arith.constant 0 : index
    %81 = vector.load %arg14[%c0_41, %c0_42] : memref<128x4xf32, #tpu.memory_space<vmem>>, vector<128x4xf32>
    %cst_43 = arith.constant dense<0.000000e+00> : vector<4x4xf32>
    %82 = tpu.matmul %80, %81, %cst_43 {dimension_numbers = #tpu.dot_dimension_numbers<[1], [0], [0], [1], [0, 0, 1, 1], [], []>} : vector<4x128xf32>, vector<128x4xf32>, vector<4x4xf32> -> vector<4x4xf32>
    %c0_44 = arith.constant 0 : index
    %c0_45 = arith.constant 0 : index
    %83 = vector.load %arg15[%c0_44, %c0_45] : memref<8x4xf32, #tpu.memory_space<vmem>>, vector<8x4xf32>
    %cst_46 = arith.constant dense<0.000000e+00> : vector<4x4xf32>
    %84 = tpu.matmul %78, %83, %cst_46 {dimension_numbers = #tpu.dot_dimension_numbers<[1], [0], [0], [1], [0, 0, 1, 1], [], []>} : vector<4x8xf32>, vector<8x4xf32>, vector<4x4xf32> -> vector<4x4xf32>
    %c0_47 = arith.constant 0 : index
    %c0_48 = arith.constant 0 : index
    %c0_49 = arith.constant 0 : index
    %85 = vector.load %arg7[%c0_47, %c0_48, %c0_49] : memref<1x4x10xf32, #tpu.memory_space<vmem>>, vector<1x4x10xf32>
    %86 = vector.shape_cast %85 : vector<1x4x10xf32> to vector<4x10xf32>
    %c0_50 = arith.constant 0 : index
    %c0_51 = arith.constant 0 : index
    %87 = vector.load %arg16[%c0_50, %c0_51] : memref<10x4xf32, #tpu.memory_space<vmem>>, vector<10x4xf32>
    %cst_52 = arith.constant dense<0.000000e+00> : vector<4x4xf32>
    %88 = tpu.matmul %86, %87, %cst_52 {dimension_numbers = #tpu.dot_dimension_numbers<[1], [0], [0], [1], [0, 0, 1, 1], [], []>} : vector<4x10xf32>, vector<10x4xf32>, vector<4x4xf32> -> vector<4x4xf32>
    %c0_53 = arith.constant 0 : index
    %c0_54 = arith.constant 0 : index
    %89 = vector.load %arg17[%c0_53, %c0_54] : memref<4x128xf32, #tpu.memory_space<vmem>>, vector<4x128xf32>
    %cst_55 = arith.constant 0xFF800000 : f32
    %90 = vector.broadcast %cst_55 : f32 to vector<4x4xf32>
    %cst_56 = arith.constant 0.000000e+00 : f32
    %91 = vector.broadcast %cst_56 : f32 to vector<4x4xf32>
    %cst_57 = arith.constant 0.000000e+00 : f32
    %92 = vector.broadcast %cst_57 : f32 to vector<4x128xf32>
    %93 = tpu.iota {dimensions = array<i32: 1>} : vector<1x4xi32>
    %c0_i32 = arith.constant 0 : i32
    %94 = vector.broadcast %c0_i32 : i32 to vector<1x4xi32>
    %95 = arith.cmpi eq, %93, %94 : vector<1x4xi32>
    %96 = arith.extui %95 : vector<1x4xi1> to vector<1x4xi32>
    %97 = arith.sitofp %96 : vector<1x4xi32> to vector<1x4xf32>
    %cst_58 = arith.constant dense<0.000000e+00> : vector<1x4xf32>
    %98 = tpu.matmul %97, %84, %cst_58 {dimension_numbers = #tpu.dot_dimension_numbers<[1], [0], [0], [1], [0, 0, 1, 1], [], []>} : vector<1x4xf32>, vector<4x4xf32>, vector<1x4xf32> -> vector<1x4xf32>
    %cst_59 = arith.constant dense<0.000000e+00> : vector<1x128xf32>
    %99 = tpu.matmul %97, %80, %cst_59 {dimension_numbers = #tpu.dot_dimension_numbers<[1], [0], [0], [1], [0, 0, 1, 1], [], []>} : vector<1x4xf32>, vector<4x128xf32>, vector<1x128xf32> -> vector<1x128xf32>
    %c0_60 = arith.constant 0 : index
    %c0_61 = arith.constant 0 : index
    %c0_62 = arith.constant 0 : index
    %c0_63 = arith.constant 0 : index
    %100 = vector.load %arg8[%c0_60, %c0_61, %c0_62, %c0_63] : memref<1x4x4x4xf32, #tpu.memory_space<vmem>>, vector<1x1x4x4xf32>
    %101 = vector.shape_cast %100 : vector<1x1x4x4xf32> to vector<4x4xf32>
    %cst_64 = arith.constant dense<0.000000e+00> : vector<4x4xf32>
    %102 = tpu.matmul %101, %88, %cst_64 {dimension_numbers = #tpu.dot_dimension_numbers<[1], [0], [0], [1], [0, 0, 1, 1], [], []>} : vector<4x4xf32>, vector<4x4xf32>, vector<4x4xf32> -> vector<4x4xf32>
    %103 = vector.broadcast %98 : vector<1x4xf32> to vector<4x4xf32>
    %104 = arith.addf %82, %103 : vector<4x4xf32>
    %105 = arith.addf %104, %102 : vector<4x4xf32>
    %cst_65 = arith.constant 0.000000e+00 : f32
    %106 = vector.broadcast %cst_65 : f32 to vector<4x4xf32>
    %107 = arith.cmpf ogt, %105, %106 : vector<4x4xf32>
    %cst_66 = arith.constant 2.000000e-01 : f32
    %108 = vector.broadcast %cst_66 : f32 to vector<4x4xf32>
    %109 = arith.mulf %108, %105 : vector<4x4xf32>
    %110 = arith.select %107, %105, %109 : vector<4x4xi1>, vector<4x4xf32>
    %c0_67 = arith.constant 0 : index
    %c0_68 = arith.constant 0 : index
    %c0_69 = arith.constant 0 : index
    %c0_70 = arith.constant 0 : index
    %111 = vector.load %arg6[%c0_67, %c0_68, %c0_69, %c0_70] : memref<1x4x4x1xf32, #tpu.memory_space<vmem>>, vector<1x1x4x1xf32>
    %112 = vector.shape_cast %111 : vector<1x1x4x1xf32> to vector<4x1xf32>
    %113 = vector.broadcast %112 : vector<4x1xf32> to vector<4x4xf32>
    %114 = arith.addf %110, %113 : vector<4x4xf32>
    %115 = arith.maximumf %90, %114 : vector<4x4xf32>
    %116 = arith.subf %90, %115 : vector<4x4xf32>
    %117 = math.exp %116 : vector<4x4xf32>
    %118 = arith.subf %114, %115 : vector<4x4xf32>
    %119 = math.exp %118 : vector<4x4xf32>
    %120 = arith.mulf %91, %117 : vector<4x4xf32>
    %121 = arith.addf %120, %119 : vector<4x4xf32>
    %cst_71 = arith.constant dense<0.000000e+00> : vector<4x128xf32>
    %122 = tpu.matmul %117, %89, %cst_71 {dimension_numbers = #tpu.dot_dimension_numbers<[1], [0], [0], [1], [0, 0, 1, 1], [], []>} : vector<4x4xf32>, vector<4x128xf32>, vector<4x128xf32> -> vector<4x128xf32>
    %123 = arith.mulf %92, %122 : vector<4x128xf32>
    %cst_72 = arith.constant dense<0.000000e+00> : vector<4x128xf32>
    %124 = tpu.matmul %119, %89, %cst_72 {dimension_numbers = #tpu.dot_dimension_numbers<[1], [0], [0], [1], [0, 0, 1, 1], [], []>} : vector<4x4xf32>, vector<4x128xf32>, vector<4x128xf32> -> vector<4x128xf32>
    %125 = vector.broadcast %99 : vector<1x128xf32> to vector<4x128xf32>
    %126 = arith.mulf %124, %125 : vector<4x128xf32>
    %127 = arith.addf %123, %126 : vector<4x128xf32>
    %128 = tpu.iota {dimensions = array<i32: 1>} : vector<1x4xi32>
    %c1_i32_73 = arith.constant 1 : i32
    %129 = vector.broadcast %c1_i32_73 : i32 to vector<1x4xi32>
    %130 = arith.cmpi eq, %128, %129 : vector<1x4xi32>
    %131 = arith.extui %130 : vector<1x4xi1> to vector<1x4xi32>
    %132 = arith.sitofp %131 : vector<1x4xi32> to vector<1x4xf32>
    %cst_74 = arith.constant dense<0.000000e+00> : vector<1x4xf32>
    %133 = tpu.matmul %132, %84, %cst_74 {dimension_numbers = #tpu.dot_dimension_numbers<[1], [0], [0], [1], [0, 0, 1, 1], [], []>} : vector<1x4xf32>, vector<4x4xf32>, vector<1x4xf32> -> vector<1x4xf32>
    %cst_75 = arith.constant dense<0.000000e+00> : vector<1x128xf32>
    %134 = tpu.matmul %132, %80, %cst_75 {dimension_numbers = #tpu.dot_dimension_numbers<[1], [0], [0], [1], [0, 0, 1, 1], [], []>} : vector<1x4xf32>, vector<4x128xf32>, vector<1x128xf32> -> vector<1x128xf32>
    %c0_76 = arith.constant 0 : index
    %c1 = arith.constant 1 : index
    %c0_77 = arith.constant 0 : index
    %c0_78 = arith.constant 0 : index
    %135 = vector.load %arg8[%c0_76, %c1, %c0_77, %c0_78] : memref<1x4x4x4xf32, #tpu.memory_space<vmem>>, vector<1x1x4x4xf32>
    %136 = vector.shape_cast %135 : vector<1x1x4x4xf32> to vector<4x4xf32>
    %cst_79 = arith.constant dense<0.000000e+00> : vector<4x4xf32>
    %137 = tpu.matmul %136, %88, %cst_79 {dimension_numbers = #tpu.dot_dimension_numbers<[1], [0], [0], [1], [0, 0, 1, 1], [], []>} : vector<4x4xf32>, vector<4x4xf32>, vector<4x4xf32> -> vector<4x4xf32>
    %138 = vector.broadcast %133 : vector<1x4xf32> to vector<4x4xf32>
    %139 = arith.addf %82, %138 : vector<4x4xf32>
    %140 = arith.addf %139, %137 : vector<4x4xf32>
    %cst_80 = arith.constant 0.000000e+00 : f32
    %141 = vector.broadcast %cst_80 : f32 to vector<4x4xf32>
    %142 = arith.cmpf ogt, %140, %141 : vector<4x4xf32>
    %cst_81 = arith.constant 2.000000e-01 : f32
    %143 = vector.broadcast %cst_81 : f32 to vector<4x4xf32>
    %144 = arith.mulf %143, %140 : vector<4x4xf32>
    %145 = arith.select %142, %140, %144 : vector<4x4xi1>, vector<4x4xf32>
    %c0_82 = arith.constant 0 : index
    %c1_83 = arith.constant 1 : index
    %c0_84 = arith.constant 0 : index
    %c0_85 = arith.constant 0 : index
    %146 = vector.load %arg6[%c0_82, %c1_83, %c0_84, %c0_85] : memref<1x4x4x1xf32, #tpu.memory_space<vmem>>, vector<1x1x4x1xf32>
    %147 = vector.shape_cast %146 : vector<1x1x4x1xf32> to vector<4x1xf32>
    %148 = vector.broadcast %147 : vector<4x1xf32> to vector<4x4xf32>
    %149 = arith.addf %145, %148 : vector<4x4xf32>
    %150 = arith.maximumf %115, %149 : vector<4x4xf32>
    %151 = arith.subf %115, %150 : vector<4x4xf32>
    %152 = math.exp %151 : vector<4x4xf32>
    %153 = arith.subf %149, %150 : vector<4x4xf32>
    %154 = math.exp %153 : vector<4x4xf32>
    %155 = arith.mulf %121, %152 : vector<4x4xf32>
    %156 = arith.addf %155, %154 : vector<4x4xf32>
    %cst_86 = arith.constant dense<0.000000e+00> : vector<4x128xf32>
    %157 = tpu.matmul %152, %89, %cst_86 {dimension_numbers = #tpu.dot_dimension_numbers<[1], [0], [0], [1], [0, 0, 1, 1], [], []>} : vector<4x4xf32>, vector<4x128xf32>, vector<4x128xf32> -> vector<4x128xf32>
    %158 = arith.mulf %127, %157 : vector<4x128xf32>
    %cst_87 = arith.constant dense<0.000000e+00> : vector<4x128xf32>
    %159 = tpu.matmul %154, %89, %cst_87 {dimension_numbers = #tpu.dot_dimension_numbers<[1], [0], [0], [1], [0, 0, 1, 1], [], []>} : vector<4x4xf32>, vector<4x128xf32>, vector<4x128xf32> -> vector<4x128xf32>
    %160 = vector.broadcast %134 : vector<1x128xf32> to vector<4x128xf32>
    %161 = arith.mulf %159, %160 : vector<4x128xf32>
    %162 = arith.addf %158, %161 : vector<4x128xf32>
    %163 = tpu.iota {dimensions = array<i32: 1>} : vector<1x4xi32>
    %c2_i32 = arith.constant 2 : i32
    %164 = vector.broadcast %c2_i32 : i32 to vector<1x4xi32>
    %165 = arith.cmpi eq, %163, %164 : vector<1x4xi32>
    %166 = arith.extui %165 : vector<1x4xi1> to vector<1x4xi32>
    %167 = arith.sitofp %166 : vector<1x4xi32> to vector<1x4xf32>
    %cst_88 = arith.constant dense<0.000000e+00> : vector<1x4xf32>
    %168 = tpu.matmul %167, %84, %cst_88 {dimension_numbers = #tpu.dot_dimension_numbers<[1], [0], [0], [1], [0, 0, 1, 1], [], []>} : vector<1x4xf32>, vector<4x4xf32>, vector<1x4xf32> -> vector<1x4xf32>
    %cst_89 = arith.constant dense<0.000000e+00> : vector<1x128xf32>
    %169 = tpu.matmul %167, %80, %cst_89 {dimension_numbers = #tpu.dot_dimension_numbers<[1], [0], [0], [1], [0, 0, 1, 1], [], []>} : vector<1x4xf32>, vector<4x128xf32>, vector<1x128xf32> -> vector<1x128xf32>
    %c0_90 = arith.constant 0 : index
    %c2 = arith.constant 2 : index
    %c0_91 = arith.constant 0 : index
    %c0_92 = arith.constant 0 : index
    %170 = vector.load %arg8[%c0_90, %c2, %c0_91, %c0_92] : memref<1x4x4x4xf32, #tpu.memory_space<vmem>>, vector<1x1x4x4xf32>
    %171 = vector.shape_cast %170 : vector<1x1x4x4xf32> to vector<4x4xf32>
    %cst_93 = arith.constant dense<0.000000e+00> : vector<4x4xf32>
    %172 = tpu.matmul %171, %88, %cst_93 {dimension_numbers = #tpu.dot_dimension_numbers<[1], [0], [0], [1], [0, 0, 1, 1], [], []>} : vector<4x4xf32>, vector<4x4xf32>, vector<4x4xf32> -> vector<4x4xf32>
    %173 = vector.broadcast %168 : vector<1x4xf32> to vector<4x4xf32>
    %174 = arith.addf %82, %173 : vector<4x4xf32>
    %175 = arith.addf %174, %172 : vector<4x4xf32>
    %cst_94 = arith.constant 0.000000e+00 : f32
    %176 = vector.broadcast %cst_94 : f32 to vector<4x4xf32>
    %177 = arith.cmpf ogt, %175, %176 : vector<4x4xf32>
    %cst_95 = arith.constant 2.000000e-01 : f32
    %178 = vector.broadcast %cst_95 : f32 to vector<4x4xf32>
    %179 = arith.mulf %178, %175 : vector<4x4xf32>
    %180 = arith.select %177, %175, %179 : vector<4x4xi1>, vector<4x4xf32>
    %c0_96 = arith.constant 0 : index
    %c2_97 = arith.constant 2 : index
    %c0_98 = arith.constant 0 : index
    %c0_99 = arith.constant 0 : index
    %181 = vector.load %arg6[%c0_96, %c2_97, %c0_98, %c0_99] : memref<1x4x4x1xf32, #tpu.memory_space<vmem>>, vector<1x1x4x1xf32>
    %182 = vector.shape_cast %181 : vector<1x1x4x1xf32> to vector<4x1xf32>
    %183 = vector.broadcast %182 : vector<4x1xf32> to vector<4x4xf32>
    %184 = arith.addf %180, %183 : vector<4x4xf32>
    %185 = arith.maximumf %150, %184 : vector<4x4xf32>
    %186 = arith.subf %150, %185 : vector<4x4xf32>
    %187 = math.exp %186 : vector<4x4xf32>
    %188 = arith.subf %184, %185 : vector<4x4xf32>
    %189 = math.exp %188 : vector<4x4xf32>
    %190 = arith.mulf %156, %187 : vector<4x4xf32>
    %191 = arith.addf %190, %189 : vector<4x4xf32>
    %cst_100 = arith.constant dense<0.000000e+00> : vector<4x128xf32>
    %192 = tpu.matmul %187, %89, %cst_100 {dimension_numbers = #tpu.dot_dimension_numbers<[1], [0], [0], [1], [0, 0, 1, 1], [], []>} : vector<4x4xf32>, vector<4x128xf32>, vector<4x128xf32> -> vector<4x128xf32>
    %193 = arith.mulf %162, %192 : vector<4x128xf32>
    %cst_101 = arith.constant dense<0.000000e+00> : vector<4x128xf32>
    %194 = tpu.matmul %189, %89, %cst_101 {dimension_numbers = #tpu.dot_dimension_numbers<[1], [0], [0], [1], [0, 0, 1, 1], [], []>} : vector<4x4xf32>, vector<4x128xf32>, vector<4x128xf32> -> vector<4x128xf32>
    %195 = vector.broadcast %169 : vector<1x128xf32> to vector<4x128xf32>
    %196 = arith.mulf %194, %195 : vector<4x128xf32>
    %197 = arith.addf %193, %196 : vector<4x128xf32>
    %198 = tpu.iota {dimensions = array<i32: 1>} : vector<1x4xi32>
    %c3_i32 = arith.constant 3 : i32
    %199 = vector.broadcast %c3_i32 : i32 to vector<1x4xi32>
    %200 = arith.cmpi eq, %198, %199 : vector<1x4xi32>
    %201 = arith.extui %200 : vector<1x4xi1> to vector<1x4xi32>
    %202 = arith.sitofp %201 : vector<1x4xi32> to vector<1x4xf32>
    %cst_102 = arith.constant dense<0.000000e+00> : vector<1x4xf32>
    %203 = tpu.matmul %202, %84, %cst_102 {dimension_numbers = #tpu.dot_dimension_numbers<[1], [0], [0], [1], [0, 0, 1, 1], [], []>} : vector<1x4xf32>, vector<4x4xf32>, vector<1x4xf32> -> vector<1x4xf32>
    %cst_103 = arith.constant dense<0.000000e+00> : vector<1x128xf32>
    %204 = tpu.matmul %202, %80, %cst_103 {dimension_numbers = #tpu.dot_dimension_numbers<[1], [0], [0], [1], [0, 0, 1, 1], [], []>} : vector<1x4xf32>, vector<4x128xf32>, vector<1x128xf32> -> vector<1x128xf32>
    %c0_104 = arith.constant 0 : index
    %c3 = arith.constant 3 : index
    %c0_105 = arith.constant 0 : index
    %c0_106 = arith.constant 0 : index
    %205 = vector.load %arg8[%c0_104, %c3, %c0_105, %c0_106] : memref<1x4x4x4xf32, #tpu.memory_space<vmem>>, vector<1x1x4x4xf32>
    %206 = vector.shape_cast %205 : vector<1x1x4x4xf32> to vector<4x4xf32>
    %cst_107 = arith.constant dense<0.000000e+00> : vector<4x4xf32>
    %207 = tpu.matmul %206, %88, %cst_107 {dimension_numbers = #tpu.dot_dimension_numbers<[1], [0], [0], [1], [0, 0, 1, 1], [], []>} : vector<4x4xf32>, vector<4x4xf32>, vector<4x4xf32> -> vector<4x4xf32>
    %208 = vector.broadcast %203 : vector<1x4xf32> to vector<4x4xf32>
    %209 = arith.addf %82, %208 : vector<4x4xf32>
    %210 = arith.addf %209, %207 : vector<4x4xf32>
    %cst_108 = arith.constant 0.000000e+00 : f32
    %211 = vector.broadcast %cst_108 : f32 to vector<4x4xf32>
    %212 = arith.cmpf ogt, %210, %211 : vector<4x4xf32>
    %cst_109 = arith.constant 2.000000e-01 : f32
    %213 = vector.broadcast %cst_109 : f32 to vector<4x4xf32>
    %214 = arith.mulf %213, %210 : vector<4x4xf32>
    %215 = arith.select %212, %210, %214 : vector<4x4xi1>, vector<4x4xf32>
    %c0_110 = arith.constant 0 : index
    %c3_111 = arith.constant 3 : index
    %c0_112 = arith.constant 0 : index
    %c0_113 = arith.constant 0 : index
    %216 = vector.load %arg6[%c0_110, %c3_111, %c0_112, %c0_113] : memref<1x4x4x1xf32, #tpu.memory_space<vmem>>, vector<1x1x4x1xf32>
    %217 = vector.shape_cast %216 : vector<1x1x4x1xf32> to vector<4x1xf32>
    %218 = vector.broadcast %217 : vector<4x1xf32> to vector<4x4xf32>
    %219 = arith.addf %215, %218 : vector<4x4xf32>
    %220 = arith.maximumf %185, %219 : vector<4x4xf32>
    %221 = arith.subf %185, %220 : vector<4x4xf32>
    %222 = math.exp %221 : vector<4x4xf32>
    %223 = arith.subf %219, %220 : vector<4x4xf32>
    %224 = math.exp %223 : vector<4x4xf32>
    %225 = arith.mulf %191, %222 : vector<4x4xf32>
    %226 = arith.addf %225, %224 : vector<4x4xf32>
    %cst_114 = arith.constant dense<0.000000e+00> : vector<4x128xf32>
    %227 = tpu.matmul %222, %89, %cst_114 {dimension_numbers = #tpu.dot_dimension_numbers<[1], [0], [0], [1], [0, 0, 1, 1], [], []>} : vector<4x4xf32>, vector<4x128xf32>, vector<4x128xf32> -> vector<4x128xf32>
    %228 = arith.mulf %197, %227 : vector<4x128xf32>
    %cst_115 = arith.constant dense<0.000000e+00> : vector<4x128xf32>
    %229 = tpu.matmul %224, %89, %cst_115 {dimension_numbers = #tpu.dot_dimension_numbers<[1], [0], [0], [1], [0, 0, 1, 1], [], []>} : vector<4x4xf32>, vector<4x128xf32>, vector<4x128xf32> -> vector<4x128xf32>
    %230 = vector.broadcast %204 : vector<1x128xf32> to vector<4x128xf32>
    %231 = arith.mulf %229, %230 : vector<4x128xf32>
    %232 = arith.addf %228, %231 : vector<4x128xf32>
    %233 = tpu.reciprocal %226 {approx = true} : vector<4x4xf32> -> vector<4x4xf32>
    %cst_116 = arith.constant dense<0.000000e+00> : vector<4x128xf32>
    %234 = tpu.matmul %233, %89, %cst_116 {dimension_numbers = #tpu.dot_dimension_numbers<[1], [0], [0], [1], [0, 0, 1, 1], [], []>} : vector<4x4xf32>, vector<4x128xf32>, vector<4x128xf32> -> vector<4x128xf32>
    %235 = arith.mulf %232, %234 : vector<4x128xf32>
    %cst_117 = arith.constant 0.000000e+00 : f32
    %236 = vector.broadcast %cst_117 : f32 to vector<16x128xf32>
    %237 = arith.cmpf ogt, %76, %236 : vector<16x128xf32>
    %cst_118 = arith.constant 0.000000e+00 : f32
    %238 = vector.broadcast %cst_118 : f32 to vector<16x128xf32>
    %239 = arith.minimumf %76, %238 : vector<16x128xf32>
    %240 = math.exp %239 : vector<16x128xf32>
    %cst_119 = arith.constant 1.000000e+00 : f32
    %241 = vector.broadcast %cst_119 : f32 to vector<16x128xf32>
    %242 = arith.subf %240, %241 : vector<16x128xf32>
    %243 = arith.select %237, %76, %242 : vector<16x128xi1>, vector<16x128xf32>
    %c0_120 = arith.constant 0 : index
    %c0_121 = arith.constant 0 : index
    %c0_122 = arith.constant 0 : index
    %244 = vector.load %arg18[%c0_120, %c0_121, %c0_122] : memref<1x16x128xf32, #tpu.memory_space<vmem>>, vector<1x16x128xf32>
    %245 = vector.shape_cast %244 : vector<1x16x128xf32> to vector<16x128xf32>
    %246 = vector.shape_cast %243 : vector<16x128xf32> to vector<1x16x128xf32>
    tpu.vector_store %arg18[%c0_120, %c0_121, %c0_122], %246 {strides = array<i32>} : memref<1x16x128xf32, #tpu.memory_space<vmem>>, vector<1x16x128xf32>,
    %cst_123 = arith.constant 0.000000e+00 : f32
    %247 = vector.broadcast %cst_123 : f32 to vector<4x128xf32>
    %248 = arith.cmpf ogt, %235, %247 : vector<4x128xf32>
    %cst_124 = arith.constant 0.000000e+00 : f32
    %249 = vector.broadcast %cst_124 : f32 to vector<4x128xf32>
    %250 = arith.minimumf %235, %249 : vector<4x128xf32>
    %251 = math.exp %250 : vector<4x128xf32>
    %cst_125 = arith.constant 1.000000e+00 : f32
    %252 = vector.broadcast %cst_125 : f32 to vector<4x128xf32>
    %253 = arith.subf %251, %252 : vector<4x128xf32>
    %254 = arith.select %248, %235, %253 : vector<4x128xi1>, vector<4x128xf32>
    %c0_126 = arith.constant 0 : index
    %c0_127 = arith.constant 0 : index
    %c0_128 = arith.constant 0 : index
    %255 = vector.load %arg19[%c0_126, %c0_127, %c0_128] : memref<1x4x128xf32, #tpu.memory_space<vmem>>, vector<1x4x128xf32>
    %256 = vector.shape_cast %255 : vector<1x4x128xf32> to vector<4x128xf32>
    %257 = vector.shape_cast %254 : vector<4x128xf32> to vector<1x4x128xf32>
    tpu.vector_store %arg19[%c0_126, %c0_127, %c0_128], %257 {strides = array<i32>} : memref<1x4x128xf32, #tpu.memory_space<vmem>>, vector<1x4x128xf32>,
    return
  }
  func.func @transform_0(%arg0: i32) -> (i32, i32, i32) {
    %c0_i32 = arith.constant 0 : i32
    %c0_i32_0 = arith.constant 0 : i32
    %c0_i32_1 = arith.constant 0 : i32
    return %arg0, %c0_i32, %c0_i32_0 : i32, i32, i32
  }
  func.func @transform_1(%arg0: i32) -> (i32, i32, i32) {
    %c0_i32 = arith.constant 0 : i32
    %c0_i32_0 = arith.constant 0 : i32
    %c0_i32_1 = arith.constant 0 : i32
    return %arg0, %c0_i32, %c0_i32_0 : i32, i32, i32
  }
  func.func @transform_2(%arg0: i32) -> (i32, i32, i32) {
    %c0_i32 = arith.constant 0 : i32
    %c0_i32_0 = arith.constant 0 : i32
    %c0_i32_1 = arith.constant 0 : i32
    return %arg0, %c0_i32, %c0_i32_0 : i32, i32, i32
  }
  func.func @transform_3(%arg0: i32) -> (i32, i32, i32) {
    %c0_i32 = arith.constant 0 : i32
    %c0_i32_0 = arith.constant 0 : i32
    %c0_i32_1 = arith.constant 0 : i32
    return %arg0, %c0_i32, %c0_i32_0 : i32, i32, i32
  }
  func.func @transform_4(%arg0: i32) -> (i32, i32, i32) {
    %c0_i32 = arith.constant 0 : i32
    %c0_i32_0 = arith.constant 0 : i32
    %c0_i32_1 = arith.constant 0 : i32
    return %arg0, %c0_i32, %c0_i32_0 : i32, i32, i32
  }
  func.func @transform_5(%arg0: i32) -> (i32, i32, i32, i32) {
    %c0_i32 = arith.constant 0 : i32
    %c0_i32_0 = arith.constant 0 : i32
    %c0_i32_1 = arith.constant 0 : i32
    %c0_i32_2 = arith.constant 0 : i32
    return %arg0, %c0_i32, %c0_i32_0, %c0_i32_1 : i32, i32, i32, i32
  }
  func.func @transform_6(%arg0: i32) -> (i32, i32, i32) {
    %c0_i32 = arith.constant 0 : i32
    %c0_i32_0 = arith.constant 0 : i32
    %c0_i32_1 = arith.constant 0 : i32
    return %arg0, %c0_i32, %c0_i32_0 : i32, i32, i32
  }
  func.func @transform_7(%arg0: i32) -> (i32, i32, i32, i32) {
    %c0_i32 = arith.constant 0 : i32
    %c0_i32_0 = arith.constant 0 : i32
    %c0_i32_1 = arith.constant 0 : i32
    %c0_i32_2 = arith.constant 0 : i32
    return %arg0, %c0_i32, %c0_i32_0, %c0_i32_1 : i32, i32, i32, i32
  }
  func.func @transform_8(%arg0: i32) -> (i32, i32) {
    %c0_i32 = arith.constant 0 : i32
    %c0_i32_0 = arith.constant 0 : i32
    %c0_i32_1 = arith.constant 0 : i32
    return %c0_i32, %c0_i32_0 : i32, i32
  }
  func.func @transform_9(%arg0: i32) -> (i32, i32) {
    %c0_i32 = arith.constant 0 : i32
    %c0_i32_0 = arith.constant 0 : i32
    %c0_i32_1 = arith.constant 0 : i32
    return %c0_i32, %c0_i32_0 : i32, i32
  }
  func.func @transform_10(%arg0: i32) -> (i32, i32) {
    %c0_i32 = arith.constant 0 : i32
    %c0_i32_0 = arith.constant 0 : i32
    %c0_i32_1 = arith.constant 0 : i32
    return %c0_i32, %c0_i32_0 : i32, i32
  }
  func.func @transform_11(%arg0: i32) -> (i32, i32) {
    %c0_i32 = arith.constant 0 : i32
    %c0_i32_0 = arith.constant 0 : i32
    %c0_i32_1 = arith.constant 0 : i32
    return %c0_i32, %c0_i32_0 : i32, i32
  }
  func.func @transform_12(%arg0: i32) -> (i32, i32) {
    %c0_i32 = arith.constant 0 : i32
    %c0_i32_0 = arith.constant 0 : i32
    %c0_i32_1 = arith.constant 0 : i32
    return %c0_i32, %c0_i32_0 : i32, i32
  }
  func.func @transform_13(%arg0: i32) -> (i32, i32) {
    %c0_i32 = arith.constant 0 : i32
    %c0_i32_0 = arith.constant 0 : i32
    %c0_i32_1 = arith.constant 0 : i32
    return %c0_i32, %c0_i32_0 : i32, i32
  }
  func.func @transform_14(%arg0: i32) -> (i32, i32) {
    %c0_i32 = arith.constant 0 : i32
    %c0_i32_0 = arith.constant 0 : i32
    %c0_i32_1 = arith.constant 0 : i32
    return %c0_i32, %c0_i32_0 : i32, i32
  }
  func.func @transform_15(%arg0: i32) -> (i32, i32) {
    %c0_i32 = arith.constant 0 : i32
    %c0_i32_0 = arith.constant 0 : i32
    %c0_i32_1 = arith.constant 0 : i32
    return %c0_i32, %c0_i32_0 : i32, i32
  }
  func.func @transform_16(%arg0: i32) -> (i32, i32) {
    %c0_i32 = arith.constant 0 : i32
    %c0_i32_0 = arith.constant 0 : i32
    %c0_i32_1 = arith.constant 0 : i32
    return %c0_i32, %c0_i32_0 : i32, i32
  }
  func.func @transform_17(%arg0: i32) -> (i32, i32, i32) {
    %c0_i32 = arith.constant 0 : i32
    %c0_i32_0 = arith.constant 0 : i32
    %c0_i32_1 = arith.constant 0 : i32
    return %arg0, %c0_i32, %c0_i32_0 : i32, i32, i32
  }
  func.func @transform_18(%arg0: i32) -> (i32, i32, i32) {
    %c0_i32 = arith.constant 0 : i32
    %c0_i32_0 = arith.constant 0 : i32
    %c0_i32_1 = arith.constant 0 : i32
    return %arg0, %c0_i32, %c0_i32_0 : i32, i32, i32
  }
}

module attributes {stable_mosaic.version = 11 : i64} {
  func.func @_dan_layer_kernel(%arg0: i32, %arg1: memref<1x16x128xf32, #tpu.memory_space<vmem>>, %arg2: memref<1x16x1xf32, #tpu.memory_space<vmem>>, %arg3: memref<1x16x1xf32, #tpu.memory_space<vmem>>, %arg4: memref<1x16x1xf32, #tpu.memory_space<vmem>>, %arg5: memref<1x4x128xf32, #tpu.memory_space<vmem>>, %arg6: memref<1x4x4x1xf32, #tpu.memory_space<vmem>>, %arg7: memref<1x4x128xf32, #tpu.memory_space<vmem>>, %arg8: memref<1x4x4x4xf32, #tpu.memory_space<vmem>>, %arg9: memref<128x32xf32, #tpu.memory_space<vmem>>, %arg10: memref<32x4xf32, #tpu.memory_space<vmem>>, %arg11: memref<32x4xf32, #tpu.memory_space<vmem>>, %arg12: memref<4x32xf32, #tpu.memory_space<vmem>>, %arg13: memref<128x32xf32, #tpu.memory_space<vmem>>, %arg14: memref<32x4xf32, #tpu.memory_space<vmem>>, %arg15: memref<128x4xf32, #tpu.memory_space<vmem>>, %arg16: memref<128x4xf32, #tpu.memory_space<vmem>>, %arg17: memref<4x32xf32, #tpu.memory_space<vmem>>, %arg18: memref<32x8xf32, #tpu.memory_space<vmem>>, %arg19: memref<32x8xf32, #tpu.memory_space<vmem>>, %arg20: memref<1x16x8xf32, #tpu.memory_space<vmem>>, %arg21: memref<1x4x8xf32, #tpu.memory_space<vmem>>, %arg22: memref<1x1x8xf32, #tpu.memory_space<vmem>>, %arg23: memref<1x1x8xf32, #tpu.memory_space<vmem>>) attributes {dimension_semantics = [#tpu.dimension_semantics<parallel>], iteration_bounds = array<i64: 2>, scalar_prefetch = 0 : i64, scratch_operands = 0 : i64, tpu.core_type = #tpu.core_type<tc>, window_params = [{transform_indices = @transform_0, window_bounds = array<i64: 1, 16, 128>}, {transform_indices = @transform_1, window_bounds = array<i64: 1, 16, 1>}, {transform_indices = @transform_2, window_bounds = array<i64: 1, 16, 1>}, {transform_indices = @transform_3, window_bounds = array<i64: 1, 16, 1>}, {transform_indices = @transform_4, window_bounds = array<i64: 1, 4, 128>}, {transform_indices = @transform_5, window_bounds = array<i64: 1, 4, 4, 1>}, {transform_indices = @transform_6, window_bounds = array<i64: 1, 4, 128>}, {transform_indices = @transform_7, window_bounds = array<i64: 1, 4, 4, 4>}, {pipeline_mode = #tpu.pipeline_mode<synchronous>, transform_indices = @transform_8, window_bounds = array<i64: 128, 32>}, {pipeline_mode = #tpu.pipeline_mode<synchronous>, transform_indices = @transform_9, window_bounds = array<i64: 32, 4>}, {pipeline_mode = #tpu.pipeline_mode<synchronous>, transform_indices = @transform_10, window_bounds = array<i64: 32, 4>}, {pipeline_mode = #tpu.pipeline_mode<synchronous>, transform_indices = @transform_11, window_bounds = array<i64: 4, 32>}, {pipeline_mode = #tpu.pipeline_mode<synchronous>, transform_indices = @transform_12, window_bounds = array<i64: 128, 32>}, {pipeline_mode = #tpu.pipeline_mode<synchronous>, transform_indices = @transform_13, window_bounds = array<i64: 32, 4>}, {pipeline_mode = #tpu.pipeline_mode<synchronous>, transform_indices = @transform_14, window_bounds = array<i64: 128, 4>}, {pipeline_mode = #tpu.pipeline_mode<synchronous>, transform_indices = @transform_15, window_bounds = array<i64: 128, 4>}, {pipeline_mode = #tpu.pipeline_mode<synchronous>, transform_indices = @transform_16, window_bounds = array<i64: 4, 32>}, {pipeline_mode = #tpu.pipeline_mode<synchronous>, transform_indices = @transform_17, window_bounds = array<i64: 32, 8>}, {pipeline_mode = #tpu.pipeline_mode<synchronous>, transform_indices = @transform_18, window_bounds = array<i64: 32, 8>}, {transform_indices = @transform_19, window_bounds = array<i64: 1, 16, 8>}, {transform_indices = @transform_20, window_bounds = array<i64: 1, 4, 8>}, {transform_indices = @transform_21, window_bounds = array<i64: 1, 1, 8>}, {transform_indices = @transform_22, window_bounds = array<i64: 1, 1, 8>}]} {
    %c0 = arith.constant 0 : index
    %c0_0 = arith.constant 0 : index
    %c0_1 = arith.constant 0 : index
    %0 = vector.load %arg1[%c0, %c0_0, %c0_1] : memref<1x16x128xf32, #tpu.memory_space<vmem>>, vector<1x16x128xf32>
    %1 = vector.shape_cast %0 : vector<1x16x128xf32> to vector<16x128xf32>
    %c0_2 = arith.constant 0 : index
    %c0_3 = arith.constant 0 : index
    %2 = vector.load %arg9[%c0_2, %c0_3] : memref<128x32xf32, #tpu.memory_space<vmem>>, vector<128x32xf32>
    %cst = arith.constant dense<0.000000e+00> : vector<16x32xf32>
    %3 = tpu.matmul %1, %2, %cst {dimension_numbers = #tpu.dot_dimension_numbers<[1], [0], [0], [1], [0, 0, 1, 1], [], []>} : vector<16x128xf32>, vector<128x32xf32>, vector<16x32xf32> -> vector<16x32xf32>
    %c0_4 = arith.constant 0 : index
    %c0_5 = arith.constant 0 : index
    %4 = vector.load %arg10[%c0_4, %c0_5] : memref<32x4xf32, #tpu.memory_space<vmem>>, vector<32x4xf32>
    %cst_6 = arith.constant dense<0.000000e+00> : vector<16x4xf32>
    %5 = tpu.matmul %3, %4, %cst_6 {dimension_numbers = #tpu.dot_dimension_numbers<[1], [0], [0], [1], [0, 0, 1, 1], [], []>} : vector<16x32xf32>, vector<32x4xf32>, vector<16x4xf32> -> vector<16x4xf32>
    %c0_7 = arith.constant 0 : index
    %c0_8 = arith.constant 0 : index
    %6 = vector.load %arg11[%c0_7, %c0_8] : memref<32x4xf32, #tpu.memory_space<vmem>>, vector<32x4xf32>
    %cst_9 = arith.constant dense<0.000000e+00> : vector<16x4xf32>
    %7 = tpu.matmul %3, %6, %cst_9 {dimension_numbers = #tpu.dot_dimension_numbers<[1], [0], [0], [1], [0, 0, 1, 1], [], []>} : vector<16x32xf32>, vector<32x4xf32>, vector<16x4xf32> -> vector<16x4xf32>
    %8 = tpu.iota {dimensions = array<i32: 0>} : vector<16x16xi32>
    %9 = tpu.iota {dimensions = array<i32: 1>} : vector<16x16xi32>
    %c1_i32 = arith.constant 1 : i32
    %10 = vector.broadcast %c1_i32 : i32 to vector<16x16xi32>
    %11 = arith.addi %9, %10 : vector<16x16xi32>
    %12 = arith.cmpi eq, %8, %11 : vector<16x16xi32>
    %13 = arith.extui %12 : vector<16x16xi1> to vector<16x16xi32>
    %14 = arith.sitofp %13 : vector<16x16xi32> to vector<16x16xf32>
    %c1_i32_10 = arith.constant 1 : i32
    %15 = vector.broadcast %c1_i32_10 : i32 to vector<16x16xi32>
    %16 = arith.addi %8, %15 : vector<16x16xi32>
    %17 = arith.cmpi eq, %9, %16 : vector<16x16xi32>
    %18 = arith.extui %17 : vector<16x16xi1> to vector<16x16xi32>
    %19 = arith.sitofp %18 : vector<16x16xi32> to vector<16x16xf32>
    %cst_11 = arith.constant dense<0.000000e+00> : vector<16x32xf32>
    %20 = tpu.matmul %14, %3, %cst_11 {dimension_numbers = #tpu.dot_dimension_numbers<[1], [0], [0], [1], [0, 0, 1, 1], [], []>} : vector<16x16xf32>, vector<16x32xf32>, vector<16x32xf32> -> vector<16x32xf32>
    %cst_12 = arith.constant dense<0.000000e+00> : vector<16x32xf32>
    %21 = tpu.matmul %19, %3, %cst_12 {dimension_numbers = #tpu.dot_dimension_numbers<[1], [0], [0], [1], [0, 0, 1, 1], [], []>} : vector<16x16xf32>, vector<16x32xf32>, vector<16x32xf32> -> vector<16x32xf32>
    %cst_13 = arith.constant dense<0.000000e+00> : vector<16x4xf32>
    %22 = tpu.matmul %14, %7, %cst_13 {dimension_numbers = #tpu.dot_dimension_numbers<[1], [0], [0], [1], [0, 0, 1, 1], [], []>} : vector<16x16xf32>, vector<16x4xf32>, vector<16x4xf32> -> vector<16x4xf32>
    %cst_14 = arith.constant dense<0.000000e+00> : vector<16x4xf32>
    %23 = tpu.matmul %19, %7, %cst_14 {dimension_numbers = #tpu.dot_dimension_numbers<[1], [0], [0], [1], [0, 0, 1, 1], [], []>} : vector<16x16xf32>, vector<16x4xf32>, vector<16x4xf32> -> vector<16x4xf32>
    %24 = arith.addf %5, %22 : vector<16x4xf32>
    %cst_15 = arith.constant 0.000000e+00 : f32
    %25 = vector.broadcast %cst_15 : f32 to vector<16x4xf32>
    %26 = arith.cmpf ogt, %24, %25 : vector<16x4xf32>
    %cst_16 = arith.constant 2.000000e-01 : f32
    %27 = vector.broadcast %cst_16 : f32 to vector<16x4xf32>
    %28 = arith.mulf %27, %24 : vector<16x4xf32>
    %29 = arith.select %26, %24, %28 : vector<16x4xi1>, vector<16x4xf32>
    %c0_17 = arith.constant 0 : index
    %c0_18 = arith.constant 0 : index
    %c0_19 = arith.constant 0 : index
    %30 = vector.load %arg2[%c0_17, %c0_18, %c0_19] : memref<1x16x1xf32, #tpu.memory_space<vmem>>, vector<1x16x1xf32>
    %31 = vector.shape_cast %30 : vector<1x16x1xf32> to vector<16x1xf32>
    %32 = vector.broadcast %31 : vector<16x1xf32> to vector<16x4xf32>
    %33 = arith.addf %29, %32 : vector<16x4xf32>
    %34 = arith.addf %5, %7 : vector<16x4xf32>
    %cst_20 = arith.constant 0.000000e+00 : f32
    %35 = vector.broadcast %cst_20 : f32 to vector<16x4xf32>
    %36 = arith.cmpf ogt, %34, %35 : vector<16x4xf32>
    %cst_21 = arith.constant 2.000000e-01 : f32
    %37 = vector.broadcast %cst_21 : f32 to vector<16x4xf32>
    %38 = arith.mulf %37, %34 : vector<16x4xf32>
    %39 = arith.select %36, %34, %38 : vector<16x4xi1>, vector<16x4xf32>
    %c0_22 = arith.constant 0 : index
    %c0_23 = arith.constant 0 : index
    %c0_24 = arith.constant 0 : index
    %40 = vector.load %arg3[%c0_22, %c0_23, %c0_24] : memref<1x16x1xf32, #tpu.memory_space<vmem>>, vector<1x16x1xf32>
    %41 = vector.shape_cast %40 : vector<1x16x1xf32> to vector<16x1xf32>
    %42 = vector.broadcast %41 : vector<16x1xf32> to vector<16x4xf32>
    %43 = arith.addf %39, %42 : vector<16x4xf32>
    %44 = arith.addf %5, %23 : vector<16x4xf32>
    %cst_25 = arith.constant 0.000000e+00 : f32
    %45 = vector.broadcast %cst_25 : f32 to vector<16x4xf32>
    %46 = arith.cmpf ogt, %44, %45 : vector<16x4xf32>
    %cst_26 = arith.constant 2.000000e-01 : f32
    %47 = vector.broadcast %cst_26 : f32 to vector<16x4xf32>
    %48 = arith.mulf %47, %44 : vector<16x4xf32>
    %49 = arith.select %46, %44, %48 : vector<16x4xi1>, vector<16x4xf32>
    %c0_27 = arith.constant 0 : index
    %c0_28 = arith.constant 0 : index
    %c0_29 = arith.constant 0 : index
    %50 = vector.load %arg4[%c0_27, %c0_28, %c0_29] : memref<1x16x1xf32, #tpu.memory_space<vmem>>, vector<1x16x1xf32>
    %51 = vector.shape_cast %50 : vector<1x16x1xf32> to vector<16x1xf32>
    %52 = vector.broadcast %51 : vector<16x1xf32> to vector<16x4xf32>
    %53 = arith.addf %49, %52 : vector<16x4xf32>
    %54 = arith.maximumf %33, %43 : vector<16x4xf32>
    %55 = arith.maximumf %54, %53 : vector<16x4xf32>
    %56 = arith.subf %33, %55 : vector<16x4xf32>
    %57 = math.exp %56 : vector<16x4xf32>
    %58 = arith.subf %43, %55 : vector<16x4xf32>
    %59 = math.exp %58 : vector<16x4xf32>
    %60 = arith.subf %53, %55 : vector<16x4xf32>
    %61 = math.exp %60 : vector<16x4xf32>
    %62 = arith.addf %57, %59 : vector<16x4xf32>
    %63 = arith.addf %62, %61 : vector<16x4xf32>
    %64 = tpu.reciprocal %63 {approx = true} : vector<16x4xf32> -> vector<16x4xf32>
    %c0_30 = arith.constant 0 : index
    %c0_31 = arith.constant 0 : index
    %65 = vector.load %arg12[%c0_30, %c0_31] : memref<4x32xf32, #tpu.memory_space<vmem>>, vector<4x32xf32>
    %66 = arith.mulf %57, %64 : vector<16x4xf32>
    %cst_32 = arith.constant dense<0.000000e+00> : vector<16x32xf32>
    %67 = tpu.matmul %66, %65, %cst_32 {dimension_numbers = #tpu.dot_dimension_numbers<[1], [0], [0], [1], [0, 0, 1, 1], [], []>} : vector<16x4xf32>, vector<4x32xf32>, vector<16x32xf32> -> vector<16x32xf32>
    %68 = arith.mulf %59, %64 : vector<16x4xf32>
    %cst_33 = arith.constant dense<0.000000e+00> : vector<16x32xf32>
    %69 = tpu.matmul %68, %65, %cst_33 {dimension_numbers = #tpu.dot_dimension_numbers<[1], [0], [0], [1], [0, 0, 1, 1], [], []>} : vector<16x4xf32>, vector<4x32xf32>, vector<16x32xf32> -> vector<16x32xf32>
    %70 = arith.mulf %61, %64 : vector<16x4xf32>
    %cst_34 = arith.constant dense<0.000000e+00> : vector<16x32xf32>
    %71 = tpu.matmul %70, %65, %cst_34 {dimension_numbers = #tpu.dot_dimension_numbers<[1], [0], [0], [1], [0, 0, 1, 1], [], []>} : vector<16x4xf32>, vector<4x32xf32>, vector<16x32xf32> -> vector<16x32xf32>
    %72 = arith.mulf %67, %20 : vector<16x32xf32>
    %73 = arith.mulf %69, %3 : vector<16x32xf32>
    %74 = arith.addf %72, %73 : vector<16x32xf32>
    %75 = arith.mulf %71, %21 : vector<16x32xf32>
    %76 = arith.addf %74, %75 : vector<16x32xf32>
    %c0_35 = arith.constant 0 : index
    %c0_36 = arith.constant 0 : index
    %c0_37 = arith.constant 0 : index
    %77 = vector.load %arg5[%c0_35, %c0_36, %c0_37] : memref<1x4x128xf32, #tpu.memory_space<vmem>>, vector<1x4x128xf32>
    %78 = vector.shape_cast %77 : vector<1x4x128xf32> to vector<4x128xf32>
    %c0_38 = arith.constant 0 : index
    %c0_39 = arith.constant 0 : index
    %79 = vector.load %arg13[%c0_38, %c0_39] : memref<128x32xf32, #tpu.memory_space<vmem>>, vector<128x32xf32>
    %cst_40 = arith.constant dense<0.000000e+00> : vector<4x32xf32>
    %80 = tpu.matmul %78, %79, %cst_40 {dimension_numbers = #tpu.dot_dimension_numbers<[1], [0], [0], [1], [0, 0, 1, 1], [], []>} : vector<4x128xf32>, vector<128x32xf32>, vector<4x32xf32> -> vector<4x32xf32>
    %c0_41 = arith.constant 0 : index
    %c0_42 = arith.constant 0 : index
    %81 = vector.load %arg14[%c0_41, %c0_42] : memref<32x4xf32, #tpu.memory_space<vmem>>, vector<32x4xf32>
    %cst_43 = arith.constant dense<0.000000e+00> : vector<4x4xf32>
    %82 = tpu.matmul %80, %81, %cst_43 {dimension_numbers = #tpu.dot_dimension_numbers<[1], [0], [0], [1], [0, 0, 1, 1], [], []>} : vector<4x32xf32>, vector<32x4xf32>, vector<4x4xf32> -> vector<4x4xf32>
    %c0_44 = arith.constant 0 : index
    %c0_45 = arith.constant 0 : index
    %83 = vector.load %arg15[%c0_44, %c0_45] : memref<128x4xf32, #tpu.memory_space<vmem>>, vector<128x4xf32>
    %cst_46 = arith.constant dense<0.000000e+00> : vector<4x4xf32>
    %84 = tpu.matmul %78, %83, %cst_46 {dimension_numbers = #tpu.dot_dimension_numbers<[1], [0], [0], [1], [0, 0, 1, 1], [], []>} : vector<4x128xf32>, vector<128x4xf32>, vector<4x4xf32> -> vector<4x4xf32>
    %c0_47 = arith.constant 0 : index
    %c0_48 = arith.constant 0 : index
    %c0_49 = arith.constant 0 : index
    %85 = vector.load %arg7[%c0_47, %c0_48, %c0_49] : memref<1x4x128xf32, #tpu.memory_space<vmem>>, vector<1x4x128xf32>
    %86 = vector.shape_cast %85 : vector<1x4x128xf32> to vector<4x128xf32>
    %c0_50 = arith.constant 0 : index
    %c0_51 = arith.constant 0 : index
    %87 = vector.load %arg16[%c0_50, %c0_51] : memref<128x4xf32, #tpu.memory_space<vmem>>, vector<128x4xf32>
    %cst_52 = arith.constant dense<0.000000e+00> : vector<4x4xf32>
    %88 = tpu.matmul %86, %87, %cst_52 {dimension_numbers = #tpu.dot_dimension_numbers<[1], [0], [0], [1], [0, 0, 1, 1], [], []>} : vector<4x128xf32>, vector<128x4xf32>, vector<4x4xf32> -> vector<4x4xf32>
    %c0_53 = arith.constant 0 : index
    %c0_54 = arith.constant 0 : index
    %89 = vector.load %arg17[%c0_53, %c0_54] : memref<4x32xf32, #tpu.memory_space<vmem>>, vector<4x32xf32>
    %cst_55 = arith.constant 0xFF800000 : f32
    %90 = vector.broadcast %cst_55 : f32 to vector<4x4xf32>
    %cst_56 = arith.constant 0.000000e+00 : f32
    %91 = vector.broadcast %cst_56 : f32 to vector<4x4xf32>
    %cst_57 = arith.constant 0.000000e+00 : f32
    %92 = vector.broadcast %cst_57 : f32 to vector<4x32xf32>
    %93 = tpu.iota {dimensions = array<i32: 1>} : vector<1x4xi32>
    %c0_i32 = arith.constant 0 : i32
    %94 = vector.broadcast %c0_i32 : i32 to vector<1x4xi32>
    %95 = arith.cmpi eq, %93, %94 : vector<1x4xi32>
    %96 = arith.extui %95 : vector<1x4xi1> to vector<1x4xi32>
    %97 = arith.sitofp %96 : vector<1x4xi32> to vector<1x4xf32>
    %cst_58 = arith.constant dense<0.000000e+00> : vector<1x4xf32>
    %98 = tpu.matmul %97, %84, %cst_58 {dimension_numbers = #tpu.dot_dimension_numbers<[1], [0], [0], [1], [0, 0, 1, 1], [], []>} : vector<1x4xf32>, vector<4x4xf32>, vector<1x4xf32> -> vector<1x4xf32>
    %cst_59 = arith.constant dense<0.000000e+00> : vector<1x32xf32>
    %99 = tpu.matmul %97, %80, %cst_59 {dimension_numbers = #tpu.dot_dimension_numbers<[1], [0], [0], [1], [0, 0, 1, 1], [], []>} : vector<1x4xf32>, vector<4x32xf32>, vector<1x32xf32> -> vector<1x32xf32>
    %c0_60 = arith.constant 0 : index
    %c0_61 = arith.constant 0 : index
    %c0_62 = arith.constant 0 : index
    %c0_63 = arith.constant 0 : index
    %100 = vector.load %arg8[%c0_60, %c0_61, %c0_62, %c0_63] : memref<1x4x4x4xf32, #tpu.memory_space<vmem>>, vector<1x1x4x4xf32>
    %101 = vector.shape_cast %100 : vector<1x1x4x4xf32> to vector<4x4xf32>
    %cst_64 = arith.constant dense<0.000000e+00> : vector<4x4xf32>
    %102 = tpu.matmul %101, %88, %cst_64 {dimension_numbers = #tpu.dot_dimension_numbers<[1], [0], [0], [1], [0, 0, 1, 1], [], []>} : vector<4x4xf32>, vector<4x4xf32>, vector<4x4xf32> -> vector<4x4xf32>
    %103 = vector.broadcast %98 : vector<1x4xf32> to vector<4x4xf32>
    %104 = arith.addf %82, %103 : vector<4x4xf32>
    %105 = arith.addf %104, %102 : vector<4x4xf32>
    %cst_65 = arith.constant 0.000000e+00 : f32
    %106 = vector.broadcast %cst_65 : f32 to vector<4x4xf32>
    %107 = arith.cmpf ogt, %105, %106 : vector<4x4xf32>
    %cst_66 = arith.constant 2.000000e-01 : f32
    %108 = vector.broadcast %cst_66 : f32 to vector<4x4xf32>
    %109 = arith.mulf %108, %105 : vector<4x4xf32>
    %110 = arith.select %107, %105, %109 : vector<4x4xi1>, vector<4x4xf32>
    %c0_67 = arith.constant 0 : index
    %c0_68 = arith.constant 0 : index
    %c0_69 = arith.constant 0 : index
    %c0_70 = arith.constant 0 : index
    %111 = vector.load %arg6[%c0_67, %c0_68, %c0_69, %c0_70] : memref<1x4x4x1xf32, #tpu.memory_space<vmem>>, vector<1x1x4x1xf32>
    %112 = vector.shape_cast %111 : vector<1x1x4x1xf32> to vector<4x1xf32>
    %113 = vector.broadcast %112 : vector<4x1xf32> to vector<4x4xf32>
    %114 = arith.addf %110, %113 : vector<4x4xf32>
    %115 = arith.maximumf %90, %114 : vector<4x4xf32>
    %116 = arith.subf %90, %115 : vector<4x4xf32>
    %117 = math.exp %116 : vector<4x4xf32>
    %118 = arith.subf %114, %115 : vector<4x4xf32>
    %119 = math.exp %118 : vector<4x4xf32>
    %120 = arith.mulf %91, %117 : vector<4x4xf32>
    %121 = arith.addf %120, %119 : vector<4x4xf32>
    %cst_71 = arith.constant dense<0.000000e+00> : vector<4x32xf32>
    %122 = tpu.matmul %117, %89, %cst_71 {dimension_numbers = #tpu.dot_dimension_numbers<[1], [0], [0], [1], [0, 0, 1, 1], [], []>} : vector<4x4xf32>, vector<4x32xf32>, vector<4x32xf32> -> vector<4x32xf32>
    %123 = arith.mulf %92, %122 : vector<4x32xf32>
    %cst_72 = arith.constant dense<0.000000e+00> : vector<4x32xf32>
    %124 = tpu.matmul %119, %89, %cst_72 {dimension_numbers = #tpu.dot_dimension_numbers<[1], [0], [0], [1], [0, 0, 1, 1], [], []>} : vector<4x4xf32>, vector<4x32xf32>, vector<4x32xf32> -> vector<4x32xf32>
    %125 = vector.broadcast %99 : vector<1x32xf32> to vector<4x32xf32>
    %126 = arith.mulf %124, %125 : vector<4x32xf32>
    %127 = arith.addf %123, %126 : vector<4x32xf32>
    %128 = tpu.iota {dimensions = array<i32: 1>} : vector<1x4xi32>
    %c1_i32_73 = arith.constant 1 : i32
    %129 = vector.broadcast %c1_i32_73 : i32 to vector<1x4xi32>
    %130 = arith.cmpi eq, %128, %129 : vector<1x4xi32>
    %131 = arith.extui %130 : vector<1x4xi1> to vector<1x4xi32>
    %132 = arith.sitofp %131 : vector<1x4xi32> to vector<1x4xf32>
    %cst_74 = arith.constant dense<0.000000e+00> : vector<1x4xf32>
    %133 = tpu.matmul %132, %84, %cst_74 {dimension_numbers = #tpu.dot_dimension_numbers<[1], [0], [0], [1], [0, 0, 1, 1], [], []>} : vector<1x4xf32>, vector<4x4xf32>, vector<1x4xf32> -> vector<1x4xf32>
    %cst_75 = arith.constant dense<0.000000e+00> : vector<1x32xf32>
    %134 = tpu.matmul %132, %80, %cst_75 {dimension_numbers = #tpu.dot_dimension_numbers<[1], [0], [0], [1], [0, 0, 1, 1], [], []>} : vector<1x4xf32>, vector<4x32xf32>, vector<1x32xf32> -> vector<1x32xf32>
    %c0_76 = arith.constant 0 : index
    %c1 = arith.constant 1 : index
    %c0_77 = arith.constant 0 : index
    %c0_78 = arith.constant 0 : index
    %135 = vector.load %arg8[%c0_76, %c1, %c0_77, %c0_78] : memref<1x4x4x4xf32, #tpu.memory_space<vmem>>, vector<1x1x4x4xf32>
    %136 = vector.shape_cast %135 : vector<1x1x4x4xf32> to vector<4x4xf32>
    %cst_79 = arith.constant dense<0.000000e+00> : vector<4x4xf32>
    %137 = tpu.matmul %136, %88, %cst_79 {dimension_numbers = #tpu.dot_dimension_numbers<[1], [0], [0], [1], [0, 0, 1, 1], [], []>} : vector<4x4xf32>, vector<4x4xf32>, vector<4x4xf32> -> vector<4x4xf32>
    %138 = vector.broadcast %133 : vector<1x4xf32> to vector<4x4xf32>
    %139 = arith.addf %82, %138 : vector<4x4xf32>
    %140 = arith.addf %139, %137 : vector<4x4xf32>
    %cst_80 = arith.constant 0.000000e+00 : f32
    %141 = vector.broadcast %cst_80 : f32 to vector<4x4xf32>
    %142 = arith.cmpf ogt, %140, %141 : vector<4x4xf32>
    %cst_81 = arith.constant 2.000000e-01 : f32
    %143 = vector.broadcast %cst_81 : f32 to vector<4x4xf32>
    %144 = arith.mulf %143, %140 : vector<4x4xf32>
    %145 = arith.select %142, %140, %144 : vector<4x4xi1>, vector<4x4xf32>
    %c0_82 = arith.constant 0 : index
    %c1_83 = arith.constant 1 : index
    %c0_84 = arith.constant 0 : index
    %c0_85 = arith.constant 0 : index
    %146 = vector.load %arg6[%c0_82, %c1_83, %c0_84, %c0_85] : memref<1x4x4x1xf32, #tpu.memory_space<vmem>>, vector<1x1x4x1xf32>
    %147 = vector.shape_cast %146 : vector<1x1x4x1xf32> to vector<4x1xf32>
    %148 = vector.broadcast %147 : vector<4x1xf32> to vector<4x4xf32>
    %149 = arith.addf %145, %148 : vector<4x4xf32>
    %150 = arith.maximumf %115, %149 : vector<4x4xf32>
    %151 = arith.subf %115, %150 : vector<4x4xf32>
    %152 = math.exp %151 : vector<4x4xf32>
    %153 = arith.subf %149, %150 : vector<4x4xf32>
    %154 = math.exp %153 : vector<4x4xf32>
    %155 = arith.mulf %121, %152 : vector<4x4xf32>
    %156 = arith.addf %155, %154 : vector<4x4xf32>
    %cst_86 = arith.constant dense<0.000000e+00> : vector<4x32xf32>
    %157 = tpu.matmul %152, %89, %cst_86 {dimension_numbers = #tpu.dot_dimension_numbers<[1], [0], [0], [1], [0, 0, 1, 1], [], []>} : vector<4x4xf32>, vector<4x32xf32>, vector<4x32xf32> -> vector<4x32xf32>
    %158 = arith.mulf %127, %157 : vector<4x32xf32>
    %cst_87 = arith.constant dense<0.000000e+00> : vector<4x32xf32>
    %159 = tpu.matmul %154, %89, %cst_87 {dimension_numbers = #tpu.dot_dimension_numbers<[1], [0], [0], [1], [0, 0, 1, 1], [], []>} : vector<4x4xf32>, vector<4x32xf32>, vector<4x32xf32> -> vector<4x32xf32>
    %160 = vector.broadcast %134 : vector<1x32xf32> to vector<4x32xf32>
    %161 = arith.mulf %159, %160 : vector<4x32xf32>
    %162 = arith.addf %158, %161 : vector<4x32xf32>
    %163 = tpu.iota {dimensions = array<i32: 1>} : vector<1x4xi32>
    %c2_i32 = arith.constant 2 : i32
    %164 = vector.broadcast %c2_i32 : i32 to vector<1x4xi32>
    %165 = arith.cmpi eq, %163, %164 : vector<1x4xi32>
    %166 = arith.extui %165 : vector<1x4xi1> to vector<1x4xi32>
    %167 = arith.sitofp %166 : vector<1x4xi32> to vector<1x4xf32>
    %cst_88 = arith.constant dense<0.000000e+00> : vector<1x4xf32>
    %168 = tpu.matmul %167, %84, %cst_88 {dimension_numbers = #tpu.dot_dimension_numbers<[1], [0], [0], [1], [0, 0, 1, 1], [], []>} : vector<1x4xf32>, vector<4x4xf32>, vector<1x4xf32> -> vector<1x4xf32>
    %cst_89 = arith.constant dense<0.000000e+00> : vector<1x32xf32>
    %169 = tpu.matmul %167, %80, %cst_89 {dimension_numbers = #tpu.dot_dimension_numbers<[1], [0], [0], [1], [0, 0, 1, 1], [], []>} : vector<1x4xf32>, vector<4x32xf32>, vector<1x32xf32> -> vector<1x32xf32>
    %c0_90 = arith.constant 0 : index
    %c2 = arith.constant 2 : index
    %c0_91 = arith.constant 0 : index
    %c0_92 = arith.constant 0 : index
    %170 = vector.load %arg8[%c0_90, %c2, %c0_91, %c0_92] : memref<1x4x4x4xf32, #tpu.memory_space<vmem>>, vector<1x1x4x4xf32>
    %171 = vector.shape_cast %170 : vector<1x1x4x4xf32> to vector<4x4xf32>
    %cst_93 = arith.constant dense<0.000000e+00> : vector<4x4xf32>
    %172 = tpu.matmul %171, %88, %cst_93 {dimension_numbers = #tpu.dot_dimension_numbers<[1], [0], [0], [1], [0, 0, 1, 1], [], []>} : vector<4x4xf32>, vector<4x4xf32>, vector<4x4xf32> -> vector<4x4xf32>
    %173 = vector.broadcast %168 : vector<1x4xf32> to vector<4x4xf32>
    %174 = arith.addf %82, %173 : vector<4x4xf32>
    %175 = arith.addf %174, %172 : vector<4x4xf32>
    %cst_94 = arith.constant 0.000000e+00 : f32
    %176 = vector.broadcast %cst_94 : f32 to vector<4x4xf32>
    %177 = arith.cmpf ogt, %175, %176 : vector<4x4xf32>
    %cst_95 = arith.constant 2.000000e-01 : f32
    %178 = vector.broadcast %cst_95 : f32 to vector<4x4xf32>
    %179 = arith.mulf %178, %175 : vector<4x4xf32>
    %180 = arith.select %177, %175, %179 : vector<4x4xi1>, vector<4x4xf32>
    %c0_96 = arith.constant 0 : index
    %c2_97 = arith.constant 2 : index
    %c0_98 = arith.constant 0 : index
    %c0_99 = arith.constant 0 : index
    %181 = vector.load %arg6[%c0_96, %c2_97, %c0_98, %c0_99] : memref<1x4x4x1xf32, #tpu.memory_space<vmem>>, vector<1x1x4x1xf32>
    %182 = vector.shape_cast %181 : vector<1x1x4x1xf32> to vector<4x1xf32>
    %183 = vector.broadcast %182 : vector<4x1xf32> to vector<4x4xf32>
    %184 = arith.addf %180, %183 : vector<4x4xf32>
    %185 = arith.maximumf %150, %184 : vector<4x4xf32>
    %186 = arith.subf %150, %185 : vector<4x4xf32>
    %187 = math.exp %186 : vector<4x4xf32>
    %188 = arith.subf %184, %185 : vector<4x4xf32>
    %189 = math.exp %188 : vector<4x4xf32>
    %190 = arith.mulf %156, %187 : vector<4x4xf32>
    %191 = arith.addf %190, %189 : vector<4x4xf32>
    %cst_100 = arith.constant dense<0.000000e+00> : vector<4x32xf32>
    %192 = tpu.matmul %187, %89, %cst_100 {dimension_numbers = #tpu.dot_dimension_numbers<[1], [0], [0], [1], [0, 0, 1, 1], [], []>} : vector<4x4xf32>, vector<4x32xf32>, vector<4x32xf32> -> vector<4x32xf32>
    %193 = arith.mulf %162, %192 : vector<4x32xf32>
    %cst_101 = arith.constant dense<0.000000e+00> : vector<4x32xf32>
    %194 = tpu.matmul %189, %89, %cst_101 {dimension_numbers = #tpu.dot_dimension_numbers<[1], [0], [0], [1], [0, 0, 1, 1], [], []>} : vector<4x4xf32>, vector<4x32xf32>, vector<4x32xf32> -> vector<4x32xf32>
    %195 = vector.broadcast %169 : vector<1x32xf32> to vector<4x32xf32>
    %196 = arith.mulf %194, %195 : vector<4x32xf32>
    %197 = arith.addf %193, %196 : vector<4x32xf32>
    %198 = tpu.iota {dimensions = array<i32: 1>} : vector<1x4xi32>
    %c3_i32 = arith.constant 3 : i32
    %199 = vector.broadcast %c3_i32 : i32 to vector<1x4xi32>
    %200 = arith.cmpi eq, %198, %199 : vector<1x4xi32>
    %201 = arith.extui %200 : vector<1x4xi1> to vector<1x4xi32>
    %202 = arith.sitofp %201 : vector<1x4xi32> to vector<1x4xf32>
    %cst_102 = arith.constant dense<0.000000e+00> : vector<1x4xf32>
    %203 = tpu.matmul %202, %84, %cst_102 {dimension_numbers = #tpu.dot_dimension_numbers<[1], [0], [0], [1], [0, 0, 1, 1], [], []>} : vector<1x4xf32>, vector<4x4xf32>, vector<1x4xf32> -> vector<1x4xf32>
    %cst_103 = arith.constant dense<0.000000e+00> : vector<1x32xf32>
    %204 = tpu.matmul %202, %80, %cst_103 {dimension_numbers = #tpu.dot_dimension_numbers<[1], [0], [0], [1], [0, 0, 1, 1], [], []>} : vector<1x4xf32>, vector<4x32xf32>, vector<1x32xf32> -> vector<1x32xf32>
    %c0_104 = arith.constant 0 : index
    %c3 = arith.constant 3 : index
    %c0_105 = arith.constant 0 : index
    %c0_106 = arith.constant 0 : index
    %205 = vector.load %arg8[%c0_104, %c3, %c0_105, %c0_106] : memref<1x4x4x4xf32, #tpu.memory_space<vmem>>, vector<1x1x4x4xf32>
    %206 = vector.shape_cast %205 : vector<1x1x4x4xf32> to vector<4x4xf32>
    %cst_107 = arith.constant dense<0.000000e+00> : vector<4x4xf32>
    %207 = tpu.matmul %206, %88, %cst_107 {dimension_numbers = #tpu.dot_dimension_numbers<[1], [0], [0], [1], [0, 0, 1, 1], [], []>} : vector<4x4xf32>, vector<4x4xf32>, vector<4x4xf32> -> vector<4x4xf32>
    %208 = vector.broadcast %203 : vector<1x4xf32> to vector<4x4xf32>
    %209 = arith.addf %82, %208 : vector<4x4xf32>
    %210 = arith.addf %209, %207 : vector<4x4xf32>
    %cst_108 = arith.constant 0.000000e+00 : f32
    %211 = vector.broadcast %cst_108 : f32 to vector<4x4xf32>
    %212 = arith.cmpf ogt, %210, %211 : vector<4x4xf32>
    %cst_109 = arith.constant 2.000000e-01 : f32
    %213 = vector.broadcast %cst_109 : f32 to vector<4x4xf32>
    %214 = arith.mulf %213, %210 : vector<4x4xf32>
    %215 = arith.select %212, %210, %214 : vector<4x4xi1>, vector<4x4xf32>
    %c0_110 = arith.constant 0 : index
    %c3_111 = arith.constant 3 : index
    %c0_112 = arith.constant 0 : index
    %c0_113 = arith.constant 0 : index
    %216 = vector.load %arg6[%c0_110, %c3_111, %c0_112, %c0_113] : memref<1x4x4x1xf32, #tpu.memory_space<vmem>>, vector<1x1x4x1xf32>
    %217 = vector.shape_cast %216 : vector<1x1x4x1xf32> to vector<4x1xf32>
    %218 = vector.broadcast %217 : vector<4x1xf32> to vector<4x4xf32>
    %219 = arith.addf %215, %218 : vector<4x4xf32>
    %220 = arith.maximumf %185, %219 : vector<4x4xf32>
    %221 = arith.subf %185, %220 : vector<4x4xf32>
    %222 = math.exp %221 : vector<4x4xf32>
    %223 = arith.subf %219, %220 : vector<4x4xf32>
    %224 = math.exp %223 : vector<4x4xf32>
    %225 = arith.mulf %191, %222 : vector<4x4xf32>
    %226 = arith.addf %225, %224 : vector<4x4xf32>
    %cst_114 = arith.constant dense<0.000000e+00> : vector<4x32xf32>
    %227 = tpu.matmul %222, %89, %cst_114 {dimension_numbers = #tpu.dot_dimension_numbers<[1], [0], [0], [1], [0, 0, 1, 1], [], []>} : vector<4x4xf32>, vector<4x32xf32>, vector<4x32xf32> -> vector<4x32xf32>
    %228 = arith.mulf %197, %227 : vector<4x32xf32>
    %cst_115 = arith.constant dense<0.000000e+00> : vector<4x32xf32>
    %229 = tpu.matmul %224, %89, %cst_115 {dimension_numbers = #tpu.dot_dimension_numbers<[1], [0], [0], [1], [0, 0, 1, 1], [], []>} : vector<4x4xf32>, vector<4x32xf32>, vector<4x32xf32> -> vector<4x32xf32>
    %230 = vector.broadcast %204 : vector<1x32xf32> to vector<4x32xf32>
    %231 = arith.mulf %229, %230 : vector<4x32xf32>
    %232 = arith.addf %228, %231 : vector<4x32xf32>
    %233 = tpu.reciprocal %226 {approx = true} : vector<4x4xf32> -> vector<4x4xf32>
    %cst_116 = arith.constant dense<0.000000e+00> : vector<4x32xf32>
    %234 = tpu.matmul %233, %89, %cst_116 {dimension_numbers = #tpu.dot_dimension_numbers<[1], [0], [0], [1], [0, 0, 1, 1], [], []>} : vector<4x4xf32>, vector<4x32xf32>, vector<4x32xf32> -> vector<4x32xf32>
    %235 = arith.mulf %232, %234 : vector<4x32xf32>
    %c0_117 = arith.constant 0 : index
    %c0_118 = arith.constant 0 : index
    %236 = vector.load %arg18[%c0_117, %c0_118] : memref<32x8xf32, #tpu.memory_space<vmem>>, vector<32x8xf32>
    %cst_119 = arith.constant dense<0.000000e+00> : vector<16x8xf32>
    %237 = tpu.matmul %76, %236, %cst_119 {dimension_numbers = #tpu.dot_dimension_numbers<[1], [0], [0], [1], [0, 0, 1, 1], [], []>} : vector<16x32xf32>, vector<32x8xf32>, vector<16x8xf32> -> vector<16x8xf32>
    %cst_120 = arith.constant 0.000000e+00 : f32
    %238 = vector.broadcast %cst_120 : f32 to vector<16x8xf32>
    %239 = arith.cmpf ogt, %237, %238 : vector<16x8xf32>
    %cst_121 = arith.constant 0.000000e+00 : f32
    %240 = vector.broadcast %cst_121 : f32 to vector<16x8xf32>
    %241 = arith.minimumf %237, %240 : vector<16x8xf32>
    %242 = math.exp %241 : vector<16x8xf32>
    %cst_122 = arith.constant 1.000000e+00 : f32
    %243 = vector.broadcast %cst_122 : f32 to vector<16x8xf32>
    %244 = arith.subf %242, %243 : vector<16x8xf32>
    %245 = arith.select %239, %237, %244 : vector<16x8xi1>, vector<16x8xf32>
    %c0_123 = arith.constant 0 : index
    %c0_124 = arith.constant 0 : index
    %246 = vector.load %arg19[%c0_123, %c0_124] : memref<32x8xf32, #tpu.memory_space<vmem>>, vector<32x8xf32>
    %cst_125 = arith.constant dense<0.000000e+00> : vector<4x8xf32>
    %247 = tpu.matmul %235, %246, %cst_125 {dimension_numbers = #tpu.dot_dimension_numbers<[1], [0], [0], [1], [0, 0, 1, 1], [], []>} : vector<4x32xf32>, vector<32x8xf32>, vector<4x8xf32> -> vector<4x8xf32>
    %cst_126 = arith.constant 0.000000e+00 : f32
    %248 = vector.broadcast %cst_126 : f32 to vector<4x8xf32>
    %249 = arith.cmpf ogt, %247, %248 : vector<4x8xf32>
    %cst_127 = arith.constant 0.000000e+00 : f32
    %250 = vector.broadcast %cst_127 : f32 to vector<4x8xf32>
    %251 = arith.minimumf %247, %250 : vector<4x8xf32>
    %252 = math.exp %251 : vector<4x8xf32>
    %cst_128 = arith.constant 1.000000e+00 : f32
    %253 = vector.broadcast %cst_128 : f32 to vector<4x8xf32>
    %254 = arith.subf %252, %253 : vector<4x8xf32>
    %255 = arith.select %249, %247, %254 : vector<4x8xi1>, vector<4x8xf32>
    %c0_129 = arith.constant 0 : index
    %c0_130 = arith.constant 0 : index
    %c0_131 = arith.constant 0 : index
    %256 = vector.load %arg20[%c0_129, %c0_130, %c0_131] : memref<1x16x8xf32, #tpu.memory_space<vmem>>, vector<1x16x8xf32>
    %257 = vector.shape_cast %256 : vector<1x16x8xf32> to vector<16x8xf32>
    %258 = vector.shape_cast %245 : vector<16x8xf32> to vector<1x16x8xf32>
    tpu.vector_store %arg20[%c0_129, %c0_130, %c0_131], %258 {strides = array<i32>} : memref<1x16x8xf32, #tpu.memory_space<vmem>>, vector<1x16x8xf32>,
    %c0_132 = arith.constant 0 : index
    %c0_133 = arith.constant 0 : index
    %c0_134 = arith.constant 0 : index
    %259 = vector.load %arg21[%c0_132, %c0_133, %c0_134] : memref<1x4x8xf32, #tpu.memory_space<vmem>>, vector<1x4x8xf32>
    %260 = vector.shape_cast %259 : vector<1x4x8xf32> to vector<4x8xf32>
    %261 = vector.shape_cast %255 : vector<4x8xf32> to vector<1x4x8xf32>
    tpu.vector_store %arg21[%c0_132, %c0_133, %c0_134], %261 {strides = array<i32>} : memref<1x4x8xf32, #tpu.memory_space<vmem>>, vector<1x4x8xf32>,
    %262 = math.absf %245 : vector<16x8xf32>
    %cst_135 = arith.constant dense<0.000000e+00> : vector<16xf32>
    %263 = vector.multi_reduction <add>, %262, %cst_135 [1] : vector<16x8xf32> to vector<16xf32>
    %264 = vector.shape_cast %263 : vector<16xf32> to vector<16x1xf32>
    %cst_136 = arith.constant 0.000000e+00 : f32
    %265 = vector.broadcast %cst_136 : f32 to vector<16x1xf32>
    %266 = arith.cmpf ogt, %264, %265 : vector<16x1xf32>
    %267 = arith.extui %266 : vector<16x1xi1> to vector<16x1xi32>
    %268 = arith.sitofp %267 : vector<16x1xi32> to vector<16x1xf32>
    %269 = math.absf %255 : vector<4x8xf32>
    %cst_137 = arith.constant dense<0.000000e+00> : vector<4xf32>
    %270 = vector.multi_reduction <add>, %269, %cst_137 [1] : vector<4x8xf32> to vector<4xf32>
    %271 = vector.shape_cast %270 : vector<4xf32> to vector<4x1xf32>
    %cst_138 = arith.constant 0.000000e+00 : f32
    %272 = vector.broadcast %cst_138 : f32 to vector<4x1xf32>
    %273 = arith.cmpf ogt, %271, %272 : vector<4x1xf32>
    %274 = arith.extui %273 : vector<4x1xi1> to vector<4x1xi32>
    %275 = arith.sitofp %274 : vector<4x1xi32> to vector<4x1xf32>
    %276 = vector.broadcast %268 : vector<16x1xf32> to vector<16x8xf32>
    %277 = arith.mulf %245, %276 : vector<16x8xf32>
    %cst_139 = arith.constant dense<0.000000e+00> : vector<8xf32>
    %278 = vector.multi_reduction <add>, %277, %cst_139 [0] : vector<16x8xf32> to vector<8xf32>
    %279 = vector.shape_cast %278 : vector<8xf32> to vector<1x8xf32>
    %cst_140 = arith.constant dense<0.000000e+00> : vector<1xf32>
    %280 = vector.multi_reduction <add>, %268, %cst_140 [0] : vector<16x1xf32> to vector<1xf32>
    %281 = vector.shape_cast %280 : vector<1xf32> to vector<1x1xf32>
    %cst_141 = arith.constant 1.000000e+00 : f32
    %282 = vector.broadcast %cst_141 : f32 to vector<1x1xf32>
    %283 = arith.maximumf %281, %282 : vector<1x1xf32>
    %284 = vector.broadcast %283 : vector<1x1xf32> to vector<1x8xf32>
    %285 = arith.divf %279, %284 : vector<1x8xf32>
    %c0_142 = arith.constant 0 : index
    %c0_143 = arith.constant 0 : index
    %c0_144 = arith.constant 0 : index
    %286 = vector.load %arg22[%c0_142, %c0_143, %c0_144] : memref<1x1x8xf32, #tpu.memory_space<vmem>>, vector<1x1x8xf32>
    %287 = vector.shape_cast %286 : vector<1x1x8xf32> to vector<1x8xf32>
    %288 = vector.shape_cast %285 : vector<1x8xf32> to vector<1x1x8xf32>
    tpu.vector_store %arg22[%c0_142, %c0_143, %c0_144], %288 {strides = array<i32>} : memref<1x1x8xf32, #tpu.memory_space<vmem>>, vector<1x1x8xf32>,
    %289 = vector.broadcast %275 : vector<4x1xf32> to vector<4x8xf32>
    %290 = arith.mulf %255, %289 : vector<4x8xf32>
    %cst_145 = arith.constant dense<0.000000e+00> : vector<8xf32>
    %291 = vector.multi_reduction <add>, %290, %cst_145 [0] : vector<4x8xf32> to vector<8xf32>
    %292 = vector.shape_cast %291 : vector<8xf32> to vector<1x8xf32>
    %cst_146 = arith.constant dense<0.000000e+00> : vector<1xf32>
    %293 = vector.multi_reduction <add>, %275, %cst_146 [0] : vector<4x1xf32> to vector<1xf32>
    %294 = vector.shape_cast %293 : vector<1xf32> to vector<1x1xf32>
    %cst_147 = arith.constant 1.000000e+00 : f32
    %295 = vector.broadcast %cst_147 : f32 to vector<1x1xf32>
    %296 = arith.maximumf %294, %295 : vector<1x1xf32>
    %297 = vector.broadcast %296 : vector<1x1xf32> to vector<1x8xf32>
    %298 = arith.divf %292, %297 : vector<1x8xf32>
    %c0_148 = arith.constant 0 : index
    %c0_149 = arith.constant 0 : index
    %c0_150 = arith.constant 0 : index
    %299 = vector.load %arg23[%c0_148, %c0_149, %c0_150] : memref<1x1x8xf32, #tpu.memory_space<vmem>>, vector<1x1x8xf32>
    %300 = vector.shape_cast %299 : vector<1x1x8xf32> to vector<1x8xf32>
    %301 = vector.shape_cast %298 : vector<1x8xf32> to vector<1x1x8xf32>
    tpu.vector_store %arg23[%c0_148, %c0_149, %c0_150], %301 {strides = array<i32>} : memref<1x1x8xf32, #tpu.memory_space<vmem>>, vector<1x1x8xf32>,
    return
  }
  func.func @transform_0(%arg0: i32) -> (i32, i32, i32) {
    %c0_i32 = arith.constant 0 : i32
    %c0_i32_0 = arith.constant 0 : i32
    %c0_i32_1 = arith.constant 0 : i32
    return %arg0, %c0_i32, %c0_i32_0 : i32, i32, i32
  }
  func.func @transform_1(%arg0: i32) -> (i32, i32, i32) {
    %c0_i32 = arith.constant 0 : i32
    %c0_i32_0 = arith.constant 0 : i32
    %c0_i32_1 = arith.constant 0 : i32
    return %arg0, %c0_i32, %c0_i32_0 : i32, i32, i32
  }
  func.func @transform_2(%arg0: i32) -> (i32, i32, i32) {
    %c0_i32 = arith.constant 0 : i32
    %c0_i32_0 = arith.constant 0 : i32
    %c0_i32_1 = arith.constant 0 : i32
    return %arg0, %c0_i32, %c0_i32_0 : i32, i32, i32
  }
  func.func @transform_3(%arg0: i32) -> (i32, i32, i32) {
    %c0_i32 = arith.constant 0 : i32
    %c0_i32_0 = arith.constant 0 : i32
    %c0_i32_1 = arith.constant 0 : i32
    return %arg0, %c0_i32, %c0_i32_0 : i32, i32, i32
  }
  func.func @transform_4(%arg0: i32) -> (i32, i32, i32) {
    %c0_i32 = arith.constant 0 : i32
    %c0_i32_0 = arith.constant 0 : i32
    %c0_i32_1 = arith.constant 0 : i32
    return %arg0, %c0_i32, %c0_i32_0 : i32, i32, i32
  }
  func.func @transform_5(%arg0: i32) -> (i32, i32, i32, i32) {
    %c0_i32 = arith.constant 0 : i32
    %c0_i32_0 = arith.constant 0 : i32
    %c0_i32_1 = arith.constant 0 : i32
    %c0_i32_2 = arith.constant 0 : i32
    return %arg0, %c0_i32, %c0_i32_0, %c0_i32_1 : i32, i32, i32, i32
  }
  func.func @transform_6(%arg0: i32) -> (i32, i32, i32) {
    %c0_i32 = arith.constant 0 : i32
    %c0_i32_0 = arith.constant 0 : i32
    %c0_i32_1 = arith.constant 0 : i32
    return %arg0, %c0_i32, %c0_i32_0 : i32, i32, i32
  }
  func.func @transform_7(%arg0: i32) -> (i32, i32, i32, i32) {
    %c0_i32 = arith.constant 0 : i32
    %c0_i32_0 = arith.constant 0 : i32
    %c0_i32_1 = arith.constant 0 : i32
    %c0_i32_2 = arith.constant 0 : i32
    return %arg0, %c0_i32, %c0_i32_0, %c0_i32_1 : i32, i32, i32, i32
  }
  func.func @transform_8(%arg0: i32) -> (i32, i32) {
    %c0_i32 = arith.constant 0 : i32
    %c0_i32_0 = arith.constant 0 : i32
    %c0_i32_1 = arith.constant 0 : i32
    return %c0_i32, %c0_i32_0 : i32, i32
  }
  func.func @transform_9(%arg0: i32) -> (i32, i32) {
    %c0_i32 = arith.constant 0 : i32
    %c0_i32_0 = arith.constant 0 : i32
    %c0_i32_1 = arith.constant 0 : i32
    return %c0_i32, %c0_i32_0 : i32, i32
  }
  func.func @transform_10(%arg0: i32) -> (i32, i32) {
    %c0_i32 = arith.constant 0 : i32
    %c0_i32_0 = arith.constant 0 : i32
    %c0_i32_1 = arith.constant 0 : i32
    return %c0_i32, %c0_i32_0 : i32, i32
  }
  func.func @transform_11(%arg0: i32) -> (i32, i32) {
    %c0_i32 = arith.constant 0 : i32
    %c0_i32_0 = arith.constant 0 : i32
    %c0_i32_1 = arith.constant 0 : i32
    return %c0_i32, %c0_i32_0 : i32, i32
  }
  func.func @transform_12(%arg0: i32) -> (i32, i32) {
    %c0_i32 = arith.constant 0 : i32
    %c0_i32_0 = arith.constant 0 : i32
    %c0_i32_1 = arith.constant 0 : i32
    return %c0_i32, %c0_i32_0 : i32, i32
  }
  func.func @transform_13(%arg0: i32) -> (i32, i32) {
    %c0_i32 = arith.constant 0 : i32
    %c0_i32_0 = arith.constant 0 : i32
    %c0_i32_1 = arith.constant 0 : i32
    return %c0_i32, %c0_i32_0 : i32, i32
  }
  func.func @transform_14(%arg0: i32) -> (i32, i32) {
    %c0_i32 = arith.constant 0 : i32
    %c0_i32_0 = arith.constant 0 : i32
    %c0_i32_1 = arith.constant 0 : i32
    return %c0_i32, %c0_i32_0 : i32, i32
  }
  func.func @transform_15(%arg0: i32) -> (i32, i32) {
    %c0_i32 = arith.constant 0 : i32
    %c0_i32_0 = arith.constant 0 : i32
    %c0_i32_1 = arith.constant 0 : i32
    return %c0_i32, %c0_i32_0 : i32, i32
  }
  func.func @transform_16(%arg0: i32) -> (i32, i32) {
    %c0_i32 = arith.constant 0 : i32
    %c0_i32_0 = arith.constant 0 : i32
    %c0_i32_1 = arith.constant 0 : i32
    return %c0_i32, %c0_i32_0 : i32, i32
  }
  func.func @transform_17(%arg0: i32) -> (i32, i32) {
    %c0_i32 = arith.constant 0 : i32
    %c0_i32_0 = arith.constant 0 : i32
    %c0_i32_1 = arith.constant 0 : i32
    return %c0_i32, %c0_i32_0 : i32, i32
  }
  func.func @transform_18(%arg0: i32) -> (i32, i32) {
    %c0_i32 = arith.constant 0 : i32
    %c0_i32_0 = arith.constant 0 : i32
    %c0_i32_1 = arith.constant 0 : i32
    return %c0_i32, %c0_i32_0 : i32, i32
  }
  func.func @transform_19(%arg0: i32) -> (i32, i32, i32) {
    %c0_i32 = arith.constant 0 : i32
    %c0_i32_0 = arith.constant 0 : i32
    %c0_i32_1 = arith.constant 0 : i32
    return %arg0, %c0_i32, %c0_i32_0 : i32, i32, i32
  }
  func.func @transform_20(%arg0: i32) -> (i32, i32, i32) {
    %c0_i32 = arith.constant 0 : i32
    %c0_i32_0 = arith.constant 0 : i32
    %c0_i32_1 = arith.constant 0 : i32
    return %arg0, %c0_i32, %c0_i32_0 : i32, i32, i32
  }
  func.func @transform_21(%arg0: i32) -> (i32, i32, i32) {
    %c0_i32 = arith.constant 0 : i32
    %c0_i32_0 = arith.constant 0 : i32
    %c0_i32_1 = arith.constant 0 : i32
    return %arg0, %c0_i32, %c0_i32_0 : i32, i32, i32
  }
  func.func @transform_22(%arg0: i32) -> (i32, i32, i32) {
    %c0_i32 = arith.constant 0 : i32
    %c0_i32_0 = arith.constant 0 : i32
    %c0_i32_1 = arith.constant 0 : i32
    return %arg0, %c0_i32, %c0_i32_0 : i32, i32, i32
  }
}

</mosaic_0001>

<bundles_post_ra>
// kernel: o_m_attention_forward.2
= control target key start
LH: loop header
LB: loop body
LE: loop exit
PB: predicated region body
PF: predicated region fallthrough
CT: control target
= control target key end

     0   :  { %s4672_s27 = smov 0   ;;  %s5156_s0 = inlined_call_operand.vmem [shape: f32[2,16,10], index: 0, kind: input, shape index: {}]   ;;  %s5157_s1 = inlined_call_operand.vmem [shape: f32[2,16,1], index: 1, kind: input, shape index: {}]   ;;  %s5158_s2 = inlined_call_operand.vmem [shape: f32[2,16,1], index: 2, kind: input, shape index: {}]   ;;  %s5159_s3 = inlined_call_operand.vmem [shape: f32[2,16,1], index: 3, kind: input, shape index: {}]   ;;  %s5160_s4 = inlined_call_operand.vmem [shape: f32[2,4,8], index: 4, kind: input, shape index: {}]   ;;  %s5161_s5 = inlined_call_operand.vmem [shape: f32[2,4,4,1], index: 5, kind: input, shape index: {}]   ;;  %s5162_s6 = inlined_call_operand.vmem [shape: f32[2,4,10], index: 6, kind: input, shape index: {}]   ;;  %s5163_s7 = inlined_call_operand.vmem [shape: f32[2,4,4,4], index: 7, kind: input, shape index: {}]   ;;  %s5164_s8 = inlined_call_operand.vmem [shape: f32[10,128], index: 8, kind: input, shape index: {}]   ;;  %s5165_s9 = inlined_call_operand.vmem [shape: f32[128,4], index: 9, kind: input, shape index: {}]   ;;  %s5166_s10 = inlined_call_operand.vmem [shape: f32[128,4], index: 10, kind: input, shape index: {}]   ;;  %s5167_s11 = inlined_call_operand.vmem [shape: f32[4,128], index: 11, kind: input, shape index: {}, may-alias: {11,16}]   ;;  %s5168_s12 = inlined_call_operand.vmem [shape: f32[8,128], index: 12, kind: input, shape index: {}]   ;;  %s5169_s13 = inlined_call_operand.vmem [shape: f32[128,4], index: 13, kind: input, shape index: {}]   ;;  %s5170_s14 = inlined_call_operand.vmem [shape: f32[8,4], index: 14, kind: input, shape index: {}]   ;;  %s5171_s15 = inlined_call_operand.vmem [shape: f32[10,4], index: 15, kind: input, shape index: {}]   ;;  %s5172_s16 = inlined_call_operand.vmem [shape: f32[4,128], index: 16, kind: input, shape index: {}, may-alias: {11,16}]   ;;  %s5173_s17 = inlined_call_operand.vmem [shape: f32[2,16,128], index: 17, kind: output, shape index: {0}]   ;;  %s5174_s18 = inlined_call_operand.vmem [shape: f32[2,4,128], index: 18, kind: output, shape index: {1}]  }
   0x1   :  { %5175 = sst [smem:[#allocation2_spill]] %s5156_s0 }
   0x2   :  { %5176 = sst [smem:[#allocation3_spill]] %s5157_s1 }
   0x3   :  { %5177 = sst [smem:[#allocation4_spill]] %s5158_s2 }
   0x4 LB: > { %s3873_s28 = sadd.s32 4294967295, %s4570_s27   ;;  %p3877_p0 = scmp.ge.s32.totalorder %s4570_s27, 1  ;;  %s4570_s27 = sphi %s4672_s27, %s29_s27  }
   0x5   : > { %p583_p1 = scmp.lt.s32.totalorder %s4570_s27, 3 }
   0x7   : > { %p584_p2 = pnand %p3877_p0, %p583_p1 }
   0x8   : > { %v723_v0 = vld [vmem:[%s5164_s8] sm:$0xff] (!%p584_p2)  ;;  %v724_v1 = vld [vmem:[%s5164_s8 + $0x8] sm:$0x3] (!%p584_p2)  ;;  %vm732_vm0 = vcmask (!%p584_p2), 1041408   ;;  %p674_p3 = scmp.lt.s32.totalorder (!%p584_p2), %s3873_s28, 1  ;;  %vm4572_vm1 = vmmov (!%p584_p2), 1   ;;  %v993_v62 = vlaneseq (!%p584_p2) }
   0x9   : > { %587 = sbr.rel (%p584_p2) target bundleno = 2161 (0x871), region = 88  ;;  %v4395_v2 = vpack.c.bf16 (!%p584_p2), %v724_v1, %v723_v0  ;;  %vm4686_vm2 = vmpackc.low (!%p584_p2), %vm732_vm0, %vm4572_vm1  ;;  %v811_v4 = vld [vmem:[%s5165_s9] sm:$0xff] (!%p584_p2)  ;;  %v812_v5 = vld [vmem:[%s5165_s9 + $0x8] sm:$0xff] (!%p584_p2)  ;;  %vm725_vm3 = vcmask (!%p584_p2), 80896   ;;  %s5180_s30 = sld [smem:[#allocation2_spill]] (!%p584_p2)  ;;  %v4573_v54 = vmov (!%p584_p2), 0  }
   0xa   : > { %v4401_v6 = vpack.c.bf16 (!%p584_p2), %v812_v5, %v811_v4  ;;  %v902_v7 = vld [vmem:[%s5166_s10] sm:$0xff] (!%p584_p2)  ;;  %v903_v8 = vld [vmem:[%s5166_s10 + $0x8] sm:$0xff] (!%p584_p2)  ;;  %v813_v9 = vld [vmem:[%s5165_s9 + $0x10] sm:$0xff] (!%p584_p2)  ;;  %s5182_s20 = sld [smem:[#allocation4_spill]] (!%p584_p2)  ;;  %4523 = vset.pattern.permute.xlu1 (!%p584_p2), %v4573_v54  ;;  %4522 = vset.pattern.permute.xlu0 (!%p584_p2), %v4573_v54  ;;  %v4819_v63 = vshrl.u32 (!%p584_p2), %v993_v62, 7  ;;  %v4821_v0 = vand.u32 (!%p584_p2), 127, %v993_v62 }
   0xb   : > { %4397 = vmatprep.subr.msk.bf16.mxu0 (!%p584_p2), %vm4686_vm2, %v4395_v2  ;;  %v4433_v10 = vpack.c.bf16 (!%p584_p2), %v903_v8, %v902_v7  ;;  %v814_v11 = vld [vmem:[%s5165_s9 + $0x18] sm:$0xff] (!%p584_p2)  ;;  %v904_v12 = vld [vmem:[%s5166_s10 + $0x10] sm:$0xff] (!%p584_p2)  ;;  %v815_v15 = vld [vmem:[%s5165_s9 + $0x20] sm:$0xff] (!%p584_p2)  ;;  %vm1013_vm5 = vcmask (!%p584_p2), 130048   ;;  %vm1430_vm9 = vcmask (!%p584_p2), 1043456   ;;  %vm1423_vm0 = vcmask (!%p584_p2), 31744  }
   0xc   : > { %v905_v13 = vld [vmem:[%s5166_s10 + $0x18] sm:$0xff] (!%p584_p2)  ;;  %4400 = vmatpush3.bf16.msk.msra.mxu0 (!%p584_p2), %vm4686_vm2, %v4395_v2  ;;  %4402 = vmatprep.subr.bf16.mxu1 (!%p584_p2), %v4401_v6  ;;  %v4405_v14 = vpack.c.bf16 (!%p584_p2), %v814_v11, %v813_v9  ;;  %v816_v16 = vld [vmem:[%s5165_s9 + $0x28] sm:$0xff] (!%p584_p2)  ;;  %v906_v21 = vld [vmem:[%s5166_s10 + $0x20] sm:$0xff] (!%p584_p2)  ;;  %v998_v1 = vadd.s32 (!%p584_p2), 1, %v4821_v0  ;;  %v995_v2 = vadd.s32 (!%p584_p2), 8, %v4819_v63  ;;  %v1005_v4 = vadd.s32 (!%p584_p2), 1, %v4819_v63 }
   0xd   : > { %4434 = vmatprep.subr.bf16.mxu0 (!%p584_p2), %v4433_v10  ;;  %4404 = vmatpush3.bf16.msra.mxu1 (!%p584_p2), %v4401_v6  ;;  %v4437_v19 = vpack.c.bf16 (!%p584_p2), %v905_v13, %v904_v12  ;;  %v4409_v20 = vpack.c.bf16 (!%p584_p2), %v816_v16, %v815_v15  ;;  %v907_v22 = vld [vmem:[%s5166_s10 + $0x28] sm:$0xff] (!%p584_p2)  ;;  %v817_v23 = vld [vmem:[%s5165_s9 + $0x30] sm:$0xff] (!%p584_p2)  ;;  %v818_v24 = vld [vmem:[%s5165_s9 + $0x38] sm:$0xff] (!%p584_p2)  ;;  %v4574_v6 = vmov (!%p584_p2), 0.0   ;;  %vm1687_vm1 = vcmask (!%p584_p2), 64512  }
   0xe   : > { %4406 = vmatprep.subr.bf16.mxu1 (!%p584_p2), %v4405_v14  ;;  %v4441_v25 = vpack.c.bf16 (!%p584_p2), %v907_v22, %v906_v21  ;;  %v4413_v26 = vpack.c.bf16 (!%p584_p2), %v818_v24, %v817_v23  ;;  %v908_v27 = vld [vmem:[%s5166_s10 + $0x30] sm:$0xff] (!%p584_p2)  ;;  %v909_v28 = vld [vmem:[%s5166_s10 + $0x38] sm:$0xff] (!%p584_p2)  ;;  %v819_v29 = vld [vmem:[%s5165_s9 + $0x40] sm:$0xff] (!%p584_p2)  ;;  %vm999_vm4 = vcmp.eq.s32.totalorder (!%p584_p2), %v4819_v63, %v998_v1  ;;  %v1006_v5 = vadd.s32 (!%p584_p2), 1, %v995_v2 }
   0xf   : > { %v820_v30 = vld [vmem:[%s5165_s9 + $0x48] sm:$0xff] (!%p584_p2)  ;;  %v4445_v31 = vpack.c.bf16 (!%p584_p2), %v909_v28, %v908_v27  ;;  %v910_v33 = vld [vmem:[%s5166_s10 + $0x40] sm:$0xff] (!%p584_p2)  ;;  %v821_v35 = vld [vmem:[%s5165_s9 + $0x50] sm:$0xff] (!%p584_p2)  ;;  %v3898_v7 = vsel (!%p584_p2), %vm999_vm4, 1.0, %v4574_v6  ;;  %vm1000_vm6 = vcmp.eq.s32.totalorder (!%p584_p2), %v995_v2, %v998_v1  ;;  %vm1007_vm7 = vcmp.eq.s32.totalorder (!%p584_p2), %v4821_v0, %v1005_v4 }
  0x10   : > { %s5184_s28 = smov (!%p674_p3, %s3873_s28), 1  ;;  %v4417_v32 = vpack.c.bf16 %v820_v30, %v819_v29  ;;  %v911_v34 = vld [vmem:[%s5166_s10 + $0x48] sm:$0xff]  ;;  %v822_v36 = vld [vmem:[%s5165_s9 + $0x58] sm:$0xff]  ;;  %v912_v39 = vld [vmem:[%s5166_s10 + $0x50] sm:$0xff]  ;;  %v3899_v8 = vsel %vm1000_vm6, 1.0, %v4574_v6  ;;  %v3900_v9 = vsel %vm1007_vm7, 1.0, %v4574_v6  ;;  %vm1008_vm8 = vcmp.eq.s32.totalorder %v4821_v0, %v1006_v5 }
  0x11   : > { %s4721_s22 = sshll.u32 %s5184_s28, 4  ;;  %4408 = vmatpush3.bf16.msra.mxu1 %v4405_v14  ;;  %v4449_v37 = vpack.c.bf16 %v911_v34, %v910_v33  ;;  %v4421_v38 = vpack.c.bf16 %v822_v36, %v821_v35  ;;  %v913_v40 = vld [vmem:[%s5166_s10 + $0x58] sm:$0xff]  ;;  %v823_v41 = vld [vmem:[%s5165_s9 + $0x60] sm:$0xff]  ;;  %v824_v42 = vld [vmem:[%s5165_s9 + $0x68] sm:$0xff]  ;;  %s4874_s19 = sshll.u32 %s5184_s28, 2  ;;  %vm4575_vm4 = vmmov 0  }
  0x12   : > { %s678_s0 = scalar_lea.vmem %s5180_s30, %s4721_s22  ;;  %4410 = vmatprep.subr.bf16.mxu1 %v4409_v20  ;;  %v4453_v43 = vpack.c.bf16 %v913_v40, %v912_v39  ;;  %v4425_v44 = vpack.c.bf16 %v824_v42, %v823_v41  ;;  %v914_v45 = vld [vmem:[%s5166_s10 + $0x60] sm:$0xff]  ;;  %v915_v46 = vld [vmem:[%s5166_s10 + $0x68] sm:$0xff]  ;;  %v825_v47 = vld [vmem:[%s5165_s9 + $0x70] sm:$0xff]  ;;  %s5181_s30 = sld [smem:[#allocation3_spill]]  ;;  %vm2407_vm6 = vcmp.eq.s32.totalorder %v4821_v0, 1 }
  0x13   : > { %v721_v17 = vld [vmem:[%s678_s0] sm:$0xff]  ;;  %v722_v18 = vld [vmem:[%s678_s0 + $0x8] sm:$0xff]  ;;  %v826_v48 = vld [vmem:[%s5165_s9 + $0x78] sm:$0xff]  ;;  %v4457_v49 = vpack.c.bf16 %v915_v46, %v914_v45  ;;  %s688_s21 = scalar_lea.vmem %s5182_s20, %s4721_s22  ;;  %s693_s24 = scalar_lea.vmem %s5159_s3, %s4721_s22 }
  0x14   : > { %4122 = vmatprep.mubr.msk.f32.mxu0 %vm725_vm3, %v721_v17  ;;  %v4429_v50 = vpack.c.bf16 %v826_v48, %v825_v47  ;;  %v916_v51 = vld [vmem:[%s5166_s10 + $0x70] sm:$0xff]  ;;  %v917_v52 = vld [vmem:[%s5166_s10 + $0x78] sm:$0xff]  ;;  %v1357_v57 = vld [vmem:[%s688_s21 + $0x8] sm:$0xff]  ;;  %s702_s29 = scalar_lea.vmem %s5161_s5, %s4721_s22  ;;  %s5003_s1 = scalar_lea.vmem %s5163_s7, %s4721_s22 }
  0x15   : > { %4123 = vmatmul.mubr.msk.f32.vlgmr.msra.gmra.mrb[0].mxu0 %vm725_vm3, %v722_v18  ;;  %4412 = vmatpush3.bf16.msra.mxu1 %v4409_v20  ;;  %v4461_v53 = vpack.c.bf16 %v917_v52, %v916_v51  ;;  %v1356_v58 = vld [vmem:[%s688_s21] sm:$0xff]  ;;  %v1379_v12 = vld [vmem:[%s693_s24 + $0x8] sm:$0xff]  ;;  %s697_s21 = scalar_lea.vmem %s5160_s4, %s4874_s19  ;;  %s720_s25 = scalar_lea.vmem %s5174_s18, %s4874_s19 }
  0x16   : > { %4436 = vmatpush3.bf16.msra.mxu0 %v4433_v10  ;;  %4414 = vmatprep.subr.bf16.mxu1 %v4413_v26  ;;  %v3901_v10 = vsel %vm1008_vm8, 1.0, %v4574_v6  ;;  %v1378_v11 = vld [vmem:[%s693_s24] sm:$0xff]  ;;  %v3955_v15 = vld [vmem:[%s702_s29 + $0x8] sm:$0xf]  ;;  %v3968_v16 = vld [vmem:[%s702_s29 + $0xc] sm:$0xf] }
  0x17   : > { %4438 = vmatprep.subr.bf16.mxu0 %v4437_v19  ;;  %v2236_v13 = vld [vmem:[%s702_s29] sm:$0xf]  ;;  %v3942_v14 = vld [vmem:[%s702_s29 + $0x4] sm:$0xf]  ;;  %s706_s29 = scalar_lea.vmem %s5162_s6, %s4874_s19 }
  0x18   : > { %s683_s0 = scalar_lea.vmem %s5181_s30, %s4721_s22  ;;  %v4860_v28 = vld [vmem:[%s5167_s11] sm:$0xf] }
  0x19   : > { %4416 = vmatpush3.bf16.msra.mxu1 %v4413_v26  ;;  %v1335_v55 = vld [vmem:[%s683_s0 + $0x8] sm:$0xff]  ;;  %v1334_v56 = vld [vmem:[%s683_s0] sm:$0xff] }
  0x1a   : > { %4440 = vmatpush3.bf16.msra.mxu0 %v4437_v19  ;;  %4418 = vmatprep.subr.bf16.mxu1 %v4417_v32 }
  0x1b   : > { %4442 = vmatprep.subr.bf16.mxu0 %v4441_v25  ;;  %1343 = vperm.xlu1 %4523, %v1335_v55  }
  0x1c   : > { %1338 = vperm.xlu0 %4522, %v1334_v56  }
  0x1d   : > { %4420 = vmatpush3.bf16.msra.mxu1 %v4417_v32 }
  0x1e   : > { %4444 = vmatpush3.bf16.msra.mxu0 %v4441_v25  ;;  %4422 = vmatprep.subr.bf16.mxu1 %v4421_v38 }
  0x1f   : > { %4446 = vmatprep.subr.bf16.mxu0 %v4445_v31  ;;  %1365 = vperm.xlu1 %4523, %v1357_v57  }
  0x20   : > { %1360 = vperm.xlu0 %4522, %v1356_v58  }
  0x21   : > { %4424 = vmatpush3.bf16.msra.mxu1 %v4421_v38 }
  0x22   : > { %4448 = vmatpush3.bf16.msra.mxu0 %v4445_v31  ;;  %4426 = vmatprep.subr.bf16.mxu1 %v4425_v44 }
  0x23   : > { %4450 = vmatprep.subr.bf16.mxu0 %v4449_v37  ;;  %1387 = vperm.xlu1 %4523, %v1379_v12  }
  0x24   : > { %1382 = vperm.xlu0 %4522, %v1378_v11  }
  0x25   : > { %4428 = vmatpush3.bf16.msra.mxu1 %v4425_v44 }
  0x26   : > { %4452 = vmatpush3.bf16.msra.mxu0 %v4449_v37  ;;  %4430 = vmatprep.subr.bf16.mxu1 %v4429_v50 }
  0x27   : > { %4454 = vmatprep.subr.bf16.mxu0 %v4453_v43  ;;  %2641 = vperm.xlu1 %4523, %v3942_v14  }
  0x28   : > { %2239 = vperm.xlu0 %4522, %v2236_v13  }
  0x29   : > { %4432 = vmatpush3.bf16.msra.mxu1 %v4429_v50 }
  0x2a   : > { %4456 = vmatpush3.bf16.msra.mxu0 %v4453_v43 }
  0x2b   : > { %4458 = vmatprep.subr.bf16.mxu0 %v4457_v49  ;;  %3441 = vperm.xlu1 %4523, %v3968_v16  }
  0x2c   : > { %3041 = vperm.xlu0 %4522, %v3955_v15  }
  0x2e   : > { %4460 = vmatpush3.bf16.msra.mxu0 %v4457_v49 }
  0x2f   : > { %4462 = vmatprep.subr.bf16.mxu0 %v4461_v53 }
  0x32   : > { %4464 = vmatpush3.bf16.msra.mxu0 %v4461_v53 }
  0x9a   : > { %v1344_v29 = vpop.permute.xlu1 %1343 }
  0x9b   : > { %v1339_v30 = vpop.permute.xlu0 %1338 }
  0x9e   : > { %v1366_v43 = vpop.permute.xlu1 %1365 }
  0x9f   : > { %v1361_v46 = vpop.permute.xlu0 %1360 }
  0xa2   : > { %v1388_v56 = vpop.permute.xlu1 %1387 }
  0xa3   : > { %v1383_v58 = vpop.permute.xlu0 %1382 }
  0xe8   : > { %v4809_v59 = vpop.f32.mrb[0].mxu0 }
  0xe9   : > { %v4811_v60 = vpop.f32.mrb[1].mxu0 }
  0xea   : > { %v4465_v61 = vpack.c.bf16 %v4809_v59, %v4811_v60  ;;  %4157 = vmatprep.mubr.f32.mxu1 %v4811_v60  ;;  %4192 = vmatprep.mubr.f32.mxu0 %v4811_v60 }
  0xeb   : > { %4158 = vmatmul.mubr.f32.vlgmr.msra.gmra.mrb[0].mxu1 %v4809_v59  ;;  %4193 = vmatmul.mubr.f32.vlgmr.msra.gmra.mrb[2].mxu0 %v4809_v59 }
  0xec   : > { %4466 = vmatprep.subr.bf16.mxu1 %v4465_v61  ;;  %4470 = vmatprep.subr.bf16.mxu0 %v4465_v61 }
  0xed   : > { %4468 = vmatpush3.bf16.msra.mxu1 %v4465_v61  ;;  %4472 = vmatpush3.bf16.msra.mxu0 %v4465_v61 }
  0xee   : > { %4199 = vmatprep.mubr.msk.f32.mxu1 %vm1013_vm5, %v3898_v7  ;;  %4206 = vmatprep.mubr.msk.f32.mxu0 %vm1013_vm5, %v3900_v9 }
  0xf0   : > { %4200 = vmatmul.mubr.msk.f32.vlgmr.msra.gmra.mrb[2].mxu1 %vm1013_vm5, %v3899_v8  ;;  %4207 = vmatmul.mubr.msk.f32.vlgmr.msra.gmra.mrb[4].mxu0 %vm1013_vm5, %v3901_v10 }
  0xf1   : > { %4213 = vmatprep.mubr.msk.f32.mxu1 %vm1013_vm5, %v3898_v7  ;;  %4220 = vmatprep.mubr.msk.f32.mxu0 %vm1013_vm5, %v3900_v9 }
 0x1be   : > { %v4159_v17 = vpop.f32.mrb[0].mxu1  ;;  %v4194_v18 = vpop.f32.mrb[2].mxu0 }
 0x1bf   : > { %v1349_v19 = vadd.f32 %v4194_v18, %v4159_v17  ;;  %v893_v20 = vpop.f32.mrb[1].mxu1  ;;  %v984_v21 = vpop.f32.mrb[3].mxu0 }
 0x1c0   : > { %v4473_v22 = vpack.c.bf16 %v4194_v18, %v984_v21  ;;  %v1348_v23 = vadd.f32 %v984_v21, %v893_v20 }
 0x1c1   : > { %v1353_v31 = vmul.f32 0.2, %v1349_v19  ;;  %vm1351_vm10 = vcmp.gt.f32.partialorder %v1349_v19, 0.0 }
 0x1c2   : > { %4474 = vmatprep.subr.bf16.mxu1 %v4473_v22  ;;  %4478 = vmatprep.subr.bf16.mxu0 %v4473_v22  ;;  %v1352_v32 = vmul.f32 0.2, %v1348_v23  ;;  %vm1350_vm11 = vcmp.gt.f32.partialorder %v1348_v23, 0.0 }
 0x1c3   : > { %4476 = vmatpush3.bf16.msra.mxu1 %v4473_v22  ;;  %4480 = vmatpush3.bf16.msra.mxu0 %v4473_v22  ;;  %v4849_v24 = vpop.f32.mrb[2].mxu1  ;;  %v4853_v26 = vpop.f32.mrb[4].mxu0  ;;  %v1355_v39 = vsel %vm1351_vm10, %v1349_v19, %v1353_v31  ;;  %vm2807_vm10 = vcmp.eq.s32.totalorder %v4821_v0, 2 }
 0x1c4   : > { %v4851_v25 = vpop.f32.mrb[3].mxu1  ;;  %v4855_v27 = vpop.f32.mrb[5].mxu0  ;;  %4223 = vmatprep.subr.msk.mxu1 %vm1430_vm9, %v4860_v28  ;;  %4228 = vmatprep.subr.msk.mxu0 %vm1430_vm9, %v4860_v28  ;;  %v1354_v40 = vsel %vm1350_vm11, %v1348_v23, %v1352_v32  ;;  %v1369_v51 = vadd.f32 %v1366_v43, %v1355_v39  ;;  %v1761_v43 = vld [vmem:[%s5169_s13] sm:$0xff] }
 0x1c5   : > { %v1368_v55 = vadd.f32 %v1361_v46, %v1354_v40  ;;  %v1847_v46 = vld [vmem:[%s5170_s14] sm:$0xff] }
 0x1c6   : > { %4214 = vmatmul.mubr.msk.f32.vlgmr.msra.gmra.mrb[4].mxu1 %vm1013_vm5, %v3899_v8  ;;  %4221 = vmatmul.mubr.msk.f32.vlgmr.msra.gmra.mrb[6].mxu0 %vm1013_vm5, %v3901_v10 }
 0x1c7   : > { %4224 = vmatpush3.msk.msra.mxu1 %vm1430_vm9, %v4860_v28  ;;  %4229 = vmatpush3.msk.msra.mxu0 %vm1430_vm9, %v4860_v28 }
 0x1c8   : > { %4233 = vmatprep.subr.msk.mxu1 %vm1430_vm9, %v4860_v28  ;;  %4238 = vmatprep.subr.mxu0 %v4574_v6 }
 0x299   : > { %v4215_v33 = vpop.f32.mrb[4].mxu1  ;;  %v4222_v34 = vpop.f32.mrb[6].mxu0 }
 0x29a   : > { %v1327_v35 = vadd.f32 %v4215_v33, %v4159_v17  ;;  %v1371_v36 = vadd.f32 %v4222_v34, %v4159_v17  ;;  %v1242_v37 = vpop.f32.mrb[5].mxu1  ;;  %v1317_v38 = vpop.f32.mrb[7].mxu0 }
 0x29b   : > { %v1326_v41 = vadd.f32 %v1242_v37, %v893_v20  ;;  %v1370_v42 = vadd.f32 %v1317_v38, %v893_v20 }
 0x29c   : > { %vm1329_vm12 = vcmp.gt.f32.partialorder %v1327_v35, 0.0  ;;  %v1331_v44 = vmul.f32 0.2, %v1327_v35  ;;  %vm1373_vm13 = vcmp.gt.f32.partialorder %v1371_v36, 0.0  ;;  %v1375_v45 = vmul.f32 0.2, %v1371_v36 }
 0x29d   : > { %vm1328_vm14 = vcmp.gt.f32.partialorder %v1326_v41, 0.0  ;;  %v1330_v47 = vmul.f32 0.2, %v1326_v41  ;;  %vm1372_vm15 = vcmp.gt.f32.partialorder %v1370_v42, 0.0  ;;  %v1374_v48 = vmul.f32 0.2, %v1370_v42 }
 0x29e   : > { %v1333_v49 = vsel %vm1329_vm12, %v1327_v35, %v1331_v44  ;;  %v1377_v50 = vsel %vm1373_vm13, %v1371_v36, %v1375_v45  ;;  %v1762_v44 = vld [vmem:[%s5169_s13 + $0x8] sm:$0xff]  ;;  %v1685_v45 = vld [vmem:[%s697_s21] sm:$0xf]  ;;  %s716_s21 = scalar_lea.vmem %s5173_s17, %s4721_s22  ;;  %vm3207_vm12 = vcmp.eq.s32.totalorder %v4821_v0, 3 }
 0x29f   : > { %v1347_v52 = vadd.f32 %v1344_v29, %v1333_v49  ;;  %v1332_v53 = vsel %vm1328_vm14, %v1326_v41, %v1330_v47  ;;  %v1376_v54 = vsel %vm1372_vm15, %v1370_v42, %v1374_v48  ;;  %v1391_v62 = vadd.f32 %v1388_v56, %v1377_v50  ;;  %v1686_v42 = vld [vmem:[%s5168_s12] sm:$0xff]  ;;  %v1763_v50 = vld [vmem:[%s5169_s13 + $0x10] sm:$0xff] }
 0x2a0   : > { %v1346_v57 = vadd.f32 %v1339_v30, %v1332_v53  ;;  %v1390_v2 = vadd.f32 %v1383_v58, %v1376_v54  ;;  %v1919_v47 = vld [vmem:[%s5171_s15] sm:$0xff]  ;;  %v4482_v48 = vpack.c.bf16 %v1762_v44, %v1761_v43  ;;  %v4576_v49 = vmov 0.0|0.0   ;;  %v1767_v58 = vld [vmem:[%s5169_s13 + $0x30] sm:$0xff] }
 0x2a1   : > { %v1393_v61 = vmax.f32 %v1347_v52, %v1369_v51  ;;  %v1765_v54 = vld [vmem:[%s5169_s13 + $0x20] sm:$0xff] }
 0x2a2   : > { %v1392_v1 = vmax.f32 %v1346_v57, %v1368_v55  ;;  %v1918_v56 = vld [vmem:[%s706_s29] sm:$0xf] }
 0x2a3   : > { %v1395_v4 = vmax.f32 %v1393_v61, %v1391_v62  ;;  %v1768_v61 = vld [vmem:[%s5169_s13 + $0x38] sm:$0xff] }
 0x2a4   : > { %v1394_v5 = vmax.f32 %v1392_v1, %v1390_v2  ;;  %v4491_v3 = vpack.c.bf16 %v1768_v61, %v1767_v58  ;;  %v1770_v1 = vld [vmem:[%s5169_s13 + $0x48] sm:$0xff] }
 0x2a5   : > { %v1397_v7 = vsub.f32 %v1347_v52, %v1395_v4  ;;  %v1403_v8 = vsub.f32 %v1369_v51, %v1395_v4  ;;  %v1409_v9 = vsub.f32 %v1391_v62, %v1395_v4  ;;  %v1764_v51 = vld [vmem:[%s5169_s13 + $0x18] sm:$0xff]  ;;  %v1769_v62 = vld [vmem:[%s5169_s13 + $0x40] sm:$0xff]  ;;  %v1771_v4 = vld [vmem:[%s5169_s13 + $0x50] sm:$0xff] }
 0x2a6   : > { %v1396_v10 = vsub.f32 %v1346_v57, %v1394_v5  ;;  %v1402_v11 = vsub.f32 %v1368_v55, %v1394_v5  ;;  %v1408_v12 = vsub.f32 %v1390_v2, %v1394_v5  ;;  %v4485_v53 = vpack.c.bf16 %v1764_v51, %v1763_v50  ;;  %v1766_v55 = vld [vmem:[%s5169_s13 + $0x28] sm:$0xff]  ;;  %v1772_v5 = vld [vmem:[%s5169_s13 + $0x58] sm:$0xff] }
 0x2a7   : > { %v1400_v13 = vmul.f32 1.442695, %v1397_v7  ;;  %v1406_v14 = vmul.f32 1.442695, %v1403_v8  ;;  %v1412_v15 = vmul.f32 1.442695, %v1409_v9  ;;  %v4488_v57 = vpack.c.bf16 %v1766_v55, %v1765_v54 }
 0x2a8   : > { %v1398_v16 = vmul.f32 1.442695, %v1396_v10  ;;  %v1404_v17 = vmul.f32 1.442695, %v1402_v11  ;;  %v1410_v18 = vmul.f32 1.442695, %v1408_v12  ;;  %v4494_v2 = vpack.c.bf16 %v1770_v1, %v1769_v62  ;;  %v2240_v62 = vpop.permute.xlu0 %2239 }
 0x2a9   : > { %4524 = vpow2.f32 %v1400_v13  ;;  %v4497_v7 = vpack.c.bf16 %v1772_v5, %v1771_v4  ;;  %v1773_v8 = vld [vmem:[%s5169_s13 + $0x60] sm:$0xff]  ;;  %v1774_v9 = vld [vmem:[%s5169_s13 + $0x68] sm:$0xff]  ;;  %v1775_v11 = vld [vmem:[%s5169_s13 + $0x70] sm:$0xff]  ;;  %v5038_v50 = vsub.s32 0, %v4819_v63 }
 0x2aa   : > { %4526 = vpow2.f32 %v1406_v14  ;;  %v4500_v10 = vpack.c.bf16 %v1774_v9, %v1773_v8  ;;  %v1776_v12 = vld [vmem:[%s5169_s13 + $0x78] sm:$0xff] }
 0x2ab   : > { %4528 = vpow2.f32 %v1412_v15  ;;  %v4503_v13 = vpack.c.bf16 %v1776_v12, %v1775_v11  ;;  %v3939_v12 = vld [vmem:[%s5003_s1 + $0x4] sm:$0xf] }
 0x2ac   : > { %4530 = vpow2.f32 %v1398_v16 }
 0x2ad   : > { %4532 = vpow2.f32 %v1404_v17 }
 0x2ae   : > { %4534 = vpow2.f32 %v1410_v18 }
 0x2b3   : > { %v4525_v19 = vpop.eup %4524 }
 0x2b4   : > { %v4527_v20 = vpop.eup %4526 }
 0x2b5   : > { %v4529_v21 = vpop.eup %4528  ;;  %v1415_v22 = vadd.f32 %v4527_v20, %v4525_v19 }
 0x2b6   : > { %v4531_v23 = vpop.eup %4530 }
 0x2b7   : > { %v4533_v29 = vpop.eup %4532  ;;  %v1417_v30 = vadd.f32 %v4529_v21, %v1415_v22 }
 0x2b8   : > { %v1414_v31 = vadd.f32 %v4533_v29, %v4531_v23  ;;  %v4535_v32 = vpop.eup %4534 }
 0x2b9   : > { %4536 = vrcp.f32 %v1417_v30 }
 0x2ba   : > { %v1416_v33 = vadd.f32 %v4535_v32, %v1414_v31 }
 0x2bc   : > { %4538 = vrcp.f32 %v1416_v33 }
 0x2c3   : > { %v4537_v34 = vpop.eup %4536 }
 0x2c4   : > { %v1422_v35 = vmul.f32 %v4537_v34, %v4525_v19  ;;  %v1510_v36 = vmul.f32 %v4537_v34, %v4527_v20  ;;  %v1593_v37 = vmul.f32 %v4537_v34, %v4529_v21 }
 0x2c6   : > { %v4539_v38 = vpop.eup %4538 }
 0x2c7   : > { %v1421_v39 = vmul.f32 %v4539_v38, %v4531_v23  ;;  %v1509_v40 = vmul.f32 %v4539_v38, %v4533_v29  ;;  %v1592_v41 = vmul.f32 %v4539_v38, %v4535_v32 }
 0x2c9   : > { %4225 = vmatprep.mubr.msk.f32.mxu1 %vm1423_vm0, %v1421_v39  ;;  %4230 = vmatprep.mubr.msk.f32.mxu0 %vm1423_vm0, %v1509_v40  ;;  %v2150_v40 = vld [vmem:[%s5003_s1] sm:$0xf] }
 0x2ca   : > { %4226 = vmatmul.mubr.msk.f32.vlgmr.msra.gmra.mrb[6].mxu1 %vm1423_vm0, %v1422_v35  ;;  %4231 = vmatmul.mubr.msk.f32.vlgmr.msra.gmra.mrb[8].mxu0 %vm1423_vm0, %v1510_v36 }
 0x2cb   : > { %4235 = vmatprep.mubr.msk.f32.mxu1 %vm1423_vm0, %v1592_v41  ;;  %4234 = vmatpush3.msk.msra.mxu1 %vm1430_vm9, %v4860_v28  ;;  %v1920_v28 = vld [vmem:[%s5171_s15 + $0x8] sm:$0x3] }
 0x2cc   : > { %4239 = vmatpush3.msra.mxu0 %v1686_v42  ;;  %4240 = vmatprep.mubr.msk.f32.mxu0 %vm4575_vm4, %v4574_v6  ;;  %v4506_v52 = vpack.c.bf16 %v1920_v28, %v1919_v47  ;;  %v5022_v47 = vld [vmem:[%s5172_s16] sm:$0xf]  ;;  %v3934_v28 = vsel %vm2407_vm6, 1.0, %v4574_v6 }
 0x2cd   : > { %4278 = vmatprep.subr.mxu0 %v4574_v6  ;;  %4481 = vmatprep.subr.bf16.mxu1 %v4576_v49 }
 0x2ce   : > { %4236 = vmatmul.mubr.msk.f32.vlgmr.msra.gmra.mrb[8].mxu1 %vm1423_vm0, %v1593_v37  ;;  %4241 = vmatmul.mubr.msk.f32.vlgmr.msra.gmra.mrb[10].mxu0 %vm1687_vm1, %v1685_v45 }
 0x2cf   : > { %4279 = vmatpush3.msra.mxu0 %v1847_v46  ;;  %4280 = vmatprep.mubr.msk.f32.mxu0 %vm4575_vm4, %v4574_v6 }
 0x2d0   : > { %4505 = vmatprep.subr.bf16.mxu0 %v4576_v49  ;;  %4483 = vmatpush3.bf16.msra.mxu1 %v4482_v48 }
 0x2d1   : > { %4484 = vmatprep.subr.bf16.mxu1 %v4576_v49  ;;  %4275 = vmatprep.mubr.msk.f32.mxu1 %vm4575_vm4, %v4574_v6 }
 0x2d2   : > { %4281 = vmatmul.mubr.msk.f32.vlgmr.msra.gmra.mrb[12].mxu0 %vm1687_vm1, %v1685_v45 }
 0x2d3   : > { %4508 = vmatpush3.bf16.msk.msra.mxu0 %vm4686_vm2, %v4506_v52  ;;  %4287 = vmatprep.mubr.msk.f32.mxu0 %vm4575_vm4, %v4574_v6  ;;  %vm1998_vm2 = vcmp.eq.s32.totalorder %v4821_v0, 0  ;;  %v3965_v0 = vld [vmem:[%s5003_s1 + $0xc] sm:$0xf] }
 0x2d4   : > { %4486 = vmatpush3.bf16.msra.mxu1 %v4485_v53  ;;  %4290 = vmatprep.subr.mxu0 %v4574_v6 }
 0x2d5   : > { %4487 = vmatprep.subr.bf16.mxu1 %v4576_v49 }
 0x2d6   : > { %4288 = vmatmul.mubr.msk.f32.vlgmr.msra.gmra.mrb[14].mxu0 %vm725_vm3, %v1918_v56 }
 0x2d7   : > { %4292 = vmatprep.mubr.msk.f32.mxu0 %vm4575_vm4, %v4574_v6 }
 0x2d8   : > { %4489 = vmatpush3.bf16.msra.mxu1 %v4488_v57 }
 0x2d9   : > { %4490 = vmatprep.subr.bf16.mxu1 %v4576_v49 }
 0x2dc   : > { %4492 = vmatpush3.bf16.msra.mxu1 %v4491_v3 }
 0x2dd   : > { %4493 = vmatprep.subr.bf16.mxu1 %v4576_v49 }
 0x2e0   : > { %4495 = vmatpush3.bf16.msra.mxu1 %v4494_v2 }
 0x2e1   : > { %4496 = vmatprep.subr.bf16.mxu1 %v4576_v49 }
 0x2e4   : > { %4498 = vmatpush3.bf16.msra.mxu1 %v4497_v7 }
 0x2e5   : > { %4499 = vmatprep.subr.bf16.mxu1 %v4576_v49 }
 0x2e8   : > { %4501 = vmatpush3.bf16.msra.mxu1 %v4500_v10 }
 0x2e9   : > { %4502 = vmatprep.subr.bf16.mxu1 %v4576_v49 }
 0x2ec   : > { %4504 = vmatpush3.bf16.msra.mxu1 %v4503_v13 }
 0x2ed   : > { %4320 = vmatprep.subr.mxu1 %v4574_v6 }
 0x39d   : > { %v4227_v14 = vpop.f32.mrb[6].mxu1  ;;  %v4232_v15 = vpop.f32.mrb[8].mxu0 }
 0x39e   : > { %v1676_v16 = vmul.f32 %v4227_v14, %v4849_v24  ;;  %v1678_v17 = vmul.f32 %v4232_v15, %v4809_v59  ;;  %v1500_v18 = vpop.f32.mrb[7].mxu1  ;;  %v1583_v19 = vpop.f32.mrb[9].mxu0  ;;  %v3923_v24 = vsel %vm1998_vm2, 1.0, %v4574_v6 }
 0x39f   : > { %v1675_v20 = vmul.f32 %v1500_v18, %v4851_v25  ;;  %v1677_v21 = vmul.f32 %v1583_v19, %v4811_v60 }
 0x3a0   : > { %v1680_v22 = vadd.f32 %v1678_v17, %v1676_v16 }
 0x3a1   : > { %v1679_v23 = vadd.f32 %v1677_v21, %v1675_v20  ;;  %v4237_v29 = vpop.f32.mrb[8].mxu1  ;;  %v4974_v30 = vpop.f32.mrb[10].mxu0 }
 0x3a2   : > { %v1682_v31 = vmul.f32 %v4237_v29, %v4853_v26  ;;  %v1666_v32 = vpop.f32.mrb[9].mxu1  ;;  %v4242_v33 = vpop.f32.mrb[11].mxu0  ;;  %4276 = vmatmul.mubr.f32.vlgmr.msra.gmra.mrb[10].mxu1 %v4974_v30 }
 0x3a3   : > { %v1681_v59 = vmul.f32 %v1666_v32, %v4855_v27  ;;  %4321 = vmatpush3.msk.msra.mxu1 %vm1430_vm9, %v4974_v30  ;;  %4322 = vmatprep.mubr.msk.f32.mxu1 %vm4575_vm4, %v4574_v6 }
 0x3a4   : > { %v1684_v60 = vadd.f32 %v1682_v31, %v1680_v22  ;;  %4330 = vmatprep.subr.mxu1 %v4574_v6 }
 0x3a5   : > { %v1683_v25 = vadd.f32 %v1681_v59, %v1679_v23  ;;  %v4986_v26 = vpop.f32.mrb[12].mxu0 }
 0x3a6   : > { %v3685_v34 = vmin.f32 %v1684_v60, 0.0  ;;  %v4282_v35 = vpop.f32.mrb[13].mxu0  ;;  %4291 = vmatpush3.msk.msra.mxu0 %vm1430_vm9, %v4986_v26  ;;  %vm3683_vm3 = vcmp.gt.f32.partialorder %v1684_v60, 0.0  ;;  %4323 = vmatmul.mubr.msk.f32.vlgmr.msra.gmra.mrb[12].mxu1 %vm1423_vm0, %v3934_v28 }
 0x3a7   : > { %v3684_v27 = vmin.f32 %v1683_v25, 0.0  ;;  %4293 = vmatmul.mubr.msk.f32.vlgmr.msra.gmra.mrb[16].mxu0 %vm1423_vm0, %v3923_v24  ;;  %4295 = vmatprep.subr.mxu0 %v4574_v6  ;;  %vm3682_vm5 = vcmp.gt.f32.partialorder %v1683_v25, 0.0 }
 0x3a8   : > { %v3688_v36 = vmul.f32 1.442695, %v3685_v34  ;;  %4296 = vmatpush3.msk.msra.mxu0 %vm1430_vm9, %v4974_v30  ;;  %4297 = vmatprep.mubr.msk.f32.mxu0 %vm4575_vm4, %v4574_v6 }
 0x3a9   : > { %v3686_v37 = vmul.f32 1.442695, %v3684_v27  ;;  %v4996_v38 = vpop.f32.mrb[14].mxu0  ;;  %4300 = vmatprep.subr.mxu0 %v4574_v6  ;;  %4331 = vmatpush3.msk.msra.mxu1 %vm1430_vm9, %v5022_v47 }
 0x3aa   : > { %4540 = vpow2.f32 %v3688_v36  ;;  %v4289_v39 = vpop.f32.mrb[15].mxu0  ;;  %4332 = vmatprep.mubr.msk.f32.mxu1 %vm4575_vm4, %v4574_v6  ;;  %4340 = vmatprep.subr.mxu1 %v4574_v6 }
 0x3ab   : > { %4542 = vpow2.f32 %v3686_v37  ;;  %4298 = vmatmul.mubr.msk.f32.vlgmr.msra.gmra.mrb[18].mxu0 %vm1423_vm0, %v3923_v24 }
 0x3ac   : > { %4301 = vmatpush3.msk.msra.mxu0 %vm1430_vm9, %v4996_v38  ;;  %4302 = vmatprep.mubr.msk.f32.mxu0 %vm4575_vm4, %v4574_v6 }
 0x3ad   : > { %4305 = vmatprep.subr.mxu0 %v4574_v6 }
 0x3af   : > { %4303 = vmatmul.mubr.msk.f32.vlgmr.msra.gmra.mrb[20].mxu0 %vm1423_vm0, %v2150_v40 }
 0x3b0   : > { %4307 = vmatprep.mubr.msk.f32.mxu0 %vm4575_vm4, %v4574_v6  ;;  %4306 = vmatpush3.msk.msra.mxu0 %vm1430_vm9, %v5022_v47 }
 0x3b1   : > { %4310 = vmatprep.subr.mxu0 %v4574_v6 }
 0x3b4   : > { %v4541_v41 = vpop.eup %4540 }
 0x3b5   : > { %v4543_v42 = vpop.eup %4542  ;;  %v3976_v43 = vadd.f32 -1.0, %v4541_v41 }
 0x3b6   : > { %v3975_v44 = vadd.f32 -1.0, %v4543_v42 }
 0x3b7   : > { %v3693_v45 = vsel %vm3683_vm3, %v1684_v60, %v3976_v43 }
 0x3b8   : > { %3695 = vst [vmem:[%s716_s21 + $0x8] sm:$0xff] %v3693_v45  ;;  %v3692_v46 = vsel %vm3682_vm5, %v1683_v25, %v3975_v44  ;;  %v2642_v25 = vpop.permute.xlu1 %2641  ;;  %v3947_v44 = vsel %vm2807_vm10, 1.0, %v4574_v6 }
 0x3b9   : > { %3694 = vst [vmem:[%s716_s21] sm:$0xff] %v3692_v46  ;;  %v3952_v46 = vld [vmem:[%s5003_s1 + $0x8] sm:$0xf] }
 0x475   : > { %v5035_v48 = vpop.f32.mrb[10].mxu1 }
 0x476   : > { %v4277_v49 = vpop.f32.mrb[11].mxu1 }
 0x479   : > { %v2549_v13 = vpop.f32.mrb[12].mxu1 }
 0x47a   : > { %v2073_v51 = vpop.f32.mrb[16].mxu0  ;;  %v4324_v14 = vpop.f32.mrb[13].mxu1 }
 0x47b   : > { %v2230_v52 = vrot.slane %v2073_v51, %v5038_v50  ;;  %v4294_v53 = vpop.f32.mrb[17].mxu0 }
 0x47d   : > { %v2231_v54 = vadd.f32 %v2230_v52, %v5035_v48 }
 0x47e   : > { %v2146_v55 = vpop.f32.mrb[18].mxu0 }
 0x47f   : > { %v4299_v56 = vpop.f32.mrb[19].mxu0  ;;  %v2404_v17 = vrot.slane %v2146_v55, %v5038_v50 }
 0x482   : > { %v2223_v57 = vpop.f32.mrb[20].mxu0 }
 0x483   : > { %v2232_v58 = vadd.f32 %v2231_v54, %v2223_v57  ;;  %v4304_v61 = vpop.f32.mrb[21].mxu0 }
 0x485   : > { %vm2233_vm7 = vcmp.gt.f32.partialorder %v2232_v58, 0.0  ;;  %v2234_v3 = vmul.f32 0.2, %v2232_v58 }
 0x487   : > { %v2235_v1 = vsel %vm2233_vm7, %v2232_v58, %v2234_v3 }
 0x488   : > { %v2242_v2 = vadd.f32 %v2240_v62, %v2235_v1 }
 0x48a   : > { %v2243_v4 = vsub.f32 -inf, %v2242_v2  ;;  %v2246_v5 = vsub.f32 %v2242_v2, %v2242_v2 }
 0x48c   : > { %v2244_v63 = vmul.f32 1.442695, %v2243_v4  ;;  %v2247_v7 = vmul.f32 1.442695, %v2246_v5 }
 0x48e   : > { %4544 = vpow2.f32 %v2244_v63 }
 0x48f   : > { %4546 = vpow2.f32 %v2247_v7  ;;  %v3042_v7 = vpop.permute.xlu0 %3041 }
 0x498   : > { %v4545_v8 = vpop.eup %4544 }
 0x499   : > { %4308 = vmatmul.mubr.msk.f32.vlgmr.msra.gmra.mrb[22].mxu0 %vm1423_vm0, %v4545_v8  ;;  %v2249_v9 = vmul.f32 0.0, %v4545_v8  ;;  %v4547_v10 = vpop.eup %4546 }
 0x49a   : > { %4311 = vmatpush3.msk.msra.mxu0 %vm1430_vm9, %v5022_v47  ;;  %4312 = vmatprep.mubr.msk.f32.mxu0 %vm4575_vm4, %v4574_v6 }
 0x49b   : > { %4315 = vmatprep.subr.mxu0 %v4574_v6  ;;  %v2250_v11 = vadd.f32 %v4547_v10, %v2249_v9 }
 0x49d   : > { %4313 = vmatmul.mubr.msk.f32.vlgmr.msra.gmra.mrb[24].mxu0 %vm1423_vm0, %v4547_v10 }
 0x49e   : > { %4316 = vmatpush3.msk.msra.mxu0 %vm1430_vm9, %v4986_v26  ;;  %4317 = vmatprep.mubr.msk.f32.mxu0 %vm4575_vm4, %v4574_v6 }
 0x49f   : > { %4325 = vmatprep.subr.mxu0 %v4574_v6 }
 0x4a1   : > { %4318 = vmatmul.mubr.msk.f32.vlgmr.msra.gmra.mrb[26].mxu0 %vm1423_vm0, %v3934_v28  ;;  %v2804_v28 = vrot.slane %v2549_v13, %v5038_v50 }
 0x4a2   : > { %4326 = vmatpush3.msk.msra.mxu0 %vm1430_vm9, %v4996_v38  ;;  %4327 = vmatprep.mubr.msk.f32.mxu0 %vm4575_vm4, %v4574_v6 }
 0x4a3   : > { %4335 = vmatprep.subr.mxu0 %v4574_v6 }
 0x4a5   : > { %4328 = vmatmul.mubr.msk.f32.vlgmr.msra.gmra.mrb[28].mxu0 %vm1423_vm0, %v3939_v12 }
 0x4a6   : > { %4336 = vmatpush3.msk.msra.mxu0 %vm1430_vm9, %v5022_v47  ;;  %4337 = vmatprep.mubr.msk.f32.mxu0 %vm4575_vm4, %v4574_v6 }
 0x4a7   : > { %4345 = vmatprep.subr.mxu0 %v4574_v6 }
 0x56c   : > { %v2323_v15 = vpop.f32.mrb[22].mxu0 }
 0x56d   : > { %v4309_v16 = vpop.f32.mrb[23].mxu0  ;;  %v2327_v19 = vmul.f32 0.0, %v2323_v15 }
 0x570   : > { %v2397_v18 = vpop.f32.mrb[24].mxu0 }
 0x571   : > { %v2405_v20 = vmul.f32 %v2404_v17, %v2397_v18  ;;  %v4314_v21 = vpop.f32.mrb[25].mxu0  ;;  %v3960_v18 = vsel %vm3207_vm12, 1.0, %v4574_v6 }
 0x573   : > { %v2406_v22 = vadd.f32 %v2405_v20, %v2327_v19 }
 0x574   : > { %v2479_v23 = vpop.f32.mrb[26].mxu0 }
 0x575   : > { %v2631_v29 = vrot.slane %v2479_v23, %v5038_v50  ;;  %v4319_v31 = vpop.f32.mrb[27].mxu0 }
 0x577   : > { %v2632_v32 = vadd.f32 %v2631_v29, %v5035_v48 }
 0x578   : > { %v2624_v33 = vpop.f32.mrb[28].mxu0 }
 0x579   : > { %v2633_v59 = vadd.f32 %v2632_v32, %v2624_v33  ;;  %v4329_v60 = vpop.f32.mrb[29].mxu0 }
 0x57b   : > { %vm2634_vm8 = vcmp.gt.f32.partialorder %v2633_v59, 0.0  ;;  %v2635_v24 = vmul.f32 0.2, %v2633_v59 }
 0x57d   : > { %v2636_v34 = vsel %vm2634_vm8, %v2633_v59, %v2635_v24 }
 0x57e   : > { %v2644_v35 = vadd.f32 %v2642_v25, %v2636_v34 }
 0x580   : > { %v2645_v27 = vmax.f32 %v2242_v2, %v2644_v35 }
 0x582   : > { %v2646_v36 = vsub.f32 %v2242_v2, %v2645_v27  ;;  %v2649_v37 = vsub.f32 %v2644_v35, %v2645_v27 }
 0x584   : > { %v2647_v39 = vmul.f32 1.442695, %v2646_v36  ;;  %v2650_v40 = vmul.f32 1.442695, %v2649_v37  ;;  %v3442_v36 = vpop.permute.xlu1 %3441 }
 0x586   : > { %4548 = vpow2.f32 %v2647_v39 }
 0x587   : > { %4550 = vpow2.f32 %v2650_v40 }
 0x590   : > { %v4549_v41 = vpop.eup %4548 }
 0x591   : > { %v4551_v42 = vpop.eup %4550  ;;  %v2652_v43 = vmul.f32 %v4549_v41, %v2250_v11  ;;  %4333 = vmatmul.mubr.msk.f32.vlgmr.msra.gmra.mrb[14].mxu1 %vm1423_vm0, %v4549_v41 }
 0x592   : > { %4338 = vmatmul.mubr.msk.f32.vlgmr.msra.gmra.mrb[30].mxu0 %vm1423_vm0, %v4551_v42  ;;  %4341 = vmatpush3.msk.msra.mxu1 %vm1430_vm9, %v4986_v26 }
 0x593   : > { %v2653_v45 = vadd.f32 %v4551_v42, %v2652_v43  ;;  %4346 = vmatpush3.msk.msra.mxu0 %vm1430_vm9, %v4974_v30  ;;  %4342 = vmatprep.mubr.msk.f32.mxu1 %vm4575_vm4, %v4574_v6 }
 0x594   : > { %4350 = vmatprep.subr.mxu1 %v4574_v6  ;;  %4347 = vmatprep.mubr.msk.f32.mxu0 %vm4575_vm4, %v4574_v6 }
 0x595   : > { %4343 = vmatmul.mubr.msk.f32.vlgmr.msra.gmra.mrb[16].mxu1 %vm1423_vm0, %v3947_v44  ;;  %4355 = vmatprep.subr.mxu0 %v4574_v6 }
 0x596   : > { %4351 = vmatpush3.msk.msra.mxu1 %vm1430_vm9, %v4996_v38  ;;  %4352 = vmatprep.mubr.msk.f32.mxu1 %vm4575_vm4, %v4574_v6 }
 0x597   : > { %4348 = vmatmul.mubr.msk.f32.vlgmr.msra.gmra.mrb[32].mxu0 %vm1423_vm0, %v3947_v44  ;;  %4360 = vmatprep.subr.mxu1 %v4574_v6 }
 0x598   : > { %4356 = vmatpush3.msk.msra.mxu0 %vm1430_vm9, %v5022_v47  ;;  %4357 = vmatprep.mubr.msk.f32.mxu0 %vm4575_vm4, %v4574_v6 }
 0x599   : > { %4353 = vmatmul.mubr.msk.f32.vlgmr.msra.gmra.mrb[18].mxu1 %vm1423_vm0, %v3952_v46  ;;  %4365 = vmatprep.subr.mxu0 %v4574_v6 }
 0x59a   : > { %4361 = vmatpush3.msk.msra.mxu1 %vm1430_vm9, %v5022_v47  ;;  %4362 = vmatprep.mubr.msk.f32.mxu1 %vm4575_vm4, %v4574_v6 }
 0x59b   : > { %4370 = vmatprep.subr.mxu1 %v4574_v6 }
 0x664   : > { %v2723_v49 = vpop.f32.mrb[14].mxu1 }
 0x665   : > { %v2727_v51 = vmul.f32 %v2723_v49, %v2406_v22  ;;  %v2797_v52 = vpop.f32.mrb[30].mxu0  ;;  %v4334_v53 = vpop.f32.mrb[15].mxu1 }
 0x666   : > { %v2805_v54 = vmul.f32 %v2804_v28, %v2797_v52  ;;  %v4339_v55 = vpop.f32.mrb[31].mxu0 }
 0x668   : > { %v2879_v56 = vpop.f32.mrb[16].mxu1  ;;  %v2806_v57 = vadd.f32 %v2805_v54, %v2727_v51 }
 0x669   : > { %v3031_v58 = vrot.slane %v2879_v56, %v5038_v50  ;;  %v4344_v61 = vpop.f32.mrb[17].mxu1 }
 0x66a   : > { %v2949_v3 = vpop.f32.mrb[32].mxu0 }
 0x66b   : > { %v3032_v62 = vadd.f32 %v3031_v58, %v5035_v48  ;;  %v4349_v1 = vpop.f32.mrb[33].mxu0 }
 0x66c   : > { %v3024_v2 = vpop.f32.mrb[18].mxu1 }
 0x66d   : > { %v3033_v4 = vadd.f32 %v3032_v62, %v3024_v2  ;;  %v4354_v5 = vpop.f32.mrb[19].mxu1 }
 0x66f   : > { %vm3034_vm11 = vcmp.gt.f32.partialorder %v3033_v4, 0.0  ;;  %v3035_v63 = vmul.f32 0.2, %v3033_v4 }
 0x671   : > { %v3036_v8 = vsel %vm3034_vm11, %v3033_v4, %v3035_v63 }
 0x672   : > { %v3044_v9 = vadd.f32 %v3042_v7, %v3036_v8 }
 0x674   : > { %v3045_v10 = vmax.f32 %v2645_v27, %v3044_v9 }
 0x676   : > { %v3046_v11 = vsub.f32 %v2645_v27, %v3045_v10  ;;  %v3049_v12 = vsub.f32 %v3044_v9, %v3045_v10 }
 0x678   : > { %v3047_v13 = vmul.f32 1.442695, %v3046_v11  ;;  %v3050_v14 = vmul.f32 1.442695, %v3049_v12 }
 0x67a   : > { %4552 = vpow2.f32 %v3047_v13 }
 0x67b   : > { %4554 = vpow2.f32 %v3050_v14 }
 0x684   : > { %v4553_v15 = vpop.eup %4552 }
 0x685   : > { %v4555_v16 = vpop.eup %4554  ;;  %v3052_v17 = vmul.f32 %v4553_v15, %v2653_v45  ;;  %4358 = vmatmul.mubr.msk.f32.vlgmr.msra.gmra.mrb[34].mxu0 %vm1423_vm0, %v4553_v15 }
 0x686   : > { %4363 = vmatmul.mubr.msk.f32.vlgmr.msra.gmra.mrb[20].mxu1 %vm1423_vm0, %v4555_v16  ;;  %4366 = vmatpush3.msk.msra.mxu0 %vm1430_vm9, %v4986_v26 }
 0x687   : > { %v3053_v19 = vadd.f32 %v4555_v16, %v3052_v17  ;;  %4371 = vmatpush3.msk.msra.mxu1 %vm1430_vm9, %v4974_v30  ;;  %4367 = vmatprep.mubr.msk.f32.mxu0 %vm4575_vm4, %v4574_v6  ;;  %v3204_v30 = vrot.slane %v2949_v3, %v5038_v50 }
 0x688   : > { %4375 = vmatprep.subr.mxu0 %v4574_v6  ;;  %4372 = vmatprep.mubr.msk.f32.mxu1 %vm4575_vm4, %v4574_v6 }
 0x689   : > { %4368 = vmatmul.mubr.msk.f32.vlgmr.msra.gmra.mrb[36].mxu0 %vm1423_vm0, %v3960_v18  ;;  %4380 = vmatprep.subr.mxu1 %v4574_v6 }
 0x68a   : > { %4376 = vmatpush3.msk.msra.mxu0 %vm1430_vm9, %v4996_v38  ;;  %4377 = vmatprep.mubr.msk.f32.mxu0 %vm4575_vm4, %v4574_v6 }
 0x68b   : > { %4373 = vmatmul.mubr.msk.f32.vlgmr.msra.gmra.mrb[22].mxu1 %vm1423_vm0, %v3960_v18  ;;  %4385 = vmatprep.subr.mxu0 %v4574_v6 }
 0x68c   : > { %4381 = vmatpush3.msk.msra.mxu1 %vm1430_vm9, %v5022_v47  ;;  %4382 = vmatprep.mubr.msk.f32.mxu1 %vm4575_vm4, %v4574_v6 }
 0x68d   : > { %4378 = vmatmul.mubr.msk.f32.vlgmr.msra.gmra.mrb[38].mxu0 %vm1423_vm0, %v3965_v0  ;;  %4390 = vmatprep.subr.mxu1 %v4574_v6 }
 0x68e   : > { %4386 = vmatpush3.msk.msra.mxu0 %vm1430_vm9, %v5022_v47  ;;  %4387 = vmatprep.mubr.msk.f32.mxu0 %vm4575_vm4, %v4574_v6 }
 0x758   : > { %v3123_v26 = vpop.f32.mrb[34].mxu0 }
 0x759   : > { %v3127_v38 = vmul.f32 %v3123_v26, %v2806_v57  ;;  %v3197_v20 = vpop.f32.mrb[20].mxu1  ;;  %v4359_v21 = vpop.f32.mrb[35].mxu0 }
 0x75a   : > { %v3205_v22 = vmul.f32 %v3204_v30, %v3197_v20  ;;  %v4364_v23 = vpop.f32.mrb[21].mxu1 }
 0x75c   : > { %v3279_v29 = vpop.f32.mrb[36].mxu0  ;;  %v3206_v31 = vadd.f32 %v3205_v22, %v3127_v38 }
 0x75d   : > { %v3431_v32 = vrot.slane %v3279_v29, %v5038_v50  ;;  %v4369_v33 = vpop.f32.mrb[37].mxu0 }
 0x75e   : > { %v3349_v59 = vpop.f32.mrb[22].mxu1 }
 0x75f   : > { %v3432_v60 = vadd.f32 %v3431_v32, %v5035_v48  ;;  %v4374_v24 = vpop.f32.mrb[23].mxu1  ;;  %v3604_v51 = vrot.slane %v3349_v59, %v5038_v50 }
 0x760   : > { %v3424_v25 = vpop.f32.mrb[38].mxu0 }
 0x761   : > { %v3433_v34 = vadd.f32 %v3432_v60, %v3424_v25  ;;  %v4379_v35 = vpop.f32.mrb[39].mxu0 }
 0x763   : > { %vm3434_vm13 = vcmp.gt.f32.partialorder %v3433_v34, 0.0  ;;  %v3435_v27 = vmul.f32 0.2, %v3433_v34 }
 0x765   : > { %v3436_v37 = vsel %vm3434_vm13, %v3433_v34, %v3435_v27 }
 0x766   : > { %v3444_v39 = vadd.f32 %v3442_v36, %v3436_v37 }
 0x768   : > { %v3445_v40 = vmax.f32 %v3045_v10, %v3444_v39 }
 0x76a   : > { %v3446_v41 = vsub.f32 %v3045_v10, %v3445_v40  ;;  %v3449_v42 = vsub.f32 %v3444_v39, %v3445_v40 }
 0x76c   : > { %v3447_v43 = vmul.f32 1.442695, %v3446_v41  ;;  %v3450_v44 = vmul.f32 1.442695, %v3449_v42 }
 0x76e   : > { %4556 = vpow2.f32 %v3447_v43 }
 0x76f   : > { %4558 = vpow2.f32 %v3450_v44 }
 0x778   : > { %v4557_v45 = vpop.eup %4556 }
 0x779   : > { %v4559_v46 = vpop.eup %4558  ;;  %v3452_v28 = vmul.f32 %v4557_v45, %v3053_v19  ;;  %4383 = vmatmul.mubr.msk.f32.vlgmr.msra.gmra.mrb[24].mxu1 %vm1423_vm0, %v4557_v45 }
 0x77a   : > { %4388 = vmatmul.mubr.msk.f32.vlgmr.msra.gmra.mrb[40].mxu0 %vm1423_vm0, %v4559_v46  ;;  %4391 = vmatpush3.msk.msra.mxu1 %vm1430_vm9, %v5022_v47 }
 0x77b   : > { %v3453_v48 = vadd.f32 %v4559_v46, %v3452_v28  ;;  %4392 = vmatprep.mubr.msk.f32.mxu1 %vm4575_vm4, %v4574_v6 }
 0x77d   : > { %4560 = vrcp.f32 %v3453_v48 }
 0x787   : > { %v4561_v49 = vpop.eup %4560 }
 0x788   : > { %4393 = vmatmul.mubr.msk.f32.vlgmr.msra.gmra.mrb[26].mxu1 %vm1423_vm0, %v4561_v49 }
 0x84c   : > { %v3523_v52 = vpop.f32.mrb[24].mxu1 }
 0x84d   : > { %v3527_v53 = vmul.f32 %v3523_v52, %v3206_v31  ;;  %v3597_v54 = vpop.f32.mrb[40].mxu0  ;;  %v4384_v55 = vpop.f32.mrb[25].mxu1 }
 0x84e   : > { %v3605_v56 = vmul.f32 %v3604_v51, %v3597_v54  ;;  %v4389_v57 = vpop.f32.mrb[41].mxu0 }
 0x850   : > { %v3606_v58 = vadd.f32 %v3605_v56, %v3527_v53 }
 0x85b   : > { %v3677_v61 = vpop.f32.mrb[26].mxu1 }
 0x85c   : > { %v3681_v47 = vmul.f32 %v3677_v61, %v3606_v58  ;;  %v4394_v3 = vpop.f32.mrb[27].mxu1 }
 0x85e   : > { %v3697_v62 = vmin.f32 %v3681_v47, 0.0  ;;  %vm3696_vm9 = vcmp.gt.f32.partialorder %v3681_v47, 0.0 }
 0x860   : > { %v3698_v1 = vmul.f32 1.442695, %v3697_v62 }
 0x862   : > { %4562 = vpow2.f32 %v3698_v1 }
 0x86c   : > { %v4563_v6 = vpop.eup %4562 }
 0x86d   : > { %v3977_v2 = vadd.f32 -1.0, %v4563_v6 }
 0x86f   : > { %v3701_v50 = vsel %vm3696_vm9, %v3681_v47, %v3977_v2 }
 0x870   : > { %3702 = vst [vmem:[%s720_s25] sm:$0xf] %v3701_v50 }
 0x871 PF: > { %s29_s27 = sadd.s32 1, %s4570_s27  }
 0x872   : > { %p26_p4 = scmp.ge.s32.totalorder %s29_s27, 4  }
 0x874   :  { %28 = sbr.rel (!%p26_p4) target bundleno = 4 (0x4), region = 157 }

// kernel: o_m_attention_forward.3
= control target key start
LH: loop header
LB: loop body
LE: loop exit
PB: predicated region body
PF: predicated region fallthrough
CT: control target
= control target key end

     0   :  { %s6242_s0 = inlined_call_operand.vmem [shape: f32[2,16,128], index: 0, kind: input, shape index: {}]   ;;  %s6243_s1 = inlined_call_operand.vmem [shape: f32[2,16,1], index: 1, kind: input, shape index: {}]   ;;  %s6244_s2 = inlined_call_operand.vmem [shape: f32[2,16,1], index: 2, kind: input, shape index: {}]   ;;  %s6245_s3 = inlined_call_operand.vmem [shape: f32[2,16,1], index: 3, kind: input, shape index: {}]   ;;  %s6246_s4 = inlined_call_operand.vmem [shape: f32[2,4,128], index: 4, kind: input, shape index: {}]   ;;  %s6247_s5 = inlined_call_operand.vmem [shape: f32[2,4,4,1], index: 5, kind: input, shape index: {}]   ;;  %s6248_s6 = inlined_call_operand.vmem [shape: f32[2,4,128], index: 6, kind: input, shape index: {}]   ;;  %s6249_s7 = inlined_call_operand.vmem [shape: f32[2,4,4,4], index: 7, kind: input, shape index: {}]   ;;  %s6250_s8 = inlined_call_operand.vmem [shape: f32[128,32], index: 8, kind: input, shape index: {}]   ;;  %s6251_s9 = inlined_call_operand.vmem [shape: f32[32,4], index: 9, kind: input, shape index: {}]   ;;  %s6252_s10 = inlined_call_operand.vmem [shape: f32[32,4], index: 10, kind: input, shape index: {}]   ;;  %s6253_s11 = inlined_call_operand.vmem [shape: f32[4,32], index: 11, kind: input, shape index: {}, may-alias: {11,16}]   ;;  %s6254_s12 = inlined_call_operand.vmem [shape: f32[128,32], index: 12, kind: input, shape index: {}]   ;;  %s6255_s13 = inlined_call_operand.vmem [shape: f32[32,4], index: 13, kind: input, shape index: {}]   ;;  %s6256_s14 = inlined_call_operand.vmem [shape: f32[128,4], index: 14, kind: input, shape index: {}]   ;;  %s6257_s15 = inlined_call_operand.vmem [shape: f32[128,4], index: 15, kind: input, shape index: {}]   ;;  %s6258_s16 = inlined_call_operand.vmem [shape: f32[4,32], index: 16, kind: input, shape index: {}, may-alias: {11,16}]   ;;  %s6259_s17 = inlined_call_operand.vmem [shape: f32[32,8], index: 17, kind: input, shape index: {}, may-alias: {17,18}]   ;;  %s6260_s18 = inlined_call_operand.vmem [shape: f32[32,8], index: 18, kind: input, shape index: {}, may-alias: {17,18}]   ;;  %s6261_s19 = inlined_call_operand.vmem [shape: f32[2,16,8], index: 19, kind: output, shape index: {0}]   ;;  %s6262_s20 = inlined_call_operand.hbm [shape: f32[2,4,8], index: 20, kind: output, shape index: {1}]   ;;  %s6263_s21 = inlined_call_operand.hbm [shape: f32[2,1,8], index: 21, kind: output, shape index: {2}]   ;;  %s6264_s22 = inlined_call_operand.hbm [shape: f32[2,1,8], index: 22, kind: output, shape index: {3}]  }
   0x1   :  { %6276 = sst [smem:[#allocation15_spill]] %s6242_s0 }
   0x2   :  { %6277 = sst [smem:[#allocation16_spill]] %s6243_s1 }
   0x3   :  { %6278 = sst [smem:[#allocation17_spill]] %s6244_s2 }
   0x4   :  { %6279 = sst [smem:[#allocation18_spill]] %s6245_s3 }
   0x5   :  { %6280 = sst [smem:[#allocation19_spill]] %s6246_s4 }
   0x6   :  { %6281 = sst [smem:[#allocation20_spill]] %s6247_s5 }
   0x7   :  { %6282 = sst [smem:[#allocation21_spill]] %s6248_s6 }
   0x8   :  { %6283 = sst [smem:[#allocation22_spill]] %s6249_s7 }
   0x9   :  { %6284 = sst [smem:[#allocation23_spill]] %s6250_s8 }
   0xa   :  { %6285 = sst [smem:[#allocation24_spill]] %s6262_s20 }
   0xb   :  { %6286 = sst [smem:[#allocation25_spill]] %s6264_s22 }
   0xc   :  { %28 = vsyncpa [#allocation3], 0 }
   0xd   :  { %30 = vsyncpa [#allocation3 + $0x1], 0 }
   0xe   :  { %31 = vsyncpa [#allocation5], 0 }
   0xf   :  { %33 = vsyncpa [#allocation5 + $0x1], 0  ;;  %s5469_s3 = smov 0   ;;  %s5471_s28 = smov 0  }
  0x10   :  { %s5473_s29 = smov 0   ;;  %s5475_s30 = smov 0  }
  0x11 LB: > { %6287 = sst [smem:[#allocation9_spill]] %s5333_s3  ;;  %s5490_s4 = sadd.s32 4294967295, %s5345_s30   ;;  %s5345_s30 = sphi %s5475_s30, %s6311_s30   ;;  %s5341_s29 = sphi %s5473_s29, %s6313_s29   ;;  %s5337_s28 = sphi %s5471_s28, %s6315_s28   ;;  %s5333_s3 = sphi %s5469_s3, %s6314_s3  }
  0x12   : > { %6288 = sst [smem:[#allocation10_spill]] %s5341_s29  ;;  %s6265_s0 = sadd.s32 4294967294, %s5345_s30  }
  0x13   : > { %6289 = sst [smem:[#allocation11_spill]] %s5345_s30  ;;  %s5494_s23 = sadd.s32 1, %s5345_s30  }
  0x14   : > { %6290 = sst [smem:[#allocation12_spill]] %s5494_s23  ;;  %s511_s1 = sadd.s32 1, %s5341_s29 }
  0x15   : > { %s508_s5 = ssub.s32 %s5345_s30, %s5494_s23  ;;  %p521_p0 = scmp.ne.s32.totalorder %s5341_s29, %s5337_s28 }
  0x16   : > { %p509_p1 = scmp.eq.s32.totalorder %s508_s5, 0  ;;  %p522_p2 = scmp.eq.s32.totalorder %s5490_s4, 1 }
  0x17   : > { %p527_p3 = scmp.ne.s32.totalorder %s5337_s28, %s5333_s3  ;;  %p528_p4 = scmp.eq.s32.totalorder %s6265_s0, 1 }
  0x18   : > { %s5507_s24 = scalar_select %p509_p1, %s5341_s29, %s511_s1  }
  0x19   : > { %p5509_p5 = por %p522_p2, %p521_p0  ;;  %p5513_p6 = por %p528_p4, %p527_p3 }
  0x1a   : > { %6291 = sst [smem:[#allocation13_spill]] %s5507_s24  ;;  %p4343_p7 = scmp.ge.s32.totalorder %s5345_s30, 1 }
  0x1b   : > { %s6293_s25 = scalar_select %p5513_p6, 1, 0 }
  0x1c   : > { %p693_p8 = scmp.lt.s32.totalorder %s5345_s30, 3 }
  0x1d   : > { %6294 = sst [smem:[#allocation14_spill]] %s6293_s25 }
  0x1e   : > { %p694_p9 = pnand %p4343_p7, %p693_p8 }
  0x1f   : > { %s6295_s8 = sld [smem:[#allocation23_spill]] (!%p694_p9)  ;;  %p801_p10 = scmp.lt.s32.totalorder (!%p694_p9), %s5490_s4, 1  ;;  %v937_v10 = vld [vmem:[%s6251_s9] sm:$0xff] (!%p694_p9)  ;;  %v938_v11 = vld [vmem:[%s6251_s9 + $0x8] sm:$0xff] (!%p694_p9)  ;;  %v939_v15 = vld [vmem:[%s6251_s9 + $0x10] sm:$0xff] (!%p694_p9)  ;;  %v5347_v35 = vmov (!%p694_p9), 0   ;;  %v1102_v40 = vlaneseq (!%p694_p9) }
  0x20   : > { %697 = sbr.rel (%p694_p9) target bundleno = 2890 (0xb4a), region = 96  ;;  %s6296_s5 = sld [smem:[#allocation15_spill]] (!%p694_p9)  ;;  %v5000_v14 = vpack.c.bf16 (!%p694_p9), %v938_v11, %v937_v10  ;;  %v940_v16 = vld [vmem:[%s6251_s9 + $0x18] sm:$0xff] (!%p694_p9)  ;;  %v1023_v32 = vld [vmem:[%s6252_s10] sm:$0xff] (!%p694_p9)  ;;  %v1024_v33 = vld [vmem:[%s6252_s10 + $0x8] sm:$0xff] (!%p694_p9)  ;;  %5178 = vset.pattern.permute.xlu1 (!%p694_p9), %v5347_v35  ;;  %5177 = vset.pattern.permute.xlu0 (!%p694_p9), %v5347_v35  ;;  %vm941_vm0 = vcmask (!%p694_p9), 261120  }
  0x21   : > { %v5004_v17 = vpack.c.bf16 (!%p694_p9), %v940_v16, %v939_v15  ;;  %v5008_v34 = vpack.c.bf16 (!%p694_p9), %v1024_v33, %v1023_v32  ;;  %s6297_s3 = sld [smem:[#allocation16_spill]] (!%p694_p9)  ;;  %v1025_v41 = vld [vmem:[%s6252_s10 + $0x10] sm:$0xff] (!%p694_p9)  ;;  %v1026_v42 = vld [vmem:[%s6252_s10 + $0x18] sm:$0xff] (!%p694_p9)  ;;  %v5614_v43 = vand.u32 (!%p694_p9), 127, %v1102_v40  ;;  %v5620_v47 = vshrl.u32 (!%p694_p9), %v1102_v40, 7  ;;  %s6299_s23 = sld [smem:[#allocation18_spill]] (!%p694_p9) }
  0x22   : > { %5001 = vmatprep.subr.bf16.mxu1 (!%p694_p9), %v5000_v14  ;;  %v5012_v46 = vpack.c.bf16 (!%p694_p9), %v1026_v42, %v1025_v41  ;;  %v5348_v51 = vmov (!%p694_p9), 0.0   ;;  %vm1122_vm2 = vcmask (!%p694_p9), 130048   ;;  %s6300_s22 = sld [smem:[#allocation20_spill]] (!%p694_p9)  ;;  %v5669_v11 = vld [vmem:[%s6253_s11] sm:$0xf] (!%p694_p9)  ;;  %vm1539_vm6 = vcmask (!%p694_p9), 1043456  }
  0x23   : > { %5003 = vmatpush3.bf16.msra.mxu1 (!%p694_p9), %v5000_v14  ;;  %v1107_v49 = vadd.s32 (!%p694_p9), 1, %v5614_v43  ;;  %v1104_v50 = vadd.s32 (!%p694_p9), 8, %v5620_v47  ;;  %v1114_v54 = vadd.s32 (!%p694_p9), 1, %v5620_v47  ;;  %vm1532_vm13 = vcmask (!%p694_p9), 31744   ;;  %s6302_s24 = sld [smem:[#allocation21_spill]] (!%p694_p9)  ;;  %s6303_s7 = sld [smem:[#allocation22_spill]] (!%p694_p9) }
  0x24   : > { %5005 = vmatprep.subr.bf16.mxu1 (!%p694_p9), %v5004_v17  ;;  %vm5350_vm14 = vmmov (!%p694_p9), 0   ;;  %vm2132_vm15 = vcmp.eq.s32.totalorder (!%p694_p9), %v5614_v43, 0 }
  0x25   : > { %v846_v0 = vld [vmem:[%s6295_s8] sm:$0xff] (!%p694_p9)  ;;  %v847_v1 = vld [vmem:[%s6295_s8 + $0x8] sm:$0xff] (!%p694_p9)  ;;  %v848_v2 = vld [vmem:[%s6295_s8 + $0x10] sm:$0xff] (!%p694_p9)  ;;  %vm1108_vm1 = vcmp.eq.s32.totalorder (!%p694_p9), %v5620_v47, %v1107_v49  ;;  %vm1109_vm3 = vcmp.eq.s32.totalorder (!%p694_p9), %v1104_v50, %v1107_v49  ;;  %v1115_v55 = vadd.s32 (!%p694_p9), 1, %v1104_v50  ;;  %vm1116_vm4 = vcmp.eq.s32.totalorder (!%p694_p9), %v5614_v43, %v1114_v54 }
  0x26   : > { %v4968_v3 = vpack.c.bf16 (!%p694_p9), %v847_v1, %v846_v0  ;;  %v849_v4 = vld [vmem:[%s6295_s8 + $0x18] sm:$0xff] (!%p694_p9)  ;;  %v850_v6 = vld [vmem:[%s6295_s8 + $0x20] sm:$0xff] (!%p694_p9)  ;;  %v851_v7 = vld [vmem:[%s6295_s8 + $0x28] sm:$0xff] (!%p694_p9)  ;;  %v4365_v52 = vsel (!%p694_p9), %vm1108_vm1, 1.0, %v5348_v51  ;;  %v4366_v53 = vsel (!%p694_p9), %vm1109_vm3, 1.0, %v5348_v51  ;;  %v4367_v56 = vsel (!%p694_p9), %vm1116_vm4, 1.0, %v5348_v51 }
  0x27   : > { %v4972_v5 = vpack.c.bf16 %v849_v4, %v848_v2  ;;  %s5539_s27 = scalar_select %p801_p10, %s5490_s4, 1  ;;  %v4976_v8 = vpack.c.bf16 %v851_v7, %v850_v6  ;;  %v852_v9 = vld [vmem:[%s6295_s8 + $0x30] sm:$0xff]  ;;  %v853_v12 = vld [vmem:[%s6295_s8 + $0x38] sm:$0xff]  ;;  %v854_v19 = vld [vmem:[%s6295_s8 + $0x40] sm:$0xff]  ;;  %5007 = vmatpush3.bf16.msra.mxu1 %v5004_v17  ;;  %vm1117_vm5 = vcmp.eq.s32.totalorder %v5614_v43, %v1115_v55  ;;  %vm2540_vm1 = vcmp.eq.s32.totalorder %v5614_v43, 1 }
  0x28   : > { %4969 = vmatprep.subr.bf16.mxu0 %v4968_v3  ;;  %v4980_v18 = vpack.c.bf16 %v853_v12, %v852_v9  ;;  %v855_v20 = vld [vmem:[%s6295_s8 + $0x48] sm:$0xff]  ;;  %v856_v22 = vld [vmem:[%s6295_s8 + $0x50] sm:$0xff]  ;;  %v857_v23 = vld [vmem:[%s6295_s8 + $0x58] sm:$0xff]  ;;  %5009 = vmatprep.subr.bf16.mxu1 %v5008_v34  ;;  %v4368_v57 = vsel %vm1117_vm5, 1.0, %v5348_v51  ;;  %v5349_v12 = vmov 0.0|0.0   ;;  %vm2940_vm4 = vcmp.eq.s32.totalorder %v5614_v43, 2 }
  0x29   : > { %4971 = vmatpush3.bf16.msra.mxu0 %v4968_v3  ;;  %s5542_s0 = sshll.u32 %s5539_s27, 4  ;;  %v4984_v21 = vpack.c.bf16 %v855_v20, %v854_v19  ;;  %v4988_v24 = vpack.c.bf16 %v857_v23, %v856_v22  ;;  %v858_v25 = vld [vmem:[%s6295_s8 + $0x60] sm:$0xff]  ;;  %v859_v26 = vld [vmem:[%s6295_s8 + $0x68] sm:$0xff]  ;;  %v860_v28 = vld [vmem:[%s6295_s8 + $0x70] sm:$0xff] }
  0x2a   : > { %4973 = vmatprep.subr.bf16.mxu0 %v4972_v5  ;;  %s5551_s26 = scalar_lea.vmem %s6296_s5, %s5542_s0  ;;  %v4992_v27 = vpack.c.bf16 %v859_v26, %v858_v25  ;;  %v861_v29 = vld [vmem:[%s6295_s8 + $0x78] sm:$0xff]  ;;  %s810_s20 = scalar_lea.vmem %s6297_s3, %s5542_s0 }
  0x2b   : > { %v844_v13 = vld [vmem:[%s5551_s26] sm:$0xff]  ;;  %v4996_v30 = vpack.c.bf16 %v861_v29, %v860_v28  ;;  %v845_v31 = vld [vmem:[%s5551_s26 + $0x8] sm:$0xff]  ;;  %s6298_s5 = sld [smem:[#allocation17_spill]]  ;;  %s820_s1 = scalar_lea.vmem %s6299_s23, %s5542_s0 }
  0x2c   : > { %4657 = vmatprep.mubr.f32.mxu0 %v844_v13  ;;  %v1444_v36 = vld [vmem:[%s810_s20 + $0x8] sm:$0xff]  ;;  %v1443_v37 = vld [vmem:[%s810_s20] sm:$0xff]  ;;  %s829_s30 = scalar_lea.vmem %s6300_s22, %s5542_s0  ;;  %s6301_s22 = sld [smem:[#allocation19_spill]] }
  0x2d   : > { %4975 = vmatpush3.bf16.msra.mxu0 %v4972_v5  ;;  %1452 = vperm.xlu1 %5178, %v1444_v36   ;;  %v1487_v58 = vld [vmem:[%s820_s1] sm:$0xff]  ;;  %v1488_v59 = vld [vmem:[%s820_s1 + $0x8] sm:$0xff]  ;;  %s4353_s1 = sshll.u32 %s5539_s27, 2  ;;  %s4073_s20 = sand.u32 1, %s5490_s4  }
  0x2e   : > { %4977 = vmatprep.subr.bf16.mxu0 %v4976_v8  ;;  %1447 = vperm.xlu0 %5177, %v1443_v37   ;;  %v2369_v60 = vld [vmem:[%s829_s30] sm:$0xf]  ;;  %v4406_v61 = vld [vmem:[%s829_s30 + $0x4] sm:$0xf]  ;;  %v4419_v62 = vld [vmem:[%s829_s30 + $0x8] sm:$0xf]  ;;  %s833_s23 = scalar_lea.vmem %s6302_s24, %s4353_s1 }
  0x2f   : > { %v4432_v63 = vld [vmem:[%s829_s30 + $0xc] sm:$0xf]  ;;  %s6147_s2 = scalar_lea.sflag [#allocation5], %s4073_s20 }
  0x31   : > { %4979 = vmatpush3.bf16.msra.mxu0 %v4976_v8  ;;  %s815_s8 = scalar_lea.vmem %s6298_s5, %s5542_s0  ;;  %s5938_s5 = scalar_lea.vmem %s6303_s7, %s5542_s0 }
  0x32   : > { %4981 = vmatprep.subr.bf16.mxu0 %v4980_v18  ;;  %v1466_v38 = vld [vmem:[%s815_s8 + $0x8] sm:$0xff]  ;;  %v1465_v39 = vld [vmem:[%s815_s8] sm:$0xff]  ;;  %s824_s30 = scalar_lea.vmem %s6301_s22, %s4353_s1  ;;  %s6275_s22 = sshll.u32 %s5490_s4, 4 }
  0x33   : > { %1474 = vperm.xlu1 %5178, %v1466_v38   ;;  %1469 = vperm.xlu0 %5177, %v1465_v39   ;;  %s6145_s26 = scalar_lea.hbm %s6263_s21, %s6275_s22  ;;  %s5351_s8 = smov [#allocation4]  }
  0x34   : > { %s5227_s24 = sshll.u32 %s5351_s8, 4  ;;  %s5228_s24 = int_to_ptr.vmem [resolvable:$false] %s5227_s24 }
  0x35   : > { %4983 = vmatpush3.bf16.msra.mxu0 %v4980_v18 }
  0x36   : > { %4985 = vmatprep.subr.bf16.mxu0 %v4984_v21 }
  0x37   : > { %1491 = vperm.xlu0 %5177, %v1487_v58   ;;  %1496 = vperm.xlu1 %5178, %v1488_v59  }
  0x39   : > { %4987 = vmatpush3.bf16.msra.mxu0 %v4984_v21 }
  0x3a   : > { %4989 = vmatprep.subr.bf16.mxu0 %v4988_v24 }
  0x3b   : > { %2372 = vperm.xlu0 %5177, %v2369_v60   ;;  %2774 = vperm.xlu1 %5178, %v4406_v61  }
  0x3d   : > { %4991 = vmatpush3.bf16.msra.mxu0 %v4988_v24 }
  0x3e   : > { %4993 = vmatprep.subr.bf16.mxu0 %v4992_v27 }
  0x3f   : > { %3174 = vperm.xlu0 %5177, %v4419_v62   ;;  %3574 = vperm.xlu1 %5178, %v4432_v63  }
  0x41   : > { %4995 = vmatpush3.bf16.msra.mxu0 %v4992_v27 }
  0x42   : > { %4997 = vmatprep.subr.bf16.mxu0 %v4996_v30 }
  0x45   : > { %4999 = vmatpush3.bf16.msra.mxu0 %v4996_v30 }
  0x46   : > { %4710 = vmatprep.subr.msk.mxu0 %vm1539_vm6, %v5669_v11 }
  0x48   : > { %4658 = vmatmul.mubr.f32.vlgmr.msra.gmra.mrb[0].mxu0 %v845_v31 }
  0x49   : > { %4711 = vmatpush3.msk.msra.mxu0 %vm1539_vm6, %v5669_v11 }
  0x4a   : > { %4720 = vmatprep.subr.msk.mxu0 %vm1539_vm6, %v5669_v11 }
  0xac   : > { %v1453_v13 = vpop.permute.xlu1 %1452 }
  0xad   : > { %v1448_v14 = vpop.permute.xlu0 %1447 }
  0xb2   : > { %v1475_v21 = vpop.permute.xlu1 %1474  ;;  %v1470_v24 = vpop.permute.xlu0 %1469 }
  0xb6   : > { %v1497_v40 = vpop.permute.xlu1 %1496 }
 0x11b   : > { %v5616_v44 = vpop.f32.mrb[0].mxu0 }
 0x11c   : > { %v5618_v45 = vpop.f32.mrb[1].mxu0 }
 0x11d   : > { %v5016_v48 = vpack.c.bf16 %v5616_v44, %v5618_v45  ;;  %4668 = vmatprep.mubr.msk.f32.mxu1 %vm941_vm0, %v5618_v45 }
 0x11e   : > { %4669 = vmatmul.mubr.msk.f32.vlgmr.msra.gmra.mrb[0].mxu1 %vm941_vm0, %v5616_v44 }
 0x11f   : > { %5011 = vmatpush3.bf16.msra.mxu1 %v5008_v34  ;;  %4679 = vmatprep.mubr.msk.f32.mxu1 %vm941_vm0, %v5618_v45 }
 0x120   : > { %5013 = vmatprep.subr.bf16.mxu1 %v5012_v46 }
 0x123   : > { %5015 = vmatpush3.bf16.msra.mxu1 %v5012_v46  ;;  %v1492_v46 = vpop.permute.xlu0 %1491 }
 0x124   : > { %5017 = vmatprep.subr.bf16.mxu1 %v5016_v48 }
 0x126   : > { %4680 = vmatmul.mubr.msk.f32.vlgmr.msra.gmra.mrb[2].mxu1 %vm941_vm0, %v5616_v44 }
 0x127   : > { %5019 = vmatpush3.bf16.msra.mxu1 %v5016_v48  ;;  %4686 = vmatprep.mubr.msk.f32.mxu1 %vm1122_vm2, %v4365_v52 }
 0x128   : > { %5021 = vmatprep.subr.bf16.mxu1 %v5016_v48 }
 0x12a   : > { %4687 = vmatmul.mubr.msk.f32.vlgmr.msra.gmra.mrb[4].mxu1 %vm1122_vm2, %v4366_v53 }
 0x12b   : > { %5023 = vmatpush3.bf16.msra.mxu1 %v5016_v48  ;;  %4693 = vmatprep.mubr.msk.f32.mxu1 %vm1122_vm2, %v4367_v56 }
 0x12e   : > { %4694 = vmatmul.mubr.msk.f32.vlgmr.msra.gmra.mrb[6].mxu1 %vm1122_vm2, %v4368_v57 }
 0x12f   : > { %4700 = vmatprep.mubr.msk.f32.mxu1 %vm1122_vm2, %v4365_v52 }
 0x1f1   : > { %v4670_v0 = vpop.f32.mrb[0].mxu1 }
 0x1f2   : > { %v1014_v1 = vpop.f32.mrb[1].mxu1 }
 0x1f9   : > { %v4681_v2 = vpop.f32.mrb[2].mxu1 }
 0x1fa   : > { %v1458_v3 = vadd.f32 %v4681_v2, %v4670_v0  ;;  %v1093_v4 = vpop.f32.mrb[3].mxu1 }
 0x1fb   : > { %v5024_v5 = vpack.c.bf16 %v4681_v2, %v1093_v4  ;;  %v1457_v6 = vadd.f32 %v1093_v4, %v1014_v1 }
 0x1fc   : > { %v1462_v15 = vmul.f32 0.2, %v1458_v3  ;;  %vm1460_vm7 = vcmp.gt.f32.partialorder %v1458_v3, 0.0 }
 0x1fd   : > { %5025 = vmatprep.subr.bf16.mxu1 %v5024_v5  ;;  %v5655_v7 = vpop.f32.mrb[4].mxu1  ;;  %v1461_v16 = vmul.f32 0.2, %v1457_v6  ;;  %vm1459_vm8 = vcmp.gt.f32.partialorder %v1457_v6, 0.0 }
 0x1fe   : > { %5027 = vmatpush3.bf16.msra.mxu1 %v5024_v5  ;;  %v5657_v8 = vpop.f32.mrb[5].mxu1  ;;  %v1464_v22 = vsel %vm1460_vm7, %v1458_v3, %v1462_v15  ;;  %vm3340_vm7 = vcmp.eq.s32.totalorder %v5614_v43, 3  ;;  %v4429_v43 = vld [vmem:[%s5938_s5 + $0xc] sm:$0xf] }
 0x1ff   : > { %5029 = vmatprep.subr.bf16.mxu1 %v5024_v5  ;;  %v1463_v25 = vsel %vm1459_vm8, %v1457_v6, %v1461_v16  ;;  %v1478_v31 = vadd.f32 %v1475_v21, %v1464_v22  ;;  %v1795_v21 = vld [vmem:[%s6254_s12] sm:$0xff]  ;;  %v1796_v22 = vld [vmem:[%s6254_s12 + $0x8] sm:$0xff] }
 0x200   : > { %v1477_v35 = vadd.f32 %v1470_v24, %v1463_v25 }
 0x201   : > { %4701 = vmatmul.mubr.msk.f32.vlgmr.msra.gmra.mrb[8].mxu1 %vm1122_vm2, %v4366_v53  ;;  %v5662_v9 = vpop.f32.mrb[6].mxu1 }
 0x202   : > { %5031 = vmatpush3.bf16.msra.mxu1 %v5024_v5  ;;  %4707 = vmatprep.mubr.msk.f32.mxu1 %vm1122_vm2, %v4367_v56  ;;  %v5664_v10 = vpop.f32.mrb[7].mxu1 }
 0x203   : > { %4715 = vmatprep.subr.msk.mxu1 %vm1539_vm6, %v5669_v11 }
 0x205   : > { %4708 = vmatmul.mubr.msk.f32.vlgmr.msra.gmra.mrb[10].mxu1 %vm1122_vm2, %v4368_v57 }
 0x206   : > { %4716 = vmatpush3.msk.msra.mxu1 %vm1539_vm6, %v5669_v11 }
 0x207   : > { %5032 = vmatprep.subr.bf16.mxu1 %v5349_v12 }
 0x2d4   : > { %v4702_v17 = vpop.f32.mrb[8].mxu1 }
 0x2d5   : > { %v1436_v18 = vadd.f32 %v4702_v17, %v4670_v0  ;;  %v1351_v19 = vpop.f32.mrb[9].mxu1 }
 0x2d6   : > { %v1435_v20 = vadd.f32 %v1351_v19, %v1014_v1 }
 0x2d7   : > { %vm1438_vm9 = vcmp.gt.f32.partialorder %v1436_v18, 0.0  ;;  %v1440_v23 = vmul.f32 0.2, %v1436_v18 }
 0x2d8   : > { %vm1437_vm10 = vcmp.gt.f32.partialorder %v1435_v20, 0.0  ;;  %v1439_v26 = vmul.f32 0.2, %v1435_v20  ;;  %v4709_v27 = vpop.f32.mrb[10].mxu1 }
 0x2d9   : > { %v1442_v28 = vsel %vm1438_vm9, %v1436_v18, %v1440_v23  ;;  %v1480_v29 = vadd.f32 %v4709_v27, %v4670_v0  ;;  %v1426_v30 = vpop.f32.mrb[11].mxu1  ;;  %v5033_v27 = vpack.c.bf16 %v1796_v22, %v1795_v21  ;;  %v2057_v21 = vld [vmem:[%s6257_s15 + $0x60] sm:$0xff]  ;;  %v2058_v22 = vld [vmem:[%s6257_s15 + $0x68] sm:$0xff]  ;;  %vm3995_vm9 = vcmask 64512  }
 0x2da   : > { %v1456_v32 = vadd.f32 %v1453_v13, %v1442_v28  ;;  %v1441_v33 = vsel %vm1437_vm10, %v1435_v20, %v1439_v26  ;;  %v1479_v34 = vadd.f32 %v1426_v30, %v1014_v1  ;;  %v1798_v30 = vld [vmem:[%s6254_s12 + $0x18] sm:$0xff] }
 0x2db   : > { %v1455_v36 = vadd.f32 %v1448_v14, %v1441_v33  ;;  %vm1482_vm11 = vcmp.gt.f32.partialorder %v1480_v29, 0.0  ;;  %v1484_v37 = vmul.f32 0.2, %v1480_v29  ;;  %v1800_v33 = vld [vmem:[%s6254_s12 + $0x28] sm:$0xff] }
 0x2dc   : > { %v1502_v38 = vmax.f32 %v1456_v32, %v1478_v31  ;;  %vm1481_vm12 = vcmp.gt.f32.partialorder %v1479_v34, 0.0  ;;  %v1483_v39 = vmul.f32 0.2, %v1479_v34 }
 0x2dd   : > { %v1501_v41 = vmax.f32 %v1455_v36, %v1477_v35  ;;  %v1486_v42 = vsel %vm1482_vm11, %v1480_v29, %v1484_v37  ;;  %v1797_v29 = vld [vmem:[%s6254_s12 + $0x10] sm:$0xff]  ;;  %v1803_v37 = vld [vmem:[%s6254_s12 + $0x40] sm:$0xff] }
 0x2de   : > { %v1500_v48 = vadd.f32 %v1497_v40, %v1486_v42  ;;  %v1485_v49 = vsel %vm1481_vm12, %v1479_v34, %v1483_v39  ;;  %v1801_v34 = vld [vmem:[%s6254_s12 + $0x30] sm:$0xff] }
 0x2df   : > { %v1499_v50 = vadd.f32 %v1492_v46, %v1485_v49  ;;  %v1805_v40 = vld [vmem:[%s6254_s12 + $0x50] sm:$0xff]  ;;  %v1807_v46 = vld [vmem:[%s6254_s12 + $0x60] sm:$0xff] }
 0x2e0   : > { %v1504_v52 = vmax.f32 %v1502_v38, %v1500_v48  ;;  %v1804_v38 = vld [vmem:[%s6254_s12 + $0x48] sm:$0xff] }
 0x2e1   : > { %v1503_v53 = vmax.f32 %v1501_v41, %v1499_v50  ;;  %v5045_v39 = vpack.c.bf16 %v1804_v38, %v1803_v37  ;;  %v1806_v41 = vld [vmem:[%s6254_s12 + $0x58] sm:$0xff] }
 0x2e2   : > { %v1506_v54 = vsub.f32 %v1456_v32, %v1504_v52  ;;  %v1512_v55 = vsub.f32 %v1478_v31, %v1504_v52  ;;  %v1518_v56 = vsub.f32 %v1500_v48, %v1504_v52  ;;  %v5036_v31 = vpack.c.bf16 %v1798_v30, %v1797_v29  ;;  %v1799_v32 = vld [vmem:[%s6254_s12 + $0x20] sm:$0xff]  ;;  %v1808_v48 = vld [vmem:[%s6254_s12 + $0x68] sm:$0xff]  ;;  %v1810_v52 = vld [vmem:[%s6254_s12 + $0x78] sm:$0xff] }
 0x2e3   : > { %v1505_v57 = vsub.f32 %v1455_v36, %v1503_v53  ;;  %v1511_v58 = vsub.f32 %v1477_v35, %v1503_v53  ;;  %v1517_v59 = vsub.f32 %v1499_v50, %v1503_v53  ;;  %v1802_v35 = vld [vmem:[%s6254_s12 + $0x38] sm:$0xff]  ;;  %v5048_v42 = vpack.c.bf16 %v1806_v41, %v1805_v40  ;;  %v1809_v50 = vld [vmem:[%s6254_s12 + $0x70] sm:$0xff] }
 0x2e4   : > { %v1509_v60 = vmul.f32 1.442695, %v1506_v54  ;;  %v1515_v61 = vmul.f32 1.442695, %v1512_v55  ;;  %v1521_v62 = vmul.f32 1.442695, %v1518_v56  ;;  %v5042_v36 = vpack.c.bf16 %v1802_v35, %v1801_v34 }
 0x2e5   : > { %v1507_v63 = vmul.f32 1.442695, %v1505_v57  ;;  %v1513_v0 = vmul.f32 1.442695, %v1511_v58  ;;  %v1519_v1 = vmul.f32 1.442695, %v1517_v59  ;;  %v5051_v49 = vpack.c.bf16 %v1808_v48, %v1807_v46 }
 0x2e6   : > { %5179 = vpow2.f32 %v1509_v60  ;;  %v5054_v53 = vpack.c.bf16 %v1810_v52, %v1809_v50  ;;  %v5756_v54 = vld [vmem:[%s824_s30] sm:$0xf]  ;;  %v2046_v56 = vld [vmem:[%s6257_s15 + $0x8] sm:$0xff]  ;;  %v2047_v58 = vld [vmem:[%s6257_s15 + $0x10] sm:$0xff] }
 0x2e7   : > { %5181 = vpow2.f32 %v1515_v61  ;;  %v2045_v55 = vld [vmem:[%s6257_s15] sm:$0xff]  ;;  %v2048_v59 = vld [vmem:[%s6257_s15 + $0x18] sm:$0xff]  ;;  %v1963_v50 = vld [vmem:[%s6256_s14 + $0x28] sm:$0xff] }
 0x2e8   : > { %5183 = vpow2.f32 %v1521_v62  ;;  %v5087_v57 = vpack.c.bf16 %v2046_v56, %v2045_v55  ;;  %v5090_v60 = vpack.c.bf16 %v2048_v59, %v2047_v58  ;;  %v2049_v61 = vld [vmem:[%s6257_s15 + $0x20] sm:$0xff]  ;;  %v2050_v62 = vld [vmem:[%s6257_s15 + $0x28] sm:$0xff]  ;;  %v1965_v55 = vld [vmem:[%s6256_s14 + $0x38] sm:$0xff] }
 0x2e9   : > { %5185 = vpow2.f32 %v1507_v63  ;;  %v5093_v63 = vpack.c.bf16 %v2050_v62, %v2049_v61  ;;  %v1967_v58 = vld [vmem:[%s6256_s14 + $0x48] sm:$0xff]  ;;  %v1969_v61 = vld [vmem:[%s6256_s14 + $0x58] sm:$0xff] }
 0x2ea   : > { %5187 = vpow2.f32 %v1513_v0  ;;  %v2051_v0 = vld [vmem:[%s6257_s15 + $0x30] sm:$0xff] }
 0x2eb   : > { %5189 = vpow2.f32 %v1519_v1  ;;  %v2052_v1 = vld [vmem:[%s6257_s15 + $0x38] sm:$0xff] }
 0x2f0   : > { %v5180_v2 = vpop.eup %5179 }
 0x2f1   : > { %v5182_v3 = vpop.eup %5181 }
 0x2f2   : > { %v5184_v4 = vpop.eup %5183  ;;  %v1524_v5 = vadd.f32 %v5182_v3, %v5180_v2 }
 0x2f3   : > { %v5186_v6 = vpop.eup %5185 }
 0x2f4   : > { %v5188_v13 = vpop.eup %5187  ;;  %v1526_v14 = vadd.f32 %v5184_v4, %v1524_v5  ;;  %v1881_v5 = vld [vmem:[%s6255_s13] sm:$0xff] }
 0x2f5   : > { %v1523_v15 = vadd.f32 %v5188_v13, %v5186_v6  ;;  %v5190_v16 = vpop.eup %5189 }
 0x2f6   : > { %5191 = vrcp.f32 %v1526_v14  ;;  %v1883_v14 = vld [vmem:[%s6255_s13 + $0x10] sm:$0xff] }
 0x2f7   : > { %v1525_v17 = vadd.f32 %v5190_v16, %v1523_v15  ;;  %v1884_v15 = vld [vmem:[%s6255_s13 + $0x18] sm:$0xff] }
 0x2f9   : > { %5193 = vrcp.f32 %v1525_v17  ;;  %v5060_v17 = vpack.c.bf16 %v1884_v15, %v1883_v14  ;;  %v4387_v15 = vsel %vm2132_vm15, 1.0, %v5348_v51 }
 0x300   : > { %v5192_v18 = vpop.eup %5191 }
 0x301   : > { %v1531_v19 = vmul.f32 %v5192_v18, %v5180_v2  ;;  %v1619_v20 = vmul.f32 %v5192_v18, %v5182_v3  ;;  %v1702_v23 = vmul.f32 %v5192_v18, %v5184_v4  ;;  %v5096_v2 = vpack.c.bf16 %v2052_v1, %v2051_v0  ;;  %v2053_v3 = vld [vmem:[%s6257_s15 + $0x40] sm:$0xff]  ;;  %v2054_v4 = vld [vmem:[%s6257_s15 + $0x48] sm:$0xff]  ;;  %v2055_v18 = vld [vmem:[%s6257_s15 + $0x50] sm:$0xff] }
 0x302   : > { %v1971_v0 = vld [vmem:[%s6256_s14 + $0x68] sm:$0xff] }
 0x303   : > { %v5194_v24 = vpop.eup %5193 }
 0x304   : > { %v1530_v25 = vmul.f32 %v5194_v24, %v5186_v6  ;;  %v1618_v26 = vmul.f32 %v5194_v24, %v5188_v13  ;;  %v1701_v28 = vmul.f32 %v5194_v24, %v5190_v16  ;;  %v1882_v6 = vld [vmem:[%s6255_s13 + $0x8] sm:$0xff]  ;;  %v5099_v16 = vpack.c.bf16 %v2054_v4, %v2053_v3  ;;  %v2059_v24 = vld [vmem:[%s6257_s15 + $0x70] sm:$0xff]  ;;  %v1973_v3 = vld [vmem:[%s6256_s14 + $0x78] sm:$0xff] }
 0x305   : > { %v5057_v13 = vpack.c.bf16 %v1882_v6, %v1881_v5 }
 0x306   : > { %4712 = vmatprep.mubr.msk.f32.mxu0 %vm1532_vm13, %v1530_v25  ;;  %4717 = vmatprep.mubr.msk.f32.mxu1 %vm1532_vm13, %v1618_v26  ;;  %v2060_v25 = vld [vmem:[%s6257_s15 + $0x78] sm:$0xff] }
 0x307   : > { %4713 = vmatmul.mubr.msk.f32.vlgmr.msra.gmra.mrb[2].mxu0 %vm1532_vm13, %v1531_v19  ;;  %4718 = vmatmul.mubr.msk.f32.vlgmr.msra.gmra.mrb[12].mxu1 %vm1532_vm13, %v1619_v20  ;;  %v2056_v19 = vld [vmem:[%s6257_s15 + $0x58] sm:$0xff]  ;;  %v5108_v26 = vpack.c.bf16 %v2060_v25, %v2059_v24 }
 0x308   : > { %5034 = vmatpush3.bf16.msra.mxu1 %v5033_v27  ;;  %4722 = vmatprep.mubr.msk.f32.mxu0 %vm1532_vm13, %v1701_v28  ;;  %v5102_v20 = vpack.c.bf16 %v2056_v19, %v2055_v18  ;;  %v2044_v27 = vld [vmem:[%s833_s23] sm:$0xf]  ;;  %v4398_v19 = vsel %vm2540_vm1, 1.0, %v5348_v51  ;;  %s843_s23 = scalar_lea.vmem %s6261_s19, %s5542_s0  ;;  %s6124_s0 = sand.u32 1, %s5337_s28  }
 0x309   : > { %4721 = vmatpush3.msk.msra.mxu0 %vm1539_vm6, %v5669_v11  ;;  %5035 = vmatprep.subr.bf16.mxu1 %v5349_v12  ;;  %v5039_v11 = vpack.c.bf16 %v1800_v33, %v1799_v32  ;;  %v5953_v18 = vld [vmem:[%s6258_s16] sm:$0xf]  ;;  %s794_s27 = scalar_lea.vmem [#allocation4], %s6124_s0  ;;  %s4344_s1 = sshll.u32 %s6124_s0, 2 }
 0x30a   : > { %4757 = vmatprep.mubr.msk.f32.mxu1 %vm5350_vm14, %v5348_v51  ;;  %5056 = vmatprep.subr.bf16.mxu0 %v5349_v12  ;;  %s6132_s3 = scalar_lea.vmem [#allocation2], %s4344_s1  ;;  %s4106_s25 = sshll.u32 %s794_s27, 4  ;;  %s4107_s25 = int_to_ptr.vmem [resolvable:$true] %s4106_s25 }
 0x30b   : > { %4723 = vmatmul.mubr.msk.f32.vlgmr.msra.gmra.mrb[4].mxu0 %vm1532_vm13, %v1702_v23  ;;  %v5105_v23 = vpack.c.bf16 %v2058_v22, %v2057_v21  ;;  %s5223_s29 = scalar_lea.vmem %s4107_s25, 16  ;;  %p5230_p0 = scmp.lt.s32.totalorder %s4107_s25, %s5228_s24 }
 0x30c   : > { %5037 = vmatpush3.bf16.msra.mxu1 %v5036_v31  ;;  %4768 = vmatprep.mubr.msk.f32.mxu0 %vm5350_vm14, %v5348_v51  ;;  %p5224_p11 = scmp.ne.s32.totalorder %s4107_s25, %s5223_s29 }
 0x30d   : > { %5038 = vmatprep.subr.bf16.mxu1 %v5349_v12  ;;  %5058 = vmatpush3.bf16.msra.mxu0 %v5057_v13 }
 0x30e   : > { %5059 = vmatprep.subr.bf16.mxu0 %v5349_v12  ;;  %p5225_p12 = pnand %p5224_p11, %p5509_p5 }
 0x310   : > { %5040 = vmatpush3.bf16.msra.mxu1 %v5039_v11  ;;  %p5226_p13 = pneg %p5225_p12 }
 0x311   : > { %5041 = vmatprep.subr.bf16.mxu1 %v5349_v12  ;;  %5061 = vmatpush3.bf16.msra.mxu0 %v5060_v17 }
 0x312   : > { %5062 = vmatprep.subr.bf16.mxu0 %v5349_v12 }
 0x314   : > { %5043 = vmatpush3.bf16.msra.mxu1 %v5042_v36 }
 0x315   : > { %5044 = vmatprep.subr.bf16.mxu1 %v5349_v12 }
 0x318   : > { %5046 = vmatpush3.bf16.msra.mxu1 %v5045_v39 }
 0x319   : > { %5047 = vmatprep.subr.bf16.mxu1 %v5349_v12 }
 0x31c   : > { %5049 = vmatpush3.bf16.msra.mxu1 %v5048_v42 }
 0x31d   : > { %5050 = vmatprep.subr.bf16.mxu1 %v5349_v12 }
 0x320   : > { %5052 = vmatpush3.bf16.msra.mxu1 %v5051_v49  ;;  %v1962_v49 = vld [vmem:[%s6256_s14 + $0x20] sm:$0xff] }
 0x321   : > { %5053 = vmatprep.subr.bf16.mxu1 %v5349_v12  ;;  %v5069_v52 = vpack.c.bf16 %v1963_v50, %v1962_v49 }
 0x324   : > { %5055 = vmatpush3.bf16.msra.mxu1 %v5054_v53  ;;  %v1964_v53 = vld [vmem:[%s6256_s14 + $0x30] sm:$0xff] }
 0x325   : > { %5086 = vmatprep.subr.bf16.mxu1 %v5349_v12  ;;  %v5072_v56 = vpack.c.bf16 %v1965_v55, %v1964_v53 }
 0x327   : > { %4758 = vmatmul.mubr.f32.vlgmr.msra.gmra.mrb[14].mxu1 %v5756_v54 }
 0x328   : > { %4838 = vmatprep.mubr.msk.f32.mxu1 %vm5350_vm14, %v5348_v51  ;;  %5088 = vmatpush3.bf16.msra.mxu1 %v5087_v57  ;;  %v1966_v57 = vld [vmem:[%s6256_s14 + $0x40] sm:$0xff] }
 0x329   : > { %5089 = vmatprep.subr.bf16.mxu1 %v5349_v12  ;;  %v5075_v59 = vpack.c.bf16 %v1967_v58, %v1966_v57 }
 0x32c   : > { %5091 = vmatpush3.bf16.msra.mxu1 %v5090_v60  ;;  %v1968_v60 = vld [vmem:[%s6256_s14 + $0x50] sm:$0xff] }
 0x32d   : > { %5092 = vmatprep.subr.bf16.mxu1 %v5349_v12  ;;  %v5078_v62 = vpack.c.bf16 %v1969_v61, %v1968_v60 }
 0x330   : > { %5094 = vmatpush3.bf16.msra.mxu1 %v5093_v63  ;;  %v1970_v63 = vld [vmem:[%s6256_s14 + $0x60] sm:$0xff] }
 0x331   : > { %5095 = vmatprep.subr.bf16.mxu1 %v5349_v12  ;;  %v5081_v1 = vpack.c.bf16 %v1971_v0, %v1970_v63 }
 0x334   : > { %5097 = vmatpush3.bf16.msra.mxu1 %v5096_v2  ;;  %v1972_v2 = vld [vmem:[%s6256_s14 + $0x70] sm:$0xff] }
 0x335   : > { %5098 = vmatprep.subr.bf16.mxu1 %v5349_v12  ;;  %v5084_v4 = vpack.c.bf16 %v1973_v3, %v1972_v2 }
 0x338   : > { %5100 = vmatpush3.bf16.msra.mxu1 %v5099_v16 }
 0x339   : > { %5101 = vmatprep.subr.bf16.mxu1 %v5349_v12 }
 0x33c   : > { %5103 = vmatpush3.bf16.msra.mxu1 %v5102_v20  ;;  %v5967_v20 = vsub.s32 0, %v5620_v47 }
 0x33d   : > { %5104 = vmatprep.subr.bf16.mxu1 %v5349_v12 }
 0x340   : > { %5106 = vmatpush3.bf16.msra.mxu1 %v5105_v23 }
 0x341   : > { %5107 = vmatprep.subr.bf16.mxu1 %v5349_v12 }
 0x344   : > { %5109 = vmatpush3.bf16.msra.mxu1 %v5108_v26 }
 0x345   : > { %4871 = vmatprep.subr.mxu1 %v5348_v51 }
 0x347   : > { %4839 = vmatmul.mubr.f32.vlgmr.msra.gmra.mrb[16].mxu1 %v2044_v27 }
 0x348   : > { %4873 = vmatprep.mubr.msk.f32.mxu1 %vm5350_vm14, %v5348_v51 }
 0x3da   : > { %v4714_v28 = vpop.f32.mrb[2].mxu0  ;;  %v4719_v29 = vpop.f32.mrb[12].mxu1 }
 0x3db   : > { %v1785_v30 = vmul.f32 %v4714_v28, %v5655_v7  ;;  %v1787_v31 = vmul.f32 %v4719_v29, %v5616_v44  ;;  %v1609_v32 = vpop.f32.mrb[3].mxu0  ;;  %v1692_v33 = vpop.f32.mrb[13].mxu1  ;;  %v1958_v44 = vld [vmem:[%s6256_s14] sm:$0xff] }
 0x3dc   : > { %v1784_v11 = vmul.f32 %v1609_v32, %v5657_v8  ;;  %v1786_v34 = vmul.f32 %v1692_v33, %v5618_v45  ;;  %v1959_v45 = vld [vmem:[%s6256_s14 + $0x8] sm:$0xff]  ;;  %v1960_v8 = vld [vmem:[%s6256_s14 + $0x10] sm:$0xff] }
 0x3dd   : > { %v1789_v35 = vadd.f32 %v1787_v31, %v1785_v30  ;;  %v5063_v7 = vpack.c.bf16 %v1959_v45, %v1958_v44  ;;  %v2373_v31 = vpop.permute.xlu0 %2372 }
 0x3de   : > { %v1788_v36 = vadd.f32 %v1786_v34, %v1784_v11  ;;  %v4724_v37 = vpop.f32.mrb[4].mxu0 }
 0x3df   : > { %v1791_v38 = vmul.f32 %v4724_v37, %v5662_v9  ;;  %v1775_v39 = vpop.f32.mrb[5].mxu0  ;;  %v1961_v9 = vld [vmem:[%s6256_s14 + $0x18] sm:$0xff] }
 0x3e0   : > { %v1790_v40 = vmul.f32 %v1775_v39, %v5664_v10  ;;  %v5066_v48 = vpack.c.bf16 %v1961_v9, %v1960_v8 }
 0x3e1   : > { %v5845_v41 = vadd.f32 %v1791_v38, %v1789_v35 }
 0x3e2   : > { %v5847_v42 = vadd.f32 %v1790_v40, %v1788_v36  ;;  %v4403_v40 = vld [vmem:[%s5938_s5 + $0x4] sm:$0xf] }
 0x3fa   : > { %v5861_v10 = vpop.f32.mrb[14].mxu1 }
 0x3fb   : > { %v4759_v46 = vpop.f32.mrb[15].mxu1  ;;  %4769 = vmatmul.mubr.msk.f32.vlgmr.msra.gmra.mrb[6].mxu0 %vm941_vm0, %v5861_v10  ;;  %4872 = vmatpush3.msk.msra.mxu1 %vm1539_vm6, %v5861_v10 }
 0x3fc   : > { %5064 = vmatpush3.bf16.msra.mxu0 %v5063_v7  ;;  %4803 = vmatprep.mubr.msk.f32.mxu0 %vm5350_vm14, %v5348_v51 }
 0x3fd   : > { %5065 = vmatprep.subr.bf16.mxu0 %v5349_v12  ;;  %4881 = vmatprep.subr.mxu1 %v5348_v51 }
 0x3fe   : > { %4874 = vmatmul.mubr.msk.f32.vlgmr.msra.gmra.mrb[18].mxu1 %vm1532_vm13, %v4398_v19 }
 0x3ff   : > { %4882 = vmatpush3.msk.msra.mxu1 %vm1539_vm6, %v5953_v18  ;;  %4883 = vmatprep.mubr.msk.f32.mxu1 %vm5350_vm14, %v5348_v51 }
 0x400   : > { %5067 = vmatpush3.bf16.msra.mxu0 %v5066_v48  ;;  %4891 = vmatprep.subr.mxu1 %v5348_v51 }
 0x401   : > { %5068 = vmatprep.subr.bf16.mxu0 %v5349_v12 }
 0x404   : > { %5070 = vmatpush3.bf16.msra.mxu0 %v5069_v52 }
 0x405   : > { %5071 = vmatprep.subr.bf16.mxu0 %v5349_v12 }
 0x408   : > { %5073 = vmatpush3.bf16.msra.mxu0 %v5072_v56 }
 0x409   : > { %5074 = vmatprep.subr.bf16.mxu0 %v5349_v12 }
 0x40c   : > { %5076 = vmatpush3.bf16.msra.mxu0 %v5075_v59 }
 0x40d   : > { %5077 = vmatprep.subr.bf16.mxu0 %v5349_v12 }
 0x410   : > { %5079 = vmatpush3.bf16.msra.mxu0 %v5078_v62  ;;  %v2775_v62 = vpop.permute.xlu1 %2774 }
 0x411   : > { %5080 = vmatprep.subr.bf16.mxu0 %v5349_v12 }
 0x414   : > { %5082 = vmatpush3.bf16.msra.mxu0 %v5081_v1 }
 0x415   : > { %5083 = vmatprep.subr.bf16.mxu0 %v5349_v12 }
 0x418   : > { %5085 = vmatpush3.bf16.msra.mxu0 %v5084_v4 }
 0x419   : > { %4841 = vmatprep.subr.mxu0 %v5348_v51 }
 0x41a   : > { %v5917_v5 = vpop.f32.mrb[16].mxu1 }
 0x41b   : > { %4804 = vmatmul.mubr.f32.vlgmr.msra.gmra.mrb[8].mxu0 %v5756_v54  ;;  %v4840_v6 = vpop.f32.mrb[17].mxu1  ;;  %v2283_v54 = vld [vmem:[%s5938_s5] sm:$0xf] }
 0x41c   : > { %4843 = vmatprep.mubr.msk.f32.mxu0 %vm5350_vm14, %v5348_v51 }
 0x4ce   : > { %v5919_v13 = vpop.f32.mrb[6].mxu0 }
 0x4cf   : > { %v4770_v14 = vpop.f32.mrb[7].mxu0 }
 0x4d1   : > { %v2682_v44 = vpop.f32.mrb[18].mxu1 }
 0x4d2   : > { %v4875_v45 = vpop.f32.mrb[19].mxu1 }
 0x4ee   : > { %v5923_v16 = vpop.f32.mrb[8].mxu0 }
 0x4ef   : > { %v4805_v17 = vpop.f32.mrb[9].mxu0  ;;  %4842 = vmatpush3.msk.msra.mxu0 %vm1539_vm6, %v5923_v16 }
 0x4f0   : > { %4844 = vmatmul.mubr.msk.f32.vlgmr.msra.gmra.mrb[10].mxu0 %vm1532_vm13, %v4387_v15  ;;  %4846 = vmatprep.subr.mxu0 %v5348_v51 }
 0x4f1   : > { %4847 = vmatpush3.msk.msra.mxu0 %vm1539_vm6, %v5861_v10  ;;  %4848 = vmatprep.mubr.msk.f32.mxu0 %vm5350_vm14, %v5348_v51 }
 0x4f2   : > { %4851 = vmatprep.subr.mxu0 %v5348_v51 }
 0x4f4   : > { %4849 = vmatmul.mubr.msk.f32.vlgmr.msra.gmra.mrb[12].mxu0 %vm1532_vm13, %v4387_v15 }
 0x4f5   : > { %4852 = vmatpush3.msk.msra.mxu0 %vm1539_vm6, %v5917_v5  ;;  %4853 = vmatprep.mubr.msk.f32.mxu0 %vm5350_vm14, %v5348_v51 }
 0x4f6   : > { %4856 = vmatprep.subr.mxu0 %v5348_v51 }
 0x4f8   : > { %4854 = vmatmul.mubr.msk.f32.vlgmr.msra.gmra.mrb[14].mxu0 %vm1532_vm13, %v2283_v54  ;;  %v4411_v54 = vsel %vm2940_vm4, 1.0, %v5348_v51 }
 0x4f9   : > { %4858 = vmatprep.mubr.msk.f32.mxu0 %vm5350_vm14, %v5348_v51  ;;  %4857 = vmatpush3.msk.msra.mxu0 %vm1539_vm6, %v5953_v18 }
 0x4fa   : > { %4861 = vmatprep.subr.mxu0 %v5348_v51 }
 0x5c3   : > { %v2207_v21 = vpop.f32.mrb[10].mxu0 }
 0x5c4   : > { %v2363_v22 = vrot.slane %v2207_v21, %v5967_v20  ;;  %v4845_v23 = vpop.f32.mrb[11].mxu0  ;;  %v4416_v21 = vld [vmem:[%s5938_s5 + $0x8] sm:$0xf] }
 0x5c6   : > { %v2364_v24 = vadd.f32 %v2363_v22, %v5919_v13  ;;  %v2937_v22 = vrot.slane %v2682_v44, %v5967_v20 }
 0x5c7   : > { %v2279_v25 = vpop.f32.mrb[12].mxu0 }
 0x5c8   : > { %v4850_v26 = vpop.f32.mrb[13].mxu0  ;;  %v2537_v9 = vrot.slane %v2279_v25, %v5967_v20 }
 0x5cb   : > { %v2356_v27 = vpop.f32.mrb[14].mxu0 }
 0x5cc   : > { %v2365_v28 = vadd.f32 %v2364_v24, %v2356_v27  ;;  %v4855_v29 = vpop.f32.mrb[15].mxu0 }
 0x5ce   : > { %vm2366_vm2 = vcmp.gt.f32.partialorder %v2365_v28, 0.0  ;;  %v2367_v30 = vmul.f32 0.2, %v2365_v28 }
 0x5d0   : > { %v2368_v32 = vsel %vm2366_vm2, %v2365_v28, %v2367_v30 }
 0x5d1   : > { %v2375_v33 = vadd.f32 %v2373_v31, %v2368_v32 }
 0x5d3   : > { %v2376_v11 = vsub.f32 -inf, %v2375_v33  ;;  %v2379_v34 = vsub.f32 %v2375_v33, %v2375_v33 }
 0x5d5   : > { %v2377_v47 = vmul.f32 1.442695, %v2376_v11  ;;  %v2380_v35 = vmul.f32 1.442695, %v2379_v34 }
 0x5d7   : > { %5195 = vpow2.f32 %v2377_v47 }
 0x5d8   : > { %5197 = vpow2.f32 %v2380_v35 }
 0x5e1   : > { %v5196_v36 = vpop.eup %5195 }
 0x5e2   : > { %4859 = vmatmul.mubr.msk.f32.vlgmr.msra.gmra.mrb[16].mxu0 %vm1532_vm13, %v5196_v36  ;;  %v2382_v37 = vmul.f32 0.0, %v5196_v36  ;;  %v5198_v38 = vpop.eup %5197 }
 0x5e3   : > { %4862 = vmatpush3.msk.msra.mxu0 %vm1539_vm6, %v5953_v18  ;;  %4863 = vmatprep.mubr.msk.f32.mxu0 %vm5350_vm14, %v5348_v51 }
 0x5e4   : > { %4866 = vmatprep.subr.mxu0 %v5348_v51  ;;  %v2383_v39 = vadd.f32 %v5198_v38, %v2382_v37 }
 0x5e6   : > { %4864 = vmatmul.mubr.msk.f32.vlgmr.msra.gmra.mrb[18].mxu0 %vm1532_vm13, %v5198_v38  ;;  %v3175_v38 = vpop.permute.xlu0 %3174 }
 0x5e7   : > { %4867 = vmatpush3.msk.msra.mxu0 %vm1539_vm6, %v5923_v16  ;;  %4868 = vmatprep.mubr.msk.f32.mxu0 %vm5350_vm14, %v5348_v51 }
 0x5e8   : > { %4876 = vmatprep.subr.mxu0 %v5348_v51 }
 0x5ea   : > { %4869 = vmatmul.mubr.msk.f32.vlgmr.msra.gmra.mrb[20].mxu0 %vm1532_vm13, %v4398_v19 }
 0x5eb   : > { %4877 = vmatpush3.msk.msra.mxu0 %vm1539_vm6, %v5917_v5  ;;  %4878 = vmatprep.mubr.msk.f32.mxu0 %vm5350_vm14, %v5348_v51 }
 0x5ec   : > { %4886 = vmatprep.subr.mxu0 %v5348_v51 }
 0x5ee   : > { %4879 = vmatmul.mubr.msk.f32.vlgmr.msra.gmra.mrb[22].mxu0 %vm1532_vm13, %v4403_v40 }
 0x5ef   : > { %4887 = vmatpush3.msk.msra.mxu0 %vm1539_vm6, %v5953_v18  ;;  %4888 = vmatprep.mubr.msk.f32.mxu0 %vm5350_vm14, %v5348_v51 }
 0x5f0   : > { %4896 = vmatprep.subr.mxu0 %v5348_v51 }
 0x6b5   : > { %v2456_v7 = vpop.f32.mrb[16].mxu0 }
 0x6b6   : > { %v4860_v8 = vpop.f32.mrb[17].mxu0  ;;  %v2460_v48 = vmul.f32 0.0, %v2456_v7 }
 0x6b9   : > { %v2530_v46 = vpop.f32.mrb[18].mxu0 }
 0x6ba   : > { %v2538_v49 = vmul.f32 %v2537_v9, %v2530_v46  ;;  %v4865_v50 = vpop.f32.mrb[19].mxu0 }
 0x6bb   : > { %v4424_v50 = vsel %vm3340_vm7, 1.0, %v5348_v51 }
 0x6bc   : > { %v2539_v52 = vadd.f32 %v2538_v49, %v2460_v48 }
 0x6bd   : > { %v2612_v53 = vpop.f32.mrb[20].mxu0 }
 0x6be   : > { %v2764_v55 = vrot.slane %v2612_v53, %v5967_v20  ;;  %v4870_v56 = vpop.f32.mrb[21].mxu0 }
 0x6c0   : > { %v2765_v57 = vadd.f32 %v2764_v55, %v5919_v13 }
 0x6c1   : > { %v2757_v58 = vpop.f32.mrb[22].mxu0 }
 0x6c2   : > { %v2766_v59 = vadd.f32 %v2765_v57, %v2757_v58  ;;  %v4880_v60 = vpop.f32.mrb[23].mxu0 }
 0x6c4   : > { %vm2767_vm3 = vcmp.gt.f32.partialorder %v2766_v59, 0.0  ;;  %v2768_v61 = vmul.f32 0.2, %v2766_v59 }
 0x6c6   : > { %v2769_v63 = vsel %vm2767_vm3, %v2766_v59, %v2768_v61 }
 0x6c7   : > { %v2777_v0 = vadd.f32 %v2775_v62, %v2769_v63 }
 0x6c9   : > { %v2778_v1 = vmax.f32 %v2375_v33, %v2777_v0 }
 0x6cb   : > { %v2779_v2 = vsub.f32 %v2375_v33, %v2778_v1  ;;  %v2782_v3 = vsub.f32 %v2777_v0, %v2778_v1 }
 0x6cd   : > { %v2780_v4 = vmul.f32 1.442695, %v2779_v2  ;;  %v2783_v6 = vmul.f32 1.442695, %v2782_v3 }
 0x6cf   : > { %5199 = vpow2.f32 %v2780_v4 }
 0x6d0   : > { %5201 = vpow2.f32 %v2783_v6 }
 0x6d9   : > { %v5200_v14 = vpop.eup %5199 }
 0x6da   : > { %v5202_v15 = vpop.eup %5201  ;;  %v2785_v17 = vmul.f32 %v5200_v14, %v2383_v39  ;;  %4884 = vmatmul.mubr.msk.f32.vlgmr.msra.gmra.mrb[20].mxu1 %vm1532_vm13, %v5200_v14 }
 0x6db   : > { %4889 = vmatmul.mubr.msk.f32.vlgmr.msra.gmra.mrb[24].mxu0 %vm1532_vm13, %v5202_v15  ;;  %4892 = vmatpush3.msk.msra.mxu1 %vm1539_vm6, %v5923_v16 }
 0x6dc   : > { %v2786_v19 = vadd.f32 %v5202_v15, %v2785_v17  ;;  %4897 = vmatpush3.msk.msra.mxu0 %vm1539_vm6, %v5861_v10  ;;  %4893 = vmatprep.mubr.msk.f32.mxu1 %vm5350_vm14, %v5348_v51  ;;  %v3575_v17 = vpop.permute.xlu1 %3574 }
 0x6dd   : > { %4901 = vmatprep.subr.mxu1 %v5348_v51  ;;  %4898 = vmatprep.mubr.msk.f32.mxu0 %vm5350_vm14, %v5348_v51 }
 0x6de   : > { %4894 = vmatmul.mubr.msk.f32.vlgmr.msra.gmra.mrb[22].mxu1 %vm1532_vm13, %v4411_v54  ;;  %4906 = vmatprep.subr.mxu0 %v5348_v51 }
 0x6df   : > { %4902 = vmatpush3.msk.msra.mxu1 %vm1539_vm6, %v5917_v5  ;;  %4903 = vmatprep.mubr.msk.f32.mxu1 %vm5350_vm14, %v5348_v51 }
 0x6e0   : > { %4899 = vmatmul.mubr.msk.f32.vlgmr.msra.gmra.mrb[26].mxu0 %vm1532_vm13, %v4411_v54  ;;  %4911 = vmatprep.subr.mxu1 %v5348_v51 }
 0x6e1   : > { %4907 = vmatpush3.msk.msra.mxu0 %vm1539_vm6, %v5953_v18  ;;  %4908 = vmatprep.mubr.msk.f32.mxu0 %vm5350_vm14, %v5348_v51 }
 0x6e2   : > { %4904 = vmatmul.mubr.msk.f32.vlgmr.msra.gmra.mrb[24].mxu1 %vm1532_vm13, %v4416_v21  ;;  %4916 = vmatprep.subr.mxu0 %v5348_v51 }
 0x6e3   : > { %4912 = vmatpush3.msk.msra.mxu1 %vm1539_vm6, %v5953_v18  ;;  %4913 = vmatprep.mubr.msk.f32.mxu1 %vm5350_vm14, %v5348_v51 }
 0x6e4   : > { %4921 = vmatprep.subr.mxu1 %v5348_v51 }
 0x7ad   : > { %v2856_v23 = vpop.f32.mrb[20].mxu1 }
 0x7ae   : > { %v2860_v24 = vmul.f32 %v2856_v23, %v2539_v52  ;;  %v2930_v25 = vpop.f32.mrb[24].mxu0  ;;  %v4885_v26 = vpop.f32.mrb[21].mxu1 }
 0x7af   : > { %v2938_v27 = vmul.f32 %v2937_v22, %v2930_v25  ;;  %v4890_v28 = vpop.f32.mrb[25].mxu0  ;;  %v3818_v26 = vld [vmem:[%s6259_s17 + $0x18] sm:$0xff] }
 0x7b1   : > { %v3012_v29 = vpop.f32.mrb[22].mxu1  ;;  %v2939_v30 = vadd.f32 %v2938_v27, %v2860_v24 }
 0x7b2   : > { %v3164_v31 = vrot.slane %v3012_v29, %v5967_v20  ;;  %v4895_v32 = vpop.f32.mrb[23].mxu1 }
 0x7b3   : > { %v3082_v33 = vpop.f32.mrb[26].mxu0 }
 0x7b4   : > { %v3165_v11 = vadd.f32 %v3164_v31, %v5919_v13  ;;  %v4900_v34 = vpop.f32.mrb[27].mxu0  ;;  %v3337_v53 = vrot.slane %v3082_v33, %v5967_v20 }
 0x7b5   : > { %v3157_v47 = vpop.f32.mrb[24].mxu1 }
 0x7b6   : > { %v3166_v35 = vadd.f32 %v3165_v11, %v3157_v47  ;;  %v4905_v36 = vpop.f32.mrb[25].mxu1  ;;  %v3915_v11 = vld [vmem:[%s6260_s18 + $0x18] sm:$0xff] }
 0x7b8   : > { %vm3167_vm5 = vcmp.gt.f32.partialorder %v3166_v35, 0.0  ;;  %v3168_v37 = vmul.f32 0.2, %v3166_v35 }
 0x7ba   : > { %v3169_v39 = vsel %vm3167_vm5, %v3166_v35, %v3168_v37 }
 0x7bb   : > { %v3177_v40 = vadd.f32 %v3175_v38, %v3169_v39 }
 0x7bd   : > { %v3178_v44 = vmax.f32 %v2778_v1, %v3177_v40 }
 0x7bf   : > { %v3179_v45 = vsub.f32 %v2778_v1, %v3178_v44  ;;  %v3182_v7 = vsub.f32 %v3177_v40, %v3178_v44 }
 0x7c1   : > { %v3180_v8 = vmul.f32 1.442695, %v3179_v45  ;;  %v3183_v9 = vmul.f32 1.442695, %v3182_v7 }
 0x7c3   : > { %5203 = vpow2.f32 %v3180_v8 }
 0x7c4   : > { %5205 = vpow2.f32 %v3183_v9 }
 0x7cd   : > { %v5204_v46 = vpop.eup %5203 }
 0x7ce   : > { %v5206_v48 = vpop.eup %5205  ;;  %v3185_v49 = vmul.f32 %v5204_v46, %v2786_v19  ;;  %4909 = vmatmul.mubr.msk.f32.vlgmr.msra.gmra.mrb[28].mxu0 %vm1532_vm13, %v5204_v46 }
 0x7cf   : > { %4914 = vmatmul.mubr.msk.f32.vlgmr.msra.gmra.mrb[26].mxu1 %vm1532_vm13, %v5206_v48  ;;  %4917 = vmatpush3.msk.msra.mxu0 %vm1539_vm6, %v5923_v16 }
 0x7d0   : > { %v3186_v52 = vadd.f32 %v5206_v48, %v3185_v49  ;;  %4922 = vmatpush3.msk.msra.mxu1 %vm1539_vm6, %v5861_v10  ;;  %4918 = vmatprep.mubr.msk.f32.mxu0 %vm5350_vm14, %v5348_v51  ;;  %v3815_v10 = vld [vmem:[%s6259_s17] sm:$0xff] }
 0x7d1   : > { %4926 = vmatprep.subr.mxu0 %v5348_v51  ;;  %4923 = vmatprep.mubr.msk.f32.mxu1 %vm5350_vm14, %v5348_v51 }
 0x7d2   : > { %4919 = vmatmul.mubr.msk.f32.vlgmr.msra.gmra.mrb[30].mxu0 %vm1532_vm13, %v4424_v50  ;;  %4931 = vmatprep.subr.mxu1 %v5348_v51 }
 0x7d3   : > { %4927 = vmatpush3.msk.msra.mxu0 %vm1539_vm6, %v5917_v5  ;;  %4928 = vmatprep.mubr.msk.f32.mxu0 %vm5350_vm14, %v5348_v51  ;;  %v3816_v5 = vld [vmem:[%s6259_s17 + $0x8] sm:$0xff] }
 0x7d4   : > { %4924 = vmatmul.mubr.msk.f32.vlgmr.msra.gmra.mrb[28].mxu1 %vm1532_vm13, %v4424_v50  ;;  %4936 = vmatprep.subr.mxu0 %v5348_v51  ;;  %v5110_v16 = vpack.c.bf16 %v3816_v5, %v3815_v10 }
 0x7d5   : > { %4932 = vmatpush3.msk.msra.mxu1 %vm1539_vm6, %v5953_v18  ;;  %4933 = vmatprep.mubr.msk.f32.mxu1 %vm5350_vm14, %v5348_v51 }
 0x7d6   : > { %4929 = vmatmul.mubr.msk.f32.vlgmr.msra.gmra.mrb[32].mxu0 %vm1532_vm13, %v4429_v43  ;;  %4941 = vmatprep.subr.mxu1 %v5348_v51 }
 0x7d7   : > { %4937 = vmatpush3.msk.msra.mxu0 %vm1539_vm6, %v5953_v18  ;;  %4938 = vmatprep.mubr.msk.f32.mxu0 %vm5350_vm14, %v5348_v51 }
 0x7d8   : > { %5111 = vmatprep.subr.bf16.mxu0 %v5110_v16 }
 0x8a1   : > { %v3256_v55 = vpop.f32.mrb[28].mxu0 }
 0x8a2   : > { %v3260_v56 = vmul.f32 %v3256_v55, %v2939_v30  ;;  %v3330_v57 = vpop.f32.mrb[26].mxu1  ;;  %v4910_v58 = vpop.f32.mrb[29].mxu0 }
 0x8a3   : > { %v3338_v59 = vmul.f32 %v3337_v53, %v3330_v57  ;;  %v4915_v60 = vpop.f32.mrb[27].mxu1 }
 0x8a5   : > { %v3412_v61 = vpop.f32.mrb[30].mxu0  ;;  %v3339_v62 = vadd.f32 %v3338_v59, %v3260_v56 }
 0x8a6   : > { %v3564_v63 = vrot.slane %v3412_v61, %v5967_v20  ;;  %v4920_v0 = vpop.f32.mrb[31].mxu0 }
 0x8a7   : > { %v3482_v1 = vpop.f32.mrb[28].mxu1 }
 0x8a8   : > { %v3565_v2 = vadd.f32 %v3564_v63, %v5919_v13  ;;  %v4925_v3 = vpop.f32.mrb[29].mxu1  ;;  %v3817_v13 = vld [vmem:[%s6259_s17 + $0x10] sm:$0xff]  ;;  %v3737_v47 = vrot.slane %v3482_v1, %v5967_v20 }
 0x8a9   : > { %v3557_v4 = vpop.f32.mrb[32].mxu0  ;;  %v5114_v28 = vpack.c.bf16 %v3818_v26, %v3817_v13 }
 0x8aa   : > { %v3566_v6 = vadd.f32 %v3565_v2, %v3557_v4  ;;  %v4930_v14 = vpop.f32.mrb[33].mxu0 }
 0x8ac   : > { %vm3567_vm8 = vcmp.gt.f32.partialorder %v3566_v6, 0.0  ;;  %v3568_v15 = vmul.f32 0.2, %v3566_v6 }
 0x8ae   : > { %v3569_v54 = vsel %vm3567_vm8, %v3566_v6, %v3568_v15 }
 0x8af   : > { %v3577_v19 = vadd.f32 %v3575_v17, %v3569_v54 }
 0x8b1   : > { %v3578_v21 = vmax.f32 %v3178_v44, %v3577_v19 }
 0x8b3   : > { %v3579_v22 = vsub.f32 %v3178_v44, %v3578_v21  ;;  %v3582_v23 = vsub.f32 %v3577_v19, %v3578_v21 }
 0x8b5   : > { %v3580_v24 = vmul.f32 1.442695, %v3579_v22  ;;  %v3583_v25 = vmul.f32 1.442695, %v3582_v23 }
 0x8b7   : > { %5207 = vpow2.f32 %v3580_v24 }
 0x8b8   : > { %5209 = vpow2.f32 %v3583_v25 }
 0x8c1   : > { %v5208_v27 = vpop.eup %5207 }
 0x8c2   : > { %v5210_v29 = vpop.eup %5209  ;;  %v3585_v30 = vmul.f32 %v5208_v27, %v3186_v52  ;;  %4934 = vmatmul.mubr.msk.f32.vlgmr.msra.gmra.mrb[30].mxu1 %vm1532_vm13, %v5208_v27 }
 0x8c3   : > { %4939 = vmatmul.mubr.msk.f32.vlgmr.msra.gmra.mrb[34].mxu0 %vm1532_vm13, %v5210_v29  ;;  %4942 = vmatpush3.msk.msra.mxu1 %vm1539_vm6, %v5953_v18  ;;  %v3913_v18 = vld [vmem:[%s6260_s18 + $0x8] sm:$0xff] }
 0x8c4   : > { %v3586_v31 = vadd.f32 %v5210_v29, %v3585_v30  ;;  %5113 = vmatpush3.bf16.msra.mxu0 %v5110_v16  ;;  %4954 = vmatprep.mubr.msk.f32.mxu0 %vm941_vm0, %v5847_v42  ;;  %v3912_v42 = vld [vmem:[%s6260_s18] sm:$0xff] }
 0x8c5   : > { %5115 = vmatprep.subr.bf16.mxu0 %v5114_v28  ;;  %4943 = vmatprep.mubr.msk.f32.mxu1 %vm5350_vm14, %v5348_v51  ;;  %v5119_v33 = vpack.c.bf16 %v3913_v18, %v3912_v42 }
 0x8c6   : > { %5211 = vrcp.f32 %v3586_v31  ;;  %5118 = vmatprep.subr.bf16.mxu1 %v5349_v12 }
 0x8c8   : > { %5117 = vmatpush3.bf16.msra.mxu0 %v5114_v28 }
 0x8cb   : > { %4955 = vmatmul.mubr.msk.f32.vlgmr.msra.gmra.mrb[36].mxu0 %vm941_vm0, %v5845_v41  ;;  %v3914_v41 = vld [vmem:[%s6260_s18 + $0x10] sm:$0xff] }
 0x8cc   : > { %v5122_v34 = vpack.c.bf16 %v3915_v11, %v3914_v41 }
 0x8d0   : > { %v5212_v32 = vpop.eup %5211 }
 0x8d1   : > { %4944 = vmatmul.mubr.msk.f32.vlgmr.msra.gmra.mrb[32].mxu1 %vm1532_vm13, %v5212_v32  ;;  %vm4042_vm13 = vcmask 57344  }
 0x8d2   : > { %4965 = vmatprep.mubr.msk.f32.mxu1 %vm5350_vm14, %v5348_v51  ;;  %5120 = vmatpush3.bf16.msra.mxu1 %v5119_v33  ;;  %vm3998_vm14 = vcmask 60416  }
 0x8d3   : > { %5121 = vmatprep.subr.bf16.mxu1 %v5349_v12 }
 0x8d6   : > { %5123 = vmatpush3.bf16.msra.mxu1 %v5122_v34 }
 0x995   : > { %v3656_v35 = vpop.f32.mrb[30].mxu1 }
 0x996   : > { %v3660_v36 = vmul.f32 %v3656_v35, %v3339_v62  ;;  %v3730_v37 = vpop.f32.mrb[34].mxu0  ;;  %v4935_v38 = vpop.f32.mrb[31].mxu1 }
 0x997   : > { %v3738_v39 = vmul.f32 %v3737_v47, %v3730_v37  ;;  %v4940_v40 = vpop.f32.mrb[35].mxu0 }
 0x999   : > { %v3739_v12 = vadd.f32 %v3738_v39, %v3660_v36 }
 0x99e   : > { %v4956_v44 = vpop.f32.mrb[36].mxu0 }
 0x99f   : > { %v3903_v45 = vmin.f32 %v4956_v44, 0.0  ;;  %v3891_v7 = vpop.f32.mrb[37].mxu0  ;;  %vm3901_vm10 = vcmp.gt.f32.partialorder %v4956_v44, 0.0 }
 0x9a0   : > { %v3902_v8 = vmin.f32 %v3891_v7, 0.0  ;;  %vm3900_vm11 = vcmp.gt.f32.partialorder %v3891_v7, 0.0 }
 0x9a1   : > { %v3906_v9 = vmul.f32 1.442695, %v3903_v45 }
 0x9a2   : > { %v3904_v46 = vmul.f32 1.442695, %v3902_v8 }
 0x9a3   : > { %5213 = vpow2.f32 %v3906_v9 }
 0x9a4   : > { %5215 = vpow2.f32 %v3904_v46  ;;  %v3810_v48 = vpop.f32.mrb[32].mxu1 }
 0x9a5   : > { %v3814_v49 = vmul.f32 %v3810_v48, %v3739_v12  ;;  %v4945_v50 = vpop.f32.mrb[33].mxu1 }
 0x9a7   : > { %4966 = vmatmul.mubr.msk.f32.vlgmr.msra.gmra.mrb[34].mxu1 %vm941_vm0, %v3814_v49 }
 0x9ad   : > { %v5214_v20 = vpop.eup %5213 }
 0x9ae   : > { %v5216_v52 = vpop.eup %5215  ;;  %v4442_v43 = vadd.f32 -1.0, %v5214_v20 }
 0x9af   : > { %v4441_v10 = vadd.f32 -1.0, %v5216_v52 }
 0x9b0   : > { %v3911_v5 = vsel %vm3901_vm10, %v4956_v44, %v4442_v43 }
 0x9b1   : > { %3997 = vst.msk [vmem:[%s843_s23 + $0x8] sm:$0xff] %vm3995_vm9, %v3911_v5  ;;  %v3910_v16 = vsel %vm3900_vm11, %v3891_v7, %v4441_v10  ;;  %v4001_v53 = vand.u32 2147483647, %v3911_v5 }
 0x9b2   : > { %3996 = vst.msk [vmem:[%s843_s23] sm:$0xff] %vm3995_vm9, %v3910_v16  ;;  %v4000_v55 = vand.u32 2147483647, %v3910_v16  ;;  %s5229_s23 = scalar_lea.vmem %s5228_s24, 32 }
 0x9b3   : > { %v4005_v56 = vsel %vm3995_vm9, %v4001_v53, 0.0  ;;  %p5231_p1 = scmp.lt.s32.totalorder %s5229_s23, %s5223_s29 }
 0x9b4   : > { %4006 = vadd.xlane.f32.xlu1 %v4005_v56  ;;  %v4002_v57 = vsel %vm3995_vm9, %v4000_v55, 0.0 }
 0x9b5   : > { %4003 = vadd.xlane.f32.xlu0 %v4002_v57  ;;  %p5232_p2 = por %p5231_p1, %p5230_p0 }
 0x9b7   : > { %p5233_p3 = pnand %p5232_p2, %p5226_p13 }
 0xa41   : > { %v4007_v58 = vpop.xlane.xlu1 %4006 }
 0xa42   : > { %vm4009_vm0 = vcmp.gt.f32.partialorder %v4007_v58, 0.0  ;;  %v4004_v59 = vpop.xlane.xlu0 %4003 }
 0xa43   : > { %v4446_v60 = vsel %vm4009_vm0, 1.0, %v5348_v51  ;;  %vm4008_vm12 = vcmp.gt.f32.partialorder %v4004_v59, 0.0 }
 0xa44   : > { %v4022_v61 = vmul.f32 %v4446_v60, %v3911_v5  ;;  %v4445_v62 = vsel %vm4008_vm12, 1.0, %v5348_v51 }
 0xa45   : > { %v4021_v63 = vmul.f32 %v4445_v62, %v3910_v16  ;;  %v4032_v0 = vadd.f32 %v4446_v60, %v4445_v62 }
 0xa46   : > { %v4024_v1 = vsel %vm3995_vm9, %v4022_v61, 0.0 }
 0xa47   : > { %v4023_v2 = vsel %vm3995_vm9, %v4021_v63, 0.0  ;;  %v4033_v3 = vrot.slane %v4032_v0, 4 }
 0xa48   : > { %v4025_v4 = vadd.f32 %v4024_v1, %v4023_v2 }
 0xa49   : > { %v4034_v6 = vadd.f32 %v4033_v3, %v4032_v0 }
 0xa4a   : > { %v4026_v14 = vrot.slane %v4025_v4, 4 }
 0xa4b   : > { %v4035_v15 = vrot.slane %v4034_v6, 2 }
 0xa4c   : > { %v4027_v54 = vadd.f32 %v4026_v14, %v4025_v4 }
 0xa4d   : > { %v4036_v17 = vadd.f32 %v4035_v15, %v4034_v6 }
 0xa4e   : > { %v4028_v22 = vrot.slane %v4027_v54, 2 }
 0xa4f   : > { %v4037_v19 = vrot.slane %v4036_v17, 1 }
 0xa50   : > { %v4029_v24 = vadd.f32 %v4028_v22, %v4027_v54 }
 0xa51   : > { %v4038_v21 = vadd.f32 %v4037_v19, %v4036_v17 }
 0xa52   : > { %v4030_v25 = vrot.slane %v4029_v24, 1 }
 0xa53   : > { %v4039_v23 = vmax.f32 %v4038_v21, 1.0 }
 0xa54   : > { %v4031_v13 = vadd.f32 %v4030_v25, %v4029_v24 }
 0xa55   : > { %5217 = vrcp.f32 %v4039_v23 }
 0xa5f   : > { %v5218_v26 = vpop.eup %5217 }
 0xa60   : > { %v4041_v27 = vmul.f32 %v5218_v26, %v4031_v13 }
 0xa62   : > { %4043 = vst.msk [vmem:[%s794_s27] sm:$0x1] %vm4042_vm13, %v4041_v27 }
 0xa7a   : > { %v3985_v28 = vpop.f32.mrb[34].mxu1 }
 0xa7b   : > { %v3990_v29 = vmin.f32 %v3985_v28, 0.0  ;;  %v4967_v30 = vpop.f32.mrb[35].mxu1  ;;  %vm3989_vm15 = vcmp.gt.f32.partialorder %v3985_v28, 0.0 }
 0xa7d   : > { %v3991_v31 = vmul.f32 1.442695, %v3990_v29 }
 0xa7f   : > { %5219 = vpow2.f32 %v3991_v31 }
 0xa89   : > { %v5220_v32 = vpop.eup %5219 }
 0xa8a   : > { %v4444_v42 = vadd.f32 -1.0, %v5220_v32 }
 0xa8c   : > { %v6129_v18 = vsel %vm3989_vm15, %v3985_v28, %v4444_v42 }
 0xa8d   : > { %v4014_v33 = vand.u32 2147483647, %v6129_v18  ;;  %3999 = vst.msk [vmem:[%s6132_s3] sm:$0xf] %vm3998_vm14, %v6129_v18 }
 0xa8f   : > { %v4015_v41 = vsel %vm3998_vm14, %v4014_v33, 0.0 }
 0xa90   : > { %4016 = vadd.xlane.f32.xlu0 %v4015_v41 }
 0xa91   : > { %5236 = shalt.err (!%p5233_p3)
}
 0xa92   : > { %s5237_s27 = scalar_lea.hbm %s6145_s26, 16  ;;  %s5241_s30 = scalar_lea.hbm %s6263_s21, 32 }
 0xa93   : > { %p5238_p4 = scmp.ne.s32.totalorder %s6145_s26, %s5237_s27  ;;  %p5242_p9 = scmp.lt.u32.totalorder %s6145_s26, %s6263_s21 }
 0xa94   : > { %p5243_p10 = scmp.lt.u32.totalorder %s5241_s30, %s5237_s27  ;;  %p5245_p12 = scmp.lt.u32.totalorder %s5237_s27, %s6145_s26 }
 0xa95   : > { %p5239_p7 = pnand %p5238_p4, %p5509_p5 }
 0xa96   : > { %p5244_p11 = por %p5243_p10, %p5242_p9 }
 0xa97   : > { %p5240_p8 = pneg %p5239_p7 }
 0xa98   : > { %p5246_p13 = por %p5245_p12, %p5244_p11 }
 0xa9a   : > { %p5247_p0 = pnand %p5246_p13, %p5240_p8 }
 0xa9c   : > { %5250 = shalt.err (!%p5247_p0)
}
 0xa9d   : > { %5125 = dma.vmem_to_hbm [thread:$0]  (%p5509_p5), %s4107_s25, 16, %s6145_s26, %s6147_s2  }
 0xa9e   : > { %s4449_s29 = sshll.u32 %s5490_s4, 6  ;;  %s4093_s24 = sshll.u32 %s6132_s3, 4  ;;  %s4094_s24 = int_to_ptr.vmem [resolvable:$true] %s4093_s24 }
 0xa9f   : > { %s6304_s20 = sld [smem:[#allocation24_spill]]  ;;  %s4069_s27 = scalar_lea.sflag [#allocation3], %s6124_s0 }
 0xaa0   : > { %s5251_s5 = scalar_lea.vmem %s4094_s24, 64  ;;  %s5352_s8 = smov [#allocation2]  }
 0xaa1   : > { %p5252_p1 = scmp.ne.s32.totalorder %s4094_s24, %s5251_s5  ;;  %s5255_s22 = sshll.u32 %s5352_s8, 4  ;;  %s5256_s22 = int_to_ptr.vmem [resolvable:$false] %s5255_s22 }
 0xaa2   : > { %s5257_s7 = scalar_lea.vmem %s5256_s22, 128  ;;  %p5258_p4 = scmp.lt.s32.totalorder %s4094_s24, %s5256_s22 }
 0xaa3   : > { %p5253_p2 = pnand %p5252_p1, %p5509_p5  ;;  %p5259_p7 = scmp.lt.s32.totalorder %s5257_s7, %s5251_s5 }
 0xaa5   : > { %s6172_s30 = scalar_lea.hbm %s6304_s20, %s4449_s29  ;;  %p5254_p3 = pneg %p5253_p2 }
 0xaa6   : > { %p5260_p8 = por %p5259_p7, %p5258_p4 }
 0xaa8   : > { %p5261_p9 = pnand %p5260_p8, %p5254_p3 }
 0xaaa   : > { %5264 = shalt.err (!%p5261_p9)
}
 0xaab   : > { %s5265_s3 = scalar_lea.hbm %s6172_s30, 64  ;;  %s5269_s29 = scalar_lea.hbm %s6304_s20, 128 }
 0xaac   : > { %p5266_p10 = scmp.ne.s32.totalorder %s6172_s30, %s5265_s3  ;;  %p5270_p13 = scmp.lt.u32.totalorder %s6172_s30, %s6304_s20 }
 0xaad   : > { %p5271_p0 = scmp.lt.u32.totalorder %s5269_s29, %s5265_s3  ;;  %p5273_p2 = scmp.lt.u32.totalorder %s5265_s3, %s6172_s30 }
 0xaae   : > { %p5267_p11 = pnand %p5266_p10, %p5509_p5 }
 0xaaf   : > { %p5272_p1 = por %p5271_p0, %p5270_p13 }
 0xab0   : > { %p5268_p12 = pneg %p5267_p11 }
 0xab1   : > { %p5274_p3 = por %p5273_p2, %p5272_p1 }
 0xab3   : > { %p5275_p4 = pnand %p5274_p3, %p5268_p12 }
 0xab5   : > { %5278 = shalt.err (!%p5275_p4)
}
 0xab6   : > { %5124 = dma.vmem_to_hbm [thread:$0]  (%p5509_p5), %s4094_s24, 64, %s6172_s30, %s4069_s27  }
 0xab7   : > { %s800_s7 = scalar_lea.vmem [#allocation6], %s6124_s0  ;;  %s6305_s1 = sshll.u32 %s5490_s4, 4 }
 0xab8   : > { %s4119_s24 = sshll.u32 %s800_s7, 4  ;;  %s6306_s5 = sld [smem:[#allocation25_spill]]  ;;  %s4120_s24 = int_to_ptr.vmem [resolvable:$true] %s4119_s24 }
 0xab9   : > { %s5279_s3 = scalar_lea.vmem %s4120_s24, 16  ;;  %s5353_s26 = smov [#allocation6]  }
 0xaba   : > { %p5280_p7 = scmp.ne.s32.totalorder %s4120_s24, %s5279_s3  ;;  %s5283_s0 = sshll.u32 %s5353_s26, 4  ;;  %s5284_s0 = int_to_ptr.vmem [resolvable:$false] %s5283_s0 }
 0xabb   : > { %s5285_s25 = scalar_lea.vmem %s5284_s0, 32  ;;  %p5286_p10 = scmp.lt.s32.totalorder %s4120_s24, %s5284_s0 }
 0xabc   : > { %p5281_p8 = pnand %p5280_p7, %p5509_p5  ;;  %p5287_p11 = scmp.lt.s32.totalorder %s5285_s25, %s5279_s3 }
 0xabe   : > { %s6202_s8 = scalar_lea.hbm %s6306_s5, %s6305_s1  ;;  %p5282_p9 = pneg %p5281_p8 }
 0xabf   : > { %p5288_p12 = por %p5287_p11, %p5286_p10 }
 0xac1   : > { %p5289_p13 = pnand %p5288_p12, %p5282_p9 }
 0xb1d   : > { %v4017_v11 = vpop.xlane.xlu0 %4016 }
 0xb1e   : > { %vm4018_vm1 = vcmp.gt.f32.partialorder %v4017_v11, 0.0 }
 0xb1f   : > { %v4447_v34 = vsel %vm4018_vm1, 1.0, %v5348_v51 }
 0xb20   : > { %v4044_v47 = vmul.f32 %v4447_v34, %v6129_v18  ;;  %v4052_v35 = vsel %vm1539_vm6, %v4447_v34, 0.0 }
 0xb21   : > { %v4053_v36 = vrot.slane %v4052_v35, 4 }
 0xb22   : > { %v4045_v37 = vsel %vm3998_vm14, %v4044_v47, 0.0 }
 0xb23   : > { %v4054_v38 = vadd.f32 %v4053_v36, %v4052_v35  ;;  %v4046_v39 = vrot.slane %v4045_v37, 4 }
 0xb25   : > { %v4055_v40 = vrot.slane %v4054_v38, 2  ;;  %v4047_v44 = vadd.f32 %v4046_v39, %v4045_v37 }
 0xb27   : > { %v4056_v12 = vadd.f32 %v4055_v40, %v4054_v38  ;;  %v4048_v8 = vrot.slane %v4047_v44, 2 }
 0xb29   : > { %v4057_v45 = vrot.slane %v4056_v12, 1  ;;  %v4049_v51 = vadd.f32 %v4048_v8, %v4047_v44 }
 0xb2b   : > { %v4058_v7 = vadd.f32 %v4057_v45, %v4056_v12  ;;  %v4050_v46 = vrot.slane %v4049_v51, 1 }
 0xb2d   : > { %v4059_v9 = vmax.f32 %v4058_v7, 1.0  ;;  %v4051_v48 = vadd.f32 %v4050_v46, %v4049_v51 }
 0xb2f   : > { %5221 = vrcp.f32 %v4059_v9 }
 0xb39   : > { %v5222_v49 = vpop.eup %5221 }
 0xb3a   : > { %v4061_v50 = vmul.f32 %v5222_v49, %v4051_v48 }
 0xb3c   : > { %4062 = vst.msk [vmem:[%s800_s7] sm:$0x1] %vm4042_vm13, %v4061_v50 }
 0xb3d   : > { %5292 = shalt.err (!%p5289_p13)
}
 0xb3e   : > { %s5293_s4 = scalar_lea.hbm %s6202_s8, 16  ;;  %s5297_s22 = scalar_lea.hbm %s6306_s5, 32 }
 0xb3f   : > { %p5294_p0 = scmp.ne.s32.totalorder %s6202_s8, %s5293_s4  ;;  %p5298_p3 = scmp.lt.u32.totalorder %s6202_s8, %s6306_s5 }
 0xb40   : > { %p5299_p4 = scmp.lt.u32.totalorder %s5297_s22, %s5293_s4  ;;  %p5301_p8 = scmp.lt.u32.totalorder %s5293_s4, %s6202_s8 }
 0xb41   : > { %p5295_p1 = pnand %p5294_p0, %p5509_p5 }
 0xb42   : > { %p5300_p7 = por %p5299_p4, %p5298_p3 }
 0xb43   : > { %p5296_p2 = pneg %p5295_p1 }
 0xb44   : > { %p5302_p9 = por %p5301_p8, %p5300_p7 }
 0xb46   : > { %p5303_p10 = pnand %p5302_p9, %p5296_p2 }
 0xb48   : > { %5306 = shalt.err (!%p5303_p10)
}
 0xb49   : > { %5126 = dma.vmem_to_hbm [thread:$0]  (%p5509_p5), %s4120_s24, 16, %s6202_s8, %s6147_s2  }
 0xb4a PF: > { %s6307_s30 = sld [smem:[#allocation11_spill]]  ;;  %s6308_s27 = sld [smem:[#allocation9_spill]] }
 0xb50   : > { %p5140_p11 = scmp.ge.s32.totalorder %s6307_s30, 2  ;;  %s4139_s26 = sand.u32 1, %s6308_s27  }
 0xb51   : > { %s4140_s0 = scalar_lea.sflag [#allocation3], %s4139_s26 }
 0xb52   : > { %p5131_p12 = pnand %p5140_p11, %p5513_p6 }
 0xb54   : > { %5324 = dma.done.wait (!%p5131_p12), %s4140_s0, 64  }
 0xb55   : > { %5326 = vsyncadd (!%p5131_p12), %s4140_s0, 4294967232  ;;  %s6310_s25 = sadd.s32 4294967294, %s6307_s30  }
 0xb56   : > { %s4148_s4 = sand.u32 1, %s6310_s25  }
 0xb57   : > { %s4149_s29 = scalar_lea.sflag [#allocation5], %s4148_s4 }
 0xb58   : > { %5328 = dma.done.wait (!%p5131_p12), %s4149_s29, 32  }
 0xb59   : > { %5330 = vsyncadd (!%p5131_p12), %s4149_s29, 4294967264  ;;  %s6311_s30 = sld [smem:[#allocation12_spill]]  ;;  %s6312_s6 = sld [smem:[#allocation10_spill]] }
 0xb5a   : > { %s6313_s29 = sld [smem:[#allocation13_spill]]  ;;  %s6314_s3 = smov %s5337_s28 }
 0xb5f   : > { %p36_p5 = scmp.ge.s32.totalorder %s6311_s30, 4   ;;  %s6315_s28 = smov %s6312_s6 }
 0xb61   :  { %38 = sbr.rel (!%p36_p5) target bundleno = 17 (0x11), region = 202 }
 0xb68   :  { %4161 = vsyncpa [#allocation3], 1 }
 0xb69   :  { %4163 = vsyncpa [#allocation3 + $0x1], 1 }
 0xb6a   :  { %4164 = vsyncpa [#allocation5], 1 }
 0xb6b   :  { %4166 = vsyncpa [#allocation5 + $0x1], 1 }

</bundles_post_ra>
